<compile_context>
chip_gen: v6e
topology: v6e:2x2x1
jax: 0.10.0
libtpu: 0.0.40
codegen_flags: <defaults>
</compile_context>

<pallas_src>
import numpy as np
import jax
import jax.numpy as jnp
from jax.experimental import pallas as pl
from jax.experimental.pallas import tpu as pltpu

_EPS = 1e-5   # PyTorch GroupNorm default eps
_K = 3
_PAD = 1


def _round_up(x, m):
    return (x + m - 1) // m * m


# ---------------------------------------------------------------------------
# Fused Pallas kernel
# ---------------------------------------------------------------------------
def _make_kernel(C, S, Sq, L, M, offsets):
    """Fused (conv0 + GN0 + ReLU) -> (conv1 + GN1) -> residual, one sample."""
    inv_s = 1.0 / float(S)

    def conv_gn(src, m, w_ref, b_ref, g_ref, be_ref, taps_ref):
        # src: (C, L) f32 haloed flat volume (zero outside the real voxels).
        # Build the 27-tap stack in VMEM scratch: rows [t*C, t*C+C) hold the
        # volume shifted by offsets[t] along the flattened (lane) axis.
        for t, off in enumerate(offsets):
            taps_ref[pl.ds(t * C, C), :] = src[:, M + off:M + off + Sq]
        # One lane-dense GEMM: (C, 27C) @ (27C, Sq) -> (C, Sq), f32 accumulate.
        a = jnp.dot(w_ref[...], taps_ref[...].astype(jnp.bfloat16),
                    preferred_element_type=jnp.float32)
        a = (a + b_ref[...]) * m                       # bias; zero padding lanes
        # GroupNorm with num_groups == C: per-channel stats over S real voxels
        # (mask keeps the padding lanes out of the statistics).
        mean = jnp.sum(a, axis=1, keepdims=True) * inv_s
        cen = (a - mean) * m
        var = jnp.sum(cen * cen, axis=1, keepdims=True) * inv_s
        return cen * jax.lax.rsqrt(var + _EPS) * g_ref[...] + be_ref[...]

    def kernel(xh_ref, m_ref, w0_ref, b0_ref, g0_ref, be0_ref,
               w1_ref, b1_ref, g1_ref, be1_ref, o_ref, taps_ref, halo_ref):
        x_full = xh_ref[0]                             # (C, L) f32
        m = m_ref[...]                                 # (1, Sq) interior mask

        # ---- stage 0: conv0 -> GN0 -> ReLU (stays in VMEM) -----------------
        y0 = conv_gn(x_full, m, w0_ref, b0_ref, g0_ref, be0_ref, taps_ref)
        h = jnp.maximum(y0, 0.0) * m                   # re-zero padding voxels

        # haloed copy of h for stage-1 tap formation (borders = zero padding)
        halo_ref[:, pl.ds(0, M)] = jnp.zeros((C, M), jnp.float32)
        halo_ref[:, pl.ds(M + Sq, L - M - Sq)] = jnp.zeros((C, L - M - Sq),
                                                           jnp.float32)
        halo_ref[:, pl.ds(M, Sq)] = h

        # ---- stage 1: conv1 -> GN1 -> residual -----------------------------
        y1 = conv_gn(halo_ref[...], m, w1_ref, b1_ref, g1_ref, be1_ref, taps_ref)
        o_ref[0] = (x_full[:, M:M + Sq] + y1).astype(o_ref.dtype)

    return kernel


# ---------------------------------------------------------------------------
# Wrapper: layout plumbing only (pad + flatten; no im2col, no transposes)
# ---------------------------------------------------------------------------
def _pack_weight(w):
    # (Cout, Cin, kd, kh, kw) -> (Cout, kd, kh, kw, Cin) -> (Cout, 27*Cin); bf16
    C = w.shape[0]
    return jnp.transpose(w, (0, 2, 3, 4, 1)).reshape(C, -1).astype(jnp.bfloat16)


def resconv_block_forward(x, params):
    N, C, D, H, W = x.shape
    Dp, Hp, Wp = D + 2 * _PAD, H + 2 * _PAD, W + 2 * _PAD
    Sp = Dp * Hp * Wp                       # padded flat spatial size
    S = D * H * W                           # real voxels per channel
    Sq = _round_up(Sp, 128)                 # lane-dense compute width
    maxo = _PAD * (Hp * Wp + Wp + 1)        # largest |tap offset| in flat space
    M = _round_up(maxo, 128)                # lane-aligned halo width
    L = M + Sq + M
    F = _K * _K * _K * C

    offsets = [(kd - _PAD) * Hp * Wp + (kh - _PAD) * Wp + (kw - _PAD)
               for kd in range(_K) for kh in range(_K) for kw in range(_K)]

    # zero-pad spatially, flatten spatial, add lane-aligned halo: (N, C, L)
    xp = jnp.pad(x, ((0, 0), (0, 0), (_PAD, _PAD), (_PAD, _PAD), (_PAD, _PAD)))
    xh = jnp.pad(xp.reshape(N, C, Sp),
                 ((0, 0), (0, 0), (M, L - M - Sp))).astype(jnp.float32)

    # static interior mask over the padded-flat grid (1.0 = real voxel)
    m_np = np.zeros((1, Sq), np.float32)
    flat_idx = (np.arange(_PAD, D + _PAD)[:, None, None] * Hp * Wp
                + np.arange(_PAD, H + _PAD)[None, :, None] * Wp
                + np.arange(_PAD, W + _PAD)[None, None, :]).reshape(-1)
    m_np[0, flat_idx] = 1.0
    mask = jnp.asarray(m_np)

    w0 = _pack_weight(params["w0"])
    w1 = _pack_weight(params["w1"])
    b0 = params["b0"].reshape(C, 1).astype(jnp.float32)
    g0 = params["g0"].reshape(C, 1).astype(jnp.float32)
    be0 = params["be0"].reshape(C, 1).astype(jnp.float32)
    b1 = params["b1"].reshape(C, 1).astype(jnp.float32)
    g1 = params["g1"].reshape(C, 1).astype(jnp.float32)
    be1 = params["be1"].reshape(C, 1).astype(jnp.float32)

    row3 = lambda n: (n, 0, 0)
    full = lambda n: (0, 0)

    out_full = pl.pallas_call(
        _make_kernel(C, S, Sq, L, M, offsets),
        out_shape=jax.ShapeDtypeStruct((N, C, Sq), x.dtype),
        grid_spec=pltpu.PrefetchScalarGridSpec(
            num_scalar_prefetch=0,
            grid=(N,),
            in_specs=[
                pl.BlockSpec((1, C, L), row3),     # haloed flat input
                pl.BlockSpec((1, Sq), full),       # interior mask
                pl.BlockSpec((C, F), full),        # w0 (bf16)
                pl.BlockSpec((C, 1), full),        # b0
                pl.BlockSpec((C, 1), full),        # g0
                pl.BlockSpec((C, 1), full),        # be0
                pl.BlockSpec((C, F), full),        # w1 (bf16)
                pl.BlockSpec((C, 1), full),        # b1
                pl.BlockSpec((C, 1), full),        # g1
                pl.BlockSpec((C, 1), full),        # be1
            ],
            out_specs=pl.BlockSpec((1, C, Sq), row3),
            scratch_shapes=[
                pltpu.VMEM((F, Sq), jnp.float32),  # stacked taps
                pltpu.VMEM((C, L), jnp.float32),   # haloed intermediate h
            ],
        ),
        compiler_params=pltpu.CompilerParams(dimension_semantics=("parallel",)),
    )(xh, mask, w0, b0, g0, be0, w1, b1, g1, be1)

    out = out_full[:, :, :Sp].reshape(N, C, Dp, Hp, Wp)
    return out[:, :, _PAD:_PAD + D, _PAD:_PAD + H, _PAD:_PAD + W]


# ---------------------------------------------------------------------------
# Pure-JAX reference (independent of the kernel)
# ---------------------------------------------------------------------------
def _conv3d_ref(x, w, b):
    return jax.lax.conv_general_dilated(
        x, w, window_strides=(1, 1, 1), padding=((1, 1),) * 3,
        dimension_numbers=("NCDHW", "OIDHW", "NCDHW"),
        precision=jax.lax.Precision.HIGHEST) + b[None, :, None, None, None]


def _groupnorm_ref(a, g, be):
    mean = a.mean(axis=(2, 3, 4), keepdims=True)
    var = ((a - mean) ** 2).mean(axis=(2, 3, 4), keepdims=True)
    return ((a - mean) * jax.lax.rsqrt(var + _EPS)
            * g[None, :, None, None, None] + be[None, :, None, None, None])


def resconv_block_ref(x, params):
    a = _conv3d_ref(x, params["w0"], params["b0"])
    a = jnp.maximum(_groupnorm_ref(a, params["g0"], params["be0"]), 0.0)
    a = _conv3d_ref(a, params["w1"], params["b1"])
    y = _groupnorm_ref(a, params["g1"], params["be1"])
    return x + y


# ---------------------------------------------------------------------------
if __name__ == "__main__":
    key = jax.random.PRNGKey(0)
    N, C, D, H, W = 2, 4, 8, 8, 8
    ks = jax.random.split(key, 9)
    scale = 1.0 / np.sqrt(C * 27)                      # ~ PyTorch conv init scale

    params = dict(
        w0=scale * jax.random.normal(ks[0], (C, C, 3, 3, 3), jnp.float32),
        b0=scale * jax.random.normal(ks[1], (C,), jnp.float32),
        w1=scale * jax.random.normal(ks[2], (C, C, 3, 3, 3), jnp.float32),
        b1=scale * jax.random.normal(ks[3], (C,), jnp.float32),
        g0=1.0 + 0.1 * jax.random.normal(ks[4], (C,), jnp.float32),
        be0=0.1 * jax.random.normal(ks[5], (C,), jnp.float32),
        g1=1.0 + 0.1 * jax.random.normal(ks[6], (C,), jnp.float32),
        be1=0.1 * jax.random.normal(ks[7], (C,), jnp.float32),
    )
    x = jax.random.normal(ks[8], (N, C, D, H, W), jnp.float32)

    out = jax.block_until_ready(jax.jit(resconv_block_forward)(x, params))
    ref = jax.block_until_ready(jax.jit(resconv_block_ref)(x, params))

    assert out.shape == (N, C, D, H, W)
    np.testing.assert_allclose(np.asarray(out), np.asarray(ref), rtol=2e-2, atol=2e-2)
    print("KERNEL_OK")
</pallas_src>

<mosaic_0001>
module attributes {stable_mosaic.version = 11 : i64} {
  func.func @kernel(%arg0: i32, %arg1: memref<1x4x1280xf32, #tpu.memory_space<vmem>>, %arg2: memref<1x1024xf32, #tpu.memory_space<vmem>>, %arg3: memref<4x108xbf16, #tpu.memory_space<vmem>>, %arg4: memref<4x1xf32, #tpu.memory_space<vmem>>, %arg5: memref<4x1xf32, #tpu.memory_space<vmem>>, %arg6: memref<4x1xf32, #tpu.memory_space<vmem>>, %arg7: memref<4x108xbf16, #tpu.memory_space<vmem>>, %arg8: memref<4x1xf32, #tpu.memory_space<vmem>>, %arg9: memref<4x1xf32, #tpu.memory_space<vmem>>, %arg10: memref<4x1xf32, #tpu.memory_space<vmem>>, %arg11: memref<1x4x1024xf32, #tpu.memory_space<vmem>>, %arg12: memref<108x1024xf32, #tpu.memory_space<vmem>>, %arg13: memref<4x1280xf32, #tpu.memory_space<vmem>>) attributes {dimension_semantics = [#tpu.dimension_semantics<parallel>], iteration_bounds = array<i64: 2>, scalar_prefetch = 0 : i64, scratch_operands = 2 : i64, tpu.core_type = #tpu.core_type<tc>, window_params = [{transform_indices = @transform_0, window_bounds = array<i64: 1, 4, 1280>}, {pipeline_mode = #tpu.pipeline_mode<synchronous>, transform_indices = @transform_1, window_bounds = array<i64: 1, 1024>}, {pipeline_mode = #tpu.pipeline_mode<synchronous>, transform_indices = @transform_2, window_bounds = array<i64: 4, 108>}, {pipeline_mode = #tpu.pipeline_mode<synchronous>, transform_indices = @transform_3, window_bounds = array<i64: 4, 1>}, {pipeline_mode = #tpu.pipeline_mode<synchronous>, transform_indices = @transform_4, window_bounds = array<i64: 4, 1>}, {pipeline_mode = #tpu.pipeline_mode<synchronous>, transform_indices = @transform_5, window_bounds = array<i64: 4, 1>}, {pipeline_mode = #tpu.pipeline_mode<synchronous>, transform_indices = @transform_6, window_bounds = array<i64: 4, 108>}, {pipeline_mode = #tpu.pipeline_mode<synchronous>, transform_indices = @transform_7, window_bounds = array<i64: 4, 1>}, {pipeline_mode = #tpu.pipeline_mode<synchronous>, transform_indices = @transform_8, window_bounds = array<i64: 4, 1>}, {pipeline_mode = #tpu.pipeline_mode<synchronous>, transform_indices = @transform_9, window_bounds = array<i64: 4, 1>}, {transform_indices = @transform_10, window_bounds = array<i64: 1, 4, 1024>}]} {
    %c0 = arith.constant 0 : index
    %c0_0 = arith.constant 0 : index
    %c0_1 = arith.constant 0 : index
    %0 = vector.load %arg1[%c0, %c0_0, %c0_1] : memref<1x4x1280xf32, #tpu.memory_space<vmem>>, vector<1x4x1280xf32>
    %1 = vector.shape_cast %0 : vector<1x4x1280xf32> to vector<4x1280xf32>
    %c0_2 = arith.constant 0 : index
    %c0_3 = arith.constant 0 : index
    %2 = vector.load %arg2[%c0_2, %c0_3] : memref<1x1024xf32, #tpu.memory_space<vmem>>, vector<1x1024xf32>
    %3 = vector.extract_strided_slice %1 {offsets = [0, 17], sizes = [4, 1024], strides = [1, 1]} : vector<4x1280xf32> to vector<4x1024xf32>
    %c0_4 = arith.constant 0 : index
    %c0_5 = arith.constant 0 : index
    %4 = vector.load %arg12[%c0_4, %c0_5] : memref<108x1024xf32, #tpu.memory_space<vmem>>, vector<4x1024xf32>
    tpu.vector_store %arg12[%c0_4, %c0_5], %3 {strides = array<i32>} : memref<108x1024xf32, #tpu.memory_space<vmem>>, vector<4x1024xf32>,
    %5 = vector.extract_strided_slice %1 {offsets = [0, 18], sizes = [4, 1024], strides = [1, 1]} : vector<4x1280xf32> to vector<4x1024xf32>
    %c4 = arith.constant 4 : index
    %c0_6 = arith.constant 0 : index
    %6 = vector.load %arg12[%c4, %c0_6] : memref<108x1024xf32, #tpu.memory_space<vmem>>, vector<4x1024xf32>
    tpu.vector_store %arg12[%c4, %c0_6], %5 {strides = array<i32>} : memref<108x1024xf32, #tpu.memory_space<vmem>>, vector<4x1024xf32>,
    %7 = vector.extract_strided_slice %1 {offsets = [0, 19], sizes = [4, 1024], strides = [1, 1]} : vector<4x1280xf32> to vector<4x1024xf32>
    %c8 = arith.constant 8 : index
    %c0_7 = arith.constant 0 : index
    %8 = vector.load %arg12[%c8, %c0_7] : memref<108x1024xf32, #tpu.memory_space<vmem>>, vector<4x1024xf32>
    tpu.vector_store %arg12[%c8, %c0_7], %7 {strides = array<i32>} : memref<108x1024xf32, #tpu.memory_space<vmem>>, vector<4x1024xf32>,
    %9 = vector.extract_strided_slice %1 {offsets = [0, 27], sizes = [4, 1024], strides = [1, 1]} : vector<4x1280xf32> to vector<4x1024xf32>
    %c12 = arith.constant 12 : index
    %c0_8 = arith.constant 0 : index
    %10 = vector.load %arg12[%c12, %c0_8] : memref<108x1024xf32, #tpu.memory_space<vmem>>, vector<4x1024xf32>
    tpu.vector_store %arg12[%c12, %c0_8], %9 {strides = array<i32>} : memref<108x1024xf32, #tpu.memory_space<vmem>>, vector<4x1024xf32>,
    %11 = vector.extract_strided_slice %1 {offsets = [0, 28], sizes = [4, 1024], strides = [1, 1]} : vector<4x1280xf32> to vector<4x1024xf32>
    %c16 = arith.constant 16 : index
    %c0_9 = arith.constant 0 : index
    %12 = vector.load %arg12[%c16, %c0_9] : memref<108x1024xf32, #tpu.memory_space<vmem>>, vector<4x1024xf32>
    tpu.vector_store %arg12[%c16, %c0_9], %11 {strides = array<i32>} : memref<108x1024xf32, #tpu.memory_space<vmem>>, vector<4x1024xf32>,
    %13 = vector.extract_strided_slice %1 {offsets = [0, 29], sizes = [4, 1024], strides = [1, 1]} : vector<4x1280xf32> to vector<4x1024xf32>
    %c20 = arith.constant 20 : index
    %c0_10 = arith.constant 0 : index
    %14 = vector.load %arg12[%c20, %c0_10] : memref<108x1024xf32, #tpu.memory_space<vmem>>, vector<4x1024xf32>
    tpu.vector_store %arg12[%c20, %c0_10], %13 {strides = array<i32>} : memref<108x1024xf32, #tpu.memory_space<vmem>>, vector<4x1024xf32>,
    %15 = vector.extract_strided_slice %1 {offsets = [0, 37], sizes = [4, 1024], strides = [1, 1]} : vector<4x1280xf32> to vector<4x1024xf32>
    %c24 = arith.constant 24 : index
    %c0_11 = arith.constant 0 : index
    %16 = vector.load %arg12[%c24, %c0_11] : memref<108x1024xf32, #tpu.memory_space<vmem>>, vector<4x1024xf32>
    tpu.vector_store %arg12[%c24, %c0_11], %15 {strides = array<i32>} : memref<108x1024xf32, #tpu.memory_space<vmem>>, vector<4x1024xf32>,
    %17 = vector.extract_strided_slice %1 {offsets = [0, 38], sizes = [4, 1024], strides = [1, 1]} : vector<4x1280xf32> to vector<4x1024xf32>
    %c28 = arith.constant 28 : index
    %c0_12 = arith.constant 0 : index
    %18 = vector.load %arg12[%c28, %c0_12] : memref<108x1024xf32, #tpu.memory_space<vmem>>, vector<4x1024xf32>
    tpu.vector_store %arg12[%c28, %c0_12], %17 {strides = array<i32>} : memref<108x1024xf32, #tpu.memory_space<vmem>>, vector<4x1024xf32>,
    %19 = vector.extract_strided_slice %1 {offsets = [0, 39], sizes = [4, 1024], strides = [1, 1]} : vector<4x1280xf32> to vector<4x1024xf32>
    %c32 = arith.constant 32 : index
    %c0_13 = arith.constant 0 : index
    %20 = vector.load %arg12[%c32, %c0_13] : memref<108x1024xf32, #tpu.memory_space<vmem>>, vector<4x1024xf32>
    tpu.vector_store %arg12[%c32, %c0_13], %19 {strides = array<i32>} : memref<108x1024xf32, #tpu.memory_space<vmem>>, vector<4x1024xf32>,
    %21 = vector.extract_strided_slice %1 {offsets = [0, 117], sizes = [4, 1024], strides = [1, 1]} : vector<4x1280xf32> to vector<4x1024xf32>
    %c36 = arith.constant 36 : index
    %c0_14 = arith.constant 0 : index
    %22 = vector.load %arg12[%c36, %c0_14] : memref<108x1024xf32, #tpu.memory_space<vmem>>, vector<4x1024xf32>
    tpu.vector_store %arg12[%c36, %c0_14], %21 {strides = array<i32>} : memref<108x1024xf32, #tpu.memory_space<vmem>>, vector<4x1024xf32>,
    %23 = vector.extract_strided_slice %1 {offsets = [0, 118], sizes = [4, 1024], strides = [1, 1]} : vector<4x1280xf32> to vector<4x1024xf32>
    %c40 = arith.constant 40 : index
    %c0_15 = arith.constant 0 : index
    %24 = vector.load %arg12[%c40, %c0_15] : memref<108x1024xf32, #tpu.memory_space<vmem>>, vector<4x1024xf32>
    tpu.vector_store %arg12[%c40, %c0_15], %23 {strides = array<i32>} : memref<108x1024xf32, #tpu.memory_space<vmem>>, vector<4x1024xf32>,
    %25 = vector.extract_strided_slice %1 {offsets = [0, 119], sizes = [4, 1024], strides = [1, 1]} : vector<4x1280xf32> to vector<4x1024xf32>
    %c44 = arith.constant 44 : index
    %c0_16 = arith.constant 0 : index
    %26 = vector.load %arg12[%c44, %c0_16] : memref<108x1024xf32, #tpu.memory_space<vmem>>, vector<4x1024xf32>
    tpu.vector_store %arg12[%c44, %c0_16], %25 {strides = array<i32>} : memref<108x1024xf32, #tpu.memory_space<vmem>>, vector<4x1024xf32>,
    %27 = vector.extract_strided_slice %1 {offsets = [0, 127], sizes = [4, 1024], strides = [1, 1]} : vector<4x1280xf32> to vector<4x1024xf32>
    %c48 = arith.constant 48 : index
    %c0_17 = arith.constant 0 : index
    %28 = vector.load %arg12[%c48, %c0_17] : memref<108x1024xf32, #tpu.memory_space<vmem>>, vector<4x1024xf32>
    tpu.vector_store %arg12[%c48, %c0_17], %27 {strides = array<i32>} : memref<108x1024xf32, #tpu.memory_space<vmem>>, vector<4x1024xf32>,
    %29 = vector.extract_strided_slice %1 {offsets = [0, 128], sizes = [4, 1024], strides = [1, 1]} : vector<4x1280xf32> to vector<4x1024xf32>
    %c52 = arith.constant 52 : index
    %c0_18 = arith.constant 0 : index
    %30 = vector.load %arg12[%c52, %c0_18] : memref<108x1024xf32, #tpu.memory_space<vmem>>, vector<4x1024xf32>
    tpu.vector_store %arg12[%c52, %c0_18], %29 {strides = array<i32>} : memref<108x1024xf32, #tpu.memory_space<vmem>>, vector<4x1024xf32>,
    %31 = vector.extract_strided_slice %1 {offsets = [0, 129], sizes = [4, 1024], strides = [1, 1]} : vector<4x1280xf32> to vector<4x1024xf32>
    %c56 = arith.constant 56 : index
    %c0_19 = arith.constant 0 : index
    %32 = vector.load %arg12[%c56, %c0_19] : memref<108x1024xf32, #tpu.memory_space<vmem>>, vector<4x1024xf32>
    tpu.vector_store %arg12[%c56, %c0_19], %31 {strides = array<i32>} : memref<108x1024xf32, #tpu.memory_space<vmem>>, vector<4x1024xf32>,
    %33 = vector.extract_strided_slice %1 {offsets = [0, 137], sizes = [4, 1024], strides = [1, 1]} : vector<4x1280xf32> to vector<4x1024xf32>
    %c60 = arith.constant 60 : index
    %c0_20 = arith.constant 0 : index
    %34 = vector.load %arg12[%c60, %c0_20] : memref<108x1024xf32, #tpu.memory_space<vmem>>, vector<4x1024xf32>
    tpu.vector_store %arg12[%c60, %c0_20], %33 {strides = array<i32>} : memref<108x1024xf32, #tpu.memory_space<vmem>>, vector<4x1024xf32>,
    %35 = vector.extract_strided_slice %1 {offsets = [0, 138], sizes = [4, 1024], strides = [1, 1]} : vector<4x1280xf32> to vector<4x1024xf32>
    %c64 = arith.constant 64 : index
    %c0_21 = arith.constant 0 : index
    %36 = vector.load %arg12[%c64, %c0_21] : memref<108x1024xf32, #tpu.memory_space<vmem>>, vector<4x1024xf32>
    tpu.vector_store %arg12[%c64, %c0_21], %35 {strides = array<i32>} : memref<108x1024xf32, #tpu.memory_space<vmem>>, vector<4x1024xf32>,
    %37 = vector.extract_strided_slice %1 {offsets = [0, 139], sizes = [4, 1024], strides = [1, 1]} : vector<4x1280xf32> to vector<4x1024xf32>
    %c68 = arith.constant 68 : index
    %c0_22 = arith.constant 0 : index
    %38 = vector.load %arg12[%c68, %c0_22] : memref<108x1024xf32, #tpu.memory_space<vmem>>, vector<4x1024xf32>
    tpu.vector_store %arg12[%c68, %c0_22], %37 {strides = array<i32>} : memref<108x1024xf32, #tpu.memory_space<vmem>>, vector<4x1024xf32>,
    %39 = vector.extract_strided_slice %1 {offsets = [0, 217], sizes = [4, 1024], strides = [1, 1]} : vector<4x1280xf32> to vector<4x1024xf32>
    %c72 = arith.constant 72 : index
    %c0_23 = arith.constant 0 : index
    %40 = vector.load %arg12[%c72, %c0_23] : memref<108x1024xf32, #tpu.memory_space<vmem>>, vector<4x1024xf32>
    tpu.vector_store %arg12[%c72, %c0_23], %39 {strides = array<i32>} : memref<108x1024xf32, #tpu.memory_space<vmem>>, vector<4x1024xf32>,
    %41 = vector.extract_strided_slice %1 {offsets = [0, 218], sizes = [4, 1024], strides = [1, 1]} : vector<4x1280xf32> to vector<4x1024xf32>
    %c76 = arith.constant 76 : index
    %c0_24 = arith.constant 0 : index
    %42 = vector.load %arg12[%c76, %c0_24] : memref<108x1024xf32, #tpu.memory_space<vmem>>, vector<4x1024xf32>
    tpu.vector_store %arg12[%c76, %c0_24], %41 {strides = array<i32>} : memref<108x1024xf32, #tpu.memory_space<vmem>>, vector<4x1024xf32>,
    %43 = vector.extract_strided_slice %1 {offsets = [0, 219], sizes = [4, 1024], strides = [1, 1]} : vector<4x1280xf32> to vector<4x1024xf32>
    %c80 = arith.constant 80 : index
    %c0_25 = arith.constant 0 : index
    %44 = vector.load %arg12[%c80, %c0_25] : memref<108x1024xf32, #tpu.memory_space<vmem>>, vector<4x1024xf32>
    tpu.vector_store %arg12[%c80, %c0_25], %43 {strides = array<i32>} : memref<108x1024xf32, #tpu.memory_space<vmem>>, vector<4x1024xf32>,
    %45 = vector.extract_strided_slice %1 {offsets = [0, 227], sizes = [4, 1024], strides = [1, 1]} : vector<4x1280xf32> to vector<4x1024xf32>
    %c84 = arith.constant 84 : index
    %c0_26 = arith.constant 0 : index
    %46 = vector.load %arg12[%c84, %c0_26] : memref<108x1024xf32, #tpu.memory_space<vmem>>, vector<4x1024xf32>
    tpu.vector_store %arg12[%c84, %c0_26], %45 {strides = array<i32>} : memref<108x1024xf32, #tpu.memory_space<vmem>>, vector<4x1024xf32>,
    %47 = vector.extract_strided_slice %1 {offsets = [0, 228], sizes = [4, 1024], strides = [1, 1]} : vector<4x1280xf32> to vector<4x1024xf32>
    %c88 = arith.constant 88 : index
    %c0_27 = arith.constant 0 : index
    %48 = vector.load %arg12[%c88, %c0_27] : memref<108x1024xf32, #tpu.memory_space<vmem>>, vector<4x1024xf32>
    tpu.vector_store %arg12[%c88, %c0_27], %47 {strides = array<i32>} : memref<108x1024xf32, #tpu.memory_space<vmem>>, vector<4x1024xf32>,
    %49 = vector.extract_strided_slice %1 {offsets = [0, 229], sizes = [4, 1024], strides = [1, 1]} : vector<4x1280xf32> to vector<4x1024xf32>
    %c92 = arith.constant 92 : index
    %c0_28 = arith.constant 0 : index
    %50 = vector.load %arg12[%c92, %c0_28] : memref<108x1024xf32, #tpu.memory_space<vmem>>, vector<4x1024xf32>
    tpu.vector_store %arg12[%c92, %c0_28], %49 {strides = array<i32>} : memref<108x1024xf32, #tpu.memory_space<vmem>>, vector<4x1024xf32>,
    %51 = vector.extract_strided_slice %1 {offsets = [0, 237], sizes = [4, 1024], strides = [1, 1]} : vector<4x1280xf32> to vector<4x1024xf32>
    %c96 = arith.constant 96 : index
    %c0_29 = arith.constant 0 : index
    %52 = vector.load %arg12[%c96, %c0_29] : memref<108x1024xf32, #tpu.memory_space<vmem>>, vector<4x1024xf32>
    tpu.vector_store %arg12[%c96, %c0_29], %51 {strides = array<i32>} : memref<108x1024xf32, #tpu.memory_space<vmem>>, vector<4x1024xf32>,
    %53 = vector.extract_strided_slice %1 {offsets = [0, 238], sizes = [4, 1024], strides = [1, 1]} : vector<4x1280xf32> to vector<4x1024xf32>
    %c100 = arith.constant 100 : index
    %c0_30 = arith.constant 0 : index
    %54 = vector.load %arg12[%c100, %c0_30] : memref<108x1024xf32, #tpu.memory_space<vmem>>, vector<4x1024xf32>
    tpu.vector_store %arg12[%c100, %c0_30], %53 {strides = array<i32>} : memref<108x1024xf32, #tpu.memory_space<vmem>>, vector<4x1024xf32>,
    %55 = vector.extract_strided_slice %1 {offsets = [0, 239], sizes = [4, 1024], strides = [1, 1]} : vector<4x1280xf32> to vector<4x1024xf32>
    %c104 = arith.constant 104 : index
    %c0_31 = arith.constant 0 : index
    %56 = vector.load %arg12[%c104, %c0_31] : memref<108x1024xf32, #tpu.memory_space<vmem>>, vector<4x1024xf32>
    tpu.vector_store %arg12[%c104, %c0_31], %55 {strides = array<i32>} : memref<108x1024xf32, #tpu.memory_space<vmem>>, vector<4x1024xf32>,
    %c0_32 = arith.constant 0 : index
    %c0_33 = arith.constant 0 : index
    %57 = vector.load %arg3[%c0_32, %c0_33] : memref<4x108xbf16, #tpu.memory_space<vmem>>, vector<4x108xbf16>
    %c0_34 = arith.constant 0 : index
    %c0_35 = arith.constant 0 : index
    %58 = vector.load %arg12[%c0_34, %c0_35] : memref<108x1024xf32, #tpu.memory_space<vmem>>, vector<108x1024xf32>
    %59 = arith.truncf %58 : vector<108x1024xf32> to vector<108x1024xbf16>
    %cst = arith.constant dense<0.000000e+00> : vector<4x1024xf32>
    %60 = tpu.matmul %57, %59, %cst {dimension_numbers = #tpu.dot_dimension_numbers<[1], [0], [0], [1], [0, 0, 1, 1], [], []>} : vector<4x108xbf16>, vector<108x1024xbf16>, vector<4x1024xf32> -> vector<4x1024xf32>
    %c0_36 = arith.constant 0 : index
    %c0_37 = arith.constant 0 : index
    %61 = vector.load %arg4[%c0_36, %c0_37] : memref<4x1xf32, #tpu.memory_space<vmem>>, vector<4x1xf32>
    %62 = vector.broadcast %61 : vector<4x1xf32> to vector<4x1024xf32>
    %63 = arith.addf %60, %62 : vector<4x1024xf32>
    %64 = vector.broadcast %2 : vector<1x1024xf32> to vector<4x1024xf32>
    %65 = arith.mulf %63, %64 : vector<4x1024xf32>
    %cst_38 = arith.constant dense<0.000000e+00> : vector<4xf32>
    %66 = vector.multi_reduction <add>, %65, %cst_38 [1] : vector<4x1024xf32> to vector<4xf32>
    %67 = vector.shape_cast %66 : vector<4xf32> to vector<4x1xf32>
    %cst_39 = arith.constant 0.001953125 : f32
    %68 = vector.broadcast %cst_39 : f32 to vector<4x1xf32>
    %69 = arith.mulf %67, %68 : vector<4x1xf32>
    %70 = vector.broadcast %69 : vector<4x1xf32> to vector<4x1024xf32>
    %71 = arith.subf %65, %70 : vector<4x1024xf32>
    %72 = vector.broadcast %2 : vector<1x1024xf32> to vector<4x1024xf32>
    %73 = arith.mulf %71, %72 : vector<4x1024xf32>
    %74 = arith.mulf %73, %73 : vector<4x1024xf32>
    %cst_40 = arith.constant dense<0.000000e+00> : vector<4xf32>
    %75 = vector.multi_reduction <add>, %74, %cst_40 [1] : vector<4x1024xf32> to vector<4xf32>
    %76 = vector.shape_cast %75 : vector<4xf32> to vector<4x1xf32>
    %cst_41 = arith.constant 0.001953125 : f32
    %77 = vector.broadcast %cst_41 : f32 to vector<4x1xf32>
    %78 = arith.mulf %76, %77 : vector<4x1xf32>
    %cst_42 = arith.constant 9.99999974E-6 : f32
    %79 = vector.broadcast %cst_42 : f32 to vector<4x1xf32>
    %80 = arith.addf %78, %79 : vector<4x1xf32>
    %81 = math.rsqrt %80 : vector<4x1xf32>
    %82 = vector.broadcast %81 : vector<4x1xf32> to vector<4x1024xf32>
    %83 = arith.mulf %73, %82 : vector<4x1024xf32>
    %c0_43 = arith.constant 0 : index
    %c0_44 = arith.constant 0 : index
    %84 = vector.load %arg5[%c0_43, %c0_44] : memref<4x1xf32, #tpu.memory_space<vmem>>, vector<4x1xf32>
    %85 = vector.broadcast %84 : vector<4x1xf32> to vector<4x1024xf32>
    %86 = arith.mulf %83, %85 : vector<4x1024xf32>
    %c0_45 = arith.constant 0 : index
    %c0_46 = arith.constant 0 : index
    %87 = vector.load %arg6[%c0_45, %c0_46] : memref<4x1xf32, #tpu.memory_space<vmem>>, vector<4x1xf32>
    %88 = vector.broadcast %87 : vector<4x1xf32> to vector<4x1024xf32>
    %89 = arith.addf %86, %88 : vector<4x1024xf32>
    %cst_47 = arith.constant 0.000000e+00 : f32
    %90 = vector.broadcast %cst_47 : f32 to vector<4x1024xf32>
    %91 = arith.maximumf %89, %90 : vector<4x1024xf32>
    %92 = vector.broadcast %2 : vector<1x1024xf32> to vector<4x1024xf32>
    %93 = arith.mulf %91, %92 : vector<4x1024xf32>
    %cst_48 = arith.constant 0.000000e+00 : f32
    %94 = vector.broadcast %cst_48 : f32 to vector<4x128xf32>
    %c0_49 = arith.constant 0 : index
    %c0_50 = arith.constant 0 : index
    %95 = vector.load %arg13[%c0_49, %c0_50] : memref<4x1280xf32, #tpu.memory_space<vmem>>, vector<4x128xf32>
    tpu.vector_store %arg13[%c0_49, %c0_50], %94 {strides = array<i32>} : memref<4x1280xf32, #tpu.memory_space<vmem>>, vector<4x128xf32>,
    %cst_51 = arith.constant 0.000000e+00 : f32
    %96 = vector.broadcast %cst_51 : f32 to vector<4x128xf32>
    %c0_52 = arith.constant 0 : index
    %c1152 = arith.constant 1152 : index
    %97 = vector.load %arg13[%c0_52, %c1152] : memref<4x1280xf32, #tpu.memory_space<vmem>>, vector<4x128xf32>
    tpu.vector_store %arg13[%c0_52, %c1152], %96 {strides = array<i32>} : memref<4x1280xf32, #tpu.memory_space<vmem>>, vector<4x128xf32>,
    %c0_53 = arith.constant 0 : index
    %c128 = arith.constant 128 : index
    %98 = vector.load %arg13[%c0_53, %c128] : memref<4x1280xf32, #tpu.memory_space<vmem>>, vector<4x1024xf32>
    tpu.vector_store %arg13[%c0_53, %c128], %93 {strides = array<i32>} : memref<4x1280xf32, #tpu.memory_space<vmem>>, vector<4x1024xf32>,
    %c0_54 = arith.constant 0 : index
    %c0_55 = arith.constant 0 : index
    %99 = vector.load %arg13[%c0_54, %c0_55] : memref<4x1280xf32, #tpu.memory_space<vmem>>, vector<4x1280xf32>
    %100 = vector.extract_strided_slice %99 {offsets = [0, 17], sizes = [4, 1024], strides = [1, 1]} : vector<4x1280xf32> to vector<4x1024xf32>
    %c0_56 = arith.constant 0 : index
    %c0_57 = arith.constant 0 : index
    %101 = vector.load %arg12[%c0_56, %c0_57] : memref<108x1024xf32, #tpu.memory_space<vmem>>, vector<4x1024xf32>
    tpu.vector_store %arg12[%c0_56, %c0_57], %100 {strides = array<i32>} : memref<108x1024xf32, #tpu.memory_space<vmem>>, vector<4x1024xf32>,
    %102 = vector.extract_strided_slice %99 {offsets = [0, 18], sizes = [4, 1024], strides = [1, 1]} : vector<4x1280xf32> to vector<4x1024xf32>
    %c4_58 = arith.constant 4 : index
    %c0_59 = arith.constant 0 : index
    %103 = vector.load %arg12[%c4_58, %c0_59] : memref<108x1024xf32, #tpu.memory_space<vmem>>, vector<4x1024xf32>
    tpu.vector_store %arg12[%c4_58, %c0_59], %102 {strides = array<i32>} : memref<108x1024xf32, #tpu.memory_space<vmem>>, vector<4x1024xf32>,
    %104 = vector.extract_strided_slice %99 {offsets = [0, 19], sizes = [4, 1024], strides = [1, 1]} : vector<4x1280xf32> to vector<4x1024xf32>
    %c8_60 = arith.constant 8 : index
    %c0_61 = arith.constant 0 : index
    %105 = vector.load %arg12[%c8_60, %c0_61] : memref<108x1024xf32, #tpu.memory_space<vmem>>, vector<4x1024xf32>
    tpu.vector_store %arg12[%c8_60, %c0_61], %104 {strides = array<i32>} : memref<108x1024xf32, #tpu.memory_space<vmem>>, vector<4x1024xf32>,
    %106 = vector.extract_strided_slice %99 {offsets = [0, 27], sizes = [4, 1024], strides = [1, 1]} : vector<4x1280xf32> to vector<4x1024xf32>
    %c12_62 = arith.constant 12 : index
    %c0_63 = arith.constant 0 : index
    %107 = vector.load %arg12[%c12_62, %c0_63] : memref<108x1024xf32, #tpu.memory_space<vmem>>, vector<4x1024xf32>
    tpu.vector_store %arg12[%c12_62, %c0_63], %106 {strides = array<i32>} : memref<108x1024xf32, #tpu.memory_space<vmem>>, vector<4x1024xf32>,
    %108 = vector.extract_strided_slice %99 {offsets = [0, 28], sizes = [4, 1024], strides = [1, 1]} : vector<4x1280xf32> to vector<4x1024xf32>
    %c16_64 = arith.constant 16 : index
    %c0_65 = arith.constant 0 : index
    %109 = vector.load %arg12[%c16_64, %c0_65] : memref<108x1024xf32, #tpu.memory_space<vmem>>, vector<4x1024xf32>
    tpu.vector_store %arg12[%c16_64, %c0_65], %108 {strides = array<i32>} : memref<108x1024xf32, #tpu.memory_space<vmem>>, vector<4x1024xf32>,
    %110 = vector.extract_strided_slice %99 {offsets = [0, 29], sizes = [4, 1024], strides = [1, 1]} : vector<4x1280xf32> to vector<4x1024xf32>
    %c20_66 = arith.constant 20 : index
    %c0_67 = arith.constant 0 : index
    %111 = vector.load %arg12[%c20_66, %c0_67] : memref<108x1024xf32, #tpu.memory_space<vmem>>, vector<4x1024xf32>
    tpu.vector_store %arg12[%c20_66, %c0_67], %110 {strides = array<i32>} : memref<108x1024xf32, #tpu.memory_space<vmem>>, vector<4x1024xf32>,
    %112 = vector.extract_strided_slice %99 {offsets = [0, 37], sizes = [4, 1024], strides = [1, 1]} : vector<4x1280xf32> to vector<4x1024xf32>
    %c24_68 = arith.constant 24 : index
    %c0_69 = arith.constant 0 : index
    %113 = vector.load %arg12[%c24_68, %c0_69] : memref<108x1024xf32, #tpu.memory_space<vmem>>, vector<4x1024xf32>
    tpu.vector_store %arg12[%c24_68, %c0_69], %112 {strides = array<i32>} : memref<108x1024xf32, #tpu.memory_space<vmem>>, vector<4x1024xf32>,
    %114 = vector.extract_strided_slice %99 {offsets = [0, 38], sizes = [4, 1024], strides = [1, 1]} : vector<4x1280xf32> to vector<4x1024xf32>
    %c28_70 = arith.constant 28 : index
    %c0_71 = arith.constant 0 : index
    %115 = vector.load %arg12[%c28_70, %c0_71] : memref<108x1024xf32, #tpu.memory_space<vmem>>, vector<4x1024xf32>
    tpu.vector_store %arg12[%c28_70, %c0_71], %114 {strides = array<i32>} : memref<108x1024xf32, #tpu.memory_space<vmem>>, vector<4x1024xf32>,
    %116 = vector.extract_strided_slice %99 {offsets = [0, 39], sizes = [4, 1024], strides = [1, 1]} : vector<4x1280xf32> to vector<4x1024xf32>
    %c32_72 = arith.constant 32 : index
    %c0_73 = arith.constant 0 : index
    %117 = vector.load %arg12[%c32_72, %c0_73] : memref<108x1024xf32, #tpu.memory_space<vmem>>, vector<4x1024xf32>
    tpu.vector_store %arg12[%c32_72, %c0_73], %116 {strides = array<i32>} : memref<108x1024xf32, #tpu.memory_space<vmem>>, vector<4x1024xf32>,
    %118 = vector.extract_strided_slice %99 {offsets = [0, 117], sizes = [4, 1024], strides = [1, 1]} : vector<4x1280xf32> to vector<4x1024xf32>
    %c36_74 = arith.constant 36 : index
    %c0_75 = arith.constant 0 : index
    %119 = vector.load %arg12[%c36_74, %c0_75] : memref<108x1024xf32, #tpu.memory_space<vmem>>, vector<4x1024xf32>
    tpu.vector_store %arg12[%c36_74, %c0_75], %118 {strides = array<i32>} : memref<108x1024xf32, #tpu.memory_space<vmem>>, vector<4x1024xf32>,
    %120 = vector.extract_strided_slice %99 {offsets = [0, 118], sizes = [4, 1024], strides = [1, 1]} : vector<4x1280xf32> to vector<4x1024xf32>
    %c40_76 = arith.constant 40 : index
    %c0_77 = arith.constant 0 : index
    %121 = vector.load %arg12[%c40_76, %c0_77] : memref<108x1024xf32, #tpu.memory_space<vmem>>, vector<4x1024xf32>
    tpu.vector_store %arg12[%c40_76, %c0_77], %120 {strides = array<i32>} : memref<108x1024xf32, #tpu.memory_space<vmem>>, vector<4x1024xf32>,
    %122 = vector.extract_strided_slice %99 {offsets = [0, 119], sizes = [4, 1024], strides = [1, 1]} : vector<4x1280xf32> to vector<4x1024xf32>
    %c44_78 = arith.constant 44 : index
    %c0_79 = arith.constant 0 : index
    %123 = vector.load %arg12[%c44_78, %c0_79] : memref<108x1024xf32, #tpu.memory_space<vmem>>, vector<4x1024xf32>
    tpu.vector_store %arg12[%c44_78, %c0_79], %122 {strides = array<i32>} : memref<108x1024xf32, #tpu.memory_space<vmem>>, vector<4x1024xf32>,
    %124 = vector.extract_strided_slice %99 {offsets = [0, 127], sizes = [4, 1024], strides = [1, 1]} : vector<4x1280xf32> to vector<4x1024xf32>
    %c48_80 = arith.constant 48 : index
    %c0_81 = arith.constant 0 : index
    %125 = vector.load %arg12[%c48_80, %c0_81] : memref<108x1024xf32, #tpu.memory_space<vmem>>, vector<4x1024xf32>
    tpu.vector_store %arg12[%c48_80, %c0_81], %124 {strides = array<i32>} : memref<108x1024xf32, #tpu.memory_space<vmem>>, vector<4x1024xf32>,
    %126 = vector.extract_strided_slice %99 {offsets = [0, 128], sizes = [4, 1024], strides = [1, 1]} : vector<4x1280xf32> to vector<4x1024xf32>
    %c52_82 = arith.constant 52 : index
    %c0_83 = arith.constant 0 : index
    %127 = vector.load %arg12[%c52_82, %c0_83] : memref<108x1024xf32, #tpu.memory_space<vmem>>, vector<4x1024xf32>
    tpu.vector_store %arg12[%c52_82, %c0_83], %126 {strides = array<i32>} : memref<108x1024xf32, #tpu.memory_space<vmem>>, vector<4x1024xf32>,
    %128 = vector.extract_strided_slice %99 {offsets = [0, 129], sizes = [4, 1024], strides = [1, 1]} : vector<4x1280xf32> to vector<4x1024xf32>
    %c56_84 = arith.constant 56 : index
    %c0_85 = arith.constant 0 : index
    %129 = vector.load %arg12[%c56_84, %c0_85] : memref<108x1024xf32, #tpu.memory_space<vmem>>, vector<4x1024xf32>
    tpu.vector_store %arg12[%c56_84, %c0_85], %128 {strides = array<i32>} : memref<108x1024xf32, #tpu.memory_space<vmem>>, vector<4x1024xf32>,
    %130 = vector.extract_strided_slice %99 {offsets = [0, 137], sizes = [4, 1024], strides = [1, 1]} : vector<4x1280xf32> to vector<4x1024xf32>
    %c60_86 = arith.constant 60 : index
    %c0_87 = arith.constant 0 : index
    %131 = vector.load %arg12[%c60_86, %c0_87] : memref<108x1024xf32, #tpu.memory_space<vmem>>, vector<4x1024xf32>
    tpu.vector_store %arg12[%c60_86, %c0_87], %130 {strides = array<i32>} : memref<108x1024xf32, #tpu.memory_space<vmem>>, vector<4x1024xf32>,
    %132 = vector.extract_strided_slice %99 {offsets = [0, 138], sizes = [4, 1024], strides = [1, 1]} : vector<4x1280xf32> to vector<4x1024xf32>
    %c64_88 = arith.constant 64 : index
    %c0_89 = arith.constant 0 : index
    %133 = vector.load %arg12[%c64_88, %c0_89] : memref<108x1024xf32, #tpu.memory_space<vmem>>, vector<4x1024xf32>
    tpu.vector_store %arg12[%c64_88, %c0_89], %132 {strides = array<i32>} : memref<108x1024xf32, #tpu.memory_space<vmem>>, vector<4x1024xf32>,
    %134 = vector.extract_strided_slice %99 {offsets = [0, 139], sizes = [4, 1024], strides = [1, 1]} : vector<4x1280xf32> to vector<4x1024xf32>
    %c68_90 = arith.constant 68 : index
    %c0_91 = arith.constant 0 : index
    %135 = vector.load %arg12[%c68_90, %c0_91] : memref<108x1024xf32, #tpu.memory_space<vmem>>, vector<4x1024xf32>
    tpu.vector_store %arg12[%c68_90, %c0_91], %134 {strides = array<i32>} : memref<108x1024xf32, #tpu.memory_space<vmem>>, vector<4x1024xf32>,
    %136 = vector.extract_strided_slice %99 {offsets = [0, 217], sizes = [4, 1024], strides = [1, 1]} : vector<4x1280xf32> to vector<4x1024xf32>
    %c72_92 = arith.constant 72 : index
    %c0_93 = arith.constant 0 : index
    %137 = vector.load %arg12[%c72_92, %c0_93] : memref<108x1024xf32, #tpu.memory_space<vmem>>, vector<4x1024xf32>
    tpu.vector_store %arg12[%c72_92, %c0_93], %136 {strides = array<i32>} : memref<108x1024xf32, #tpu.memory_space<vmem>>, vector<4x1024xf32>,
    %138 = vector.extract_strided_slice %99 {offsets = [0, 218], sizes = [4, 1024], strides = [1, 1]} : vector<4x1280xf32> to vector<4x1024xf32>
    %c76_94 = arith.constant 76 : index
    %c0_95 = arith.constant 0 : index
    %139 = vector.load %arg12[%c76_94, %c0_95] : memref<108x1024xf32, #tpu.memory_space<vmem>>, vector<4x1024xf32>
    tpu.vector_store %arg12[%c76_94, %c0_95], %138 {strides = array<i32>} : memref<108x1024xf32, #tpu.memory_space<vmem>>, vector<4x1024xf32>,
    %140 = vector.extract_strided_slice %99 {offsets = [0, 219], sizes = [4, 1024], strides = [1, 1]} : vector<4x1280xf32> to vector<4x1024xf32>
    %c80_96 = arith.constant 80 : index
    %c0_97 = arith.constant 0 : index
    %141 = vector.load %arg12[%c80_96, %c0_97] : memref<108x1024xf32, #tpu.memory_space<vmem>>, vector<4x1024xf32>
    tpu.vector_store %arg12[%c80_96, %c0_97], %140 {strides = array<i32>} : memref<108x1024xf32, #tpu.memory_space<vmem>>, vector<4x1024xf32>,
    %142 = vector.extract_strided_slice %99 {offsets = [0, 227], sizes = [4, 1024], strides = [1, 1]} : vector<4x1280xf32> to vector<4x1024xf32>
    %c84_98 = arith.constant 84 : index
    %c0_99 = arith.constant 0 : index
    %143 = vector.load %arg12[%c84_98, %c0_99] : memref<108x1024xf32, #tpu.memory_space<vmem>>, vector<4x1024xf32>
    tpu.vector_store %arg12[%c84_98, %c0_99], %142 {strides = array<i32>} : memref<108x1024xf32, #tpu.memory_space<vmem>>, vector<4x1024xf32>,
    %144 = vector.extract_strided_slice %99 {offsets = [0, 228], sizes = [4, 1024], strides = [1, 1]} : vector<4x1280xf32> to vector<4x1024xf32>
    %c88_100 = arith.constant 88 : index
    %c0_101 = arith.constant 0 : index
    %145 = vector.load %arg12[%c88_100, %c0_101] : memref<108x1024xf32, #tpu.memory_space<vmem>>, vector<4x1024xf32>
    tpu.vector_store %arg12[%c88_100, %c0_101], %144 {strides = array<i32>} : memref<108x1024xf32, #tpu.memory_space<vmem>>, vector<4x1024xf32>,
    %146 = vector.extract_strided_slice %99 {offsets = [0, 229], sizes = [4, 1024], strides = [1, 1]} : vector<4x1280xf32> to vector<4x1024xf32>
    %c92_102 = arith.constant 92 : index
    %c0_103 = arith.constant 0 : index
    %147 = vector.load %arg12[%c92_102, %c0_103] : memref<108x1024xf32, #tpu.memory_space<vmem>>, vector<4x1024xf32>
    tpu.vector_store %arg12[%c92_102, %c0_103], %146 {strides = array<i32>} : memref<108x1024xf32, #tpu.memory_space<vmem>>, vector<4x1024xf32>,
    %148 = vector.extract_strided_slice %99 {offsets = [0, 237], sizes = [4, 1024], strides = [1, 1]} : vector<4x1280xf32> to vector<4x1024xf32>
    %c96_104 = arith.constant 96 : index
    %c0_105 = arith.constant 0 : index
    %149 = vector.load %arg12[%c96_104, %c0_105] : memref<108x1024xf32, #tpu.memory_space<vmem>>, vector<4x1024xf32>
    tpu.vector_store %arg12[%c96_104, %c0_105], %148 {strides = array<i32>} : memref<108x1024xf32, #tpu.memory_space<vmem>>, vector<4x1024xf32>,
    %150 = vector.extract_strided_slice %99 {offsets = [0, 238], sizes = [4, 1024], strides = [1, 1]} : vector<4x1280xf32> to vector<4x1024xf32>
    %c100_106 = arith.constant 100 : index
    %c0_107 = arith.constant 0 : index
    %151 = vector.load %arg12[%c100_106, %c0_107] : memref<108x1024xf32, #tpu.memory_space<vmem>>, vector<4x1024xf32>
    tpu.vector_store %arg12[%c100_106, %c0_107], %150 {strides = array<i32>} : memref<108x1024xf32, #tpu.memory_space<vmem>>, vector<4x1024xf32>,
    %152 = vector.extract_strided_slice %99 {offsets = [0, 239], sizes = [4, 1024], strides = [1, 1]} : vector<4x1280xf32> to vector<4x1024xf32>
    %c104_108 = arith.constant 104 : index
    %c0_109 = arith.constant 0 : index
    %153 = vector.load %arg12[%c104_108, %c0_109] : memref<108x1024xf32, #tpu.memory_space<vmem>>, vector<4x1024xf32>
    tpu.vector_store %arg12[%c104_108, %c0_109], %152 {strides = array<i32>} : memref<108x1024xf32, #tpu.memory_space<vmem>>, vector<4x1024xf32>,
    %c0_110 = arith.constant 0 : index
    %c0_111 = arith.constant 0 : index
    %154 = vector.load %arg7[%c0_110, %c0_111] : memref<4x108xbf16, #tpu.memory_space<vmem>>, vector<4x108xbf16>
    %c0_112 = arith.constant 0 : index
    %c0_113 = arith.constant 0 : index
    %155 = vector.load %arg12[%c0_112, %c0_113] : memref<108x1024xf32, #tpu.memory_space<vmem>>, vector<108x1024xf32>
    %156 = arith.truncf %155 : vector<108x1024xf32> to vector<108x1024xbf16>
    %cst_114 = arith.constant dense<0.000000e+00> : vector<4x1024xf32>
    %157 = tpu.matmul %154, %156, %cst_114 {dimension_numbers = #tpu.dot_dimension_numbers<[1], [0], [0], [1], [0, 0, 1, 1], [], []>} : vector<4x108xbf16>, vector<108x1024xbf16>, vector<4x1024xf32> -> vector<4x1024xf32>
    %c0_115 = arith.constant 0 : index
    %c0_116 = arith.constant 0 : index
    %158 = vector.load %arg8[%c0_115, %c0_116] : memref<4x1xf32, #tpu.memory_space<vmem>>, vector<4x1xf32>
    %159 = vector.broadcast %158 : vector<4x1xf32> to vector<4x1024xf32>
    %160 = arith.addf %157, %159 : vector<4x1024xf32>
    %161 = vector.broadcast %2 : vector<1x1024xf32> to vector<4x1024xf32>
    %162 = arith.mulf %160, %161 : vector<4x1024xf32>
    %cst_117 = arith.constant dense<0.000000e+00> : vector<4xf32>
    %163 = vector.multi_reduction <add>, %162, %cst_117 [1] : vector<4x1024xf32> to vector<4xf32>
    %164 = vector.shape_cast %163 : vector<4xf32> to vector<4x1xf32>
    %cst_118 = arith.constant 0.001953125 : f32
    %165 = vector.broadcast %cst_118 : f32 to vector<4x1xf32>
    %166 = arith.mulf %164, %165 : vector<4x1xf32>
    %167 = vector.broadcast %166 : vector<4x1xf32> to vector<4x1024xf32>
    %168 = arith.subf %162, %167 : vector<4x1024xf32>
    %169 = vector.broadcast %2 : vector<1x1024xf32> to vector<4x1024xf32>
    %170 = arith.mulf %168, %169 : vector<4x1024xf32>
    %171 = arith.mulf %170, %170 : vector<4x1024xf32>
    %cst_119 = arith.constant dense<0.000000e+00> : vector<4xf32>
    %172 = vector.multi_reduction <add>, %171, %cst_119 [1] : vector<4x1024xf32> to vector<4xf32>
    %173 = vector.shape_cast %172 : vector<4xf32> to vector<4x1xf32>
    %cst_120 = arith.constant 0.001953125 : f32
    %174 = vector.broadcast %cst_120 : f32 to vector<4x1xf32>
    %175 = arith.mulf %173, %174 : vector<4x1xf32>
    %cst_121 = arith.constant 9.99999974E-6 : f32
    %176 = vector.broadcast %cst_121 : f32 to vector<4x1xf32>
    %177 = arith.addf %175, %176 : vector<4x1xf32>
    %178 = math.rsqrt %177 : vector<4x1xf32>
    %179 = vector.broadcast %178 : vector<4x1xf32> to vector<4x1024xf32>
    %180 = arith.mulf %170, %179 : vector<4x1024xf32>
    %c0_122 = arith.constant 0 : index
    %c0_123 = arith.constant 0 : index
    %181 = vector.load %arg9[%c0_122, %c0_123] : memref<4x1xf32, #tpu.memory_space<vmem>>, vector<4x1xf32>
    %182 = vector.broadcast %181 : vector<4x1xf32> to vector<4x1024xf32>
    %183 = arith.mulf %180, %182 : vector<4x1024xf32>
    %c0_124 = arith.constant 0 : index
    %c0_125 = arith.constant 0 : index
    %184 = vector.load %arg10[%c0_124, %c0_125] : memref<4x1xf32, #tpu.memory_space<vmem>>, vector<4x1xf32>
    %185 = vector.broadcast %184 : vector<4x1xf32> to vector<4x1024xf32>
    %186 = arith.addf %183, %185 : vector<4x1024xf32>
    %187 = vector.extract_strided_slice %1 {offsets = [0, 128], sizes = [4, 1024], strides = [1, 1]} : vector<4x1280xf32> to vector<4x1024xf32>
    %188 = arith.addf %187, %186 : vector<4x1024xf32>
    %c0_126 = arith.constant 0 : index
    %c0_127 = arith.constant 0 : index
    %c0_128 = arith.constant 0 : index
    %189 = vector.load %arg11[%c0_126, %c0_127, %c0_128] : memref<1x4x1024xf32, #tpu.memory_space<vmem>>, vector<1x4x1024xf32>
    %190 = vector.shape_cast %189 : vector<1x4x1024xf32> to vector<4x1024xf32>
    %191 = vector.shape_cast %188 : vector<4x1024xf32> to vector<1x4x1024xf32>
    tpu.vector_store %arg11[%c0_126, %c0_127, %c0_128], %191 {strides = array<i32>} : memref<1x4x1024xf32, #tpu.memory_space<vmem>>, vector<1x4x1024xf32>,
    return
  }
  func.func @transform_0(%arg0: i32) -> (i32, i32, i32) {
    %c0_i32 = arith.constant 0 : i32
    %c0_i32_0 = arith.constant 0 : i32
    %c0_i32_1 = arith.constant 0 : i32
    return %arg0, %c0_i32, %c0_i32_0 : i32, i32, i32
  }
  func.func @transform_1(%arg0: i32) -> (i32, i32) {
    %c0_i32 = arith.constant 0 : i32
    %c0_i32_0 = arith.constant 0 : i32
    %c0_i32_1 = arith.constant 0 : i32
    return %c0_i32, %c0_i32_0 : i32, i32
  }
  func.func @transform_2(%arg0: i32) -> (i32, i32) {
    %c0_i32 = arith.constant 0 : i32
    %c0_i32_0 = arith.constant 0 : i32
    %c0_i32_1 = arith.constant 0 : i32
    return %c0_i32, %c0_i32_0 : i32, i32
  }
  func.func @transform_3(%arg0: i32) -> (i32, i32) {
    %c0_i32 = arith.constant 0 : i32
    %c0_i32_0 = arith.constant 0 : i32
    %c0_i32_1 = arith.constant 0 : i32
    return %c0_i32, %c0_i32_0 : i32, i32
  }
  func.func @transform_4(%arg0: i32) -> (i32, i32) {
    %c0_i32 = arith.constant 0 : i32
    %c0_i32_0 = arith.constant 0 : i32
    %c0_i32_1 = arith.constant 0 : i32
    return %c0_i32, %c0_i32_0 : i32, i32
  }
  func.func @transform_5(%arg0: i32) -> (i32, i32) {
    %c0_i32 = arith.constant 0 : i32
    %c0_i32_0 = arith.constant 0 : i32
    %c0_i32_1 = arith.constant 0 : i32
    return %c0_i32, %c0_i32_0 : i32, i32
  }
  func.func @transform_6(%arg0: i32) -> (i32, i32) {
    %c0_i32 = arith.constant 0 : i32
    %c0_i32_0 = arith.constant 0 : i32
    %c0_i32_1 = arith.constant 0 : i32
    return %c0_i32, %c0_i32_0 : i32, i32
  }
  func.func @transform_7(%arg0: i32) -> (i32, i32) {
    %c0_i32 = arith.constant 0 : i32
    %c0_i32_0 = arith.constant 0 : i32
    %c0_i32_1 = arith.constant 0 : i32
    return %c0_i32, %c0_i32_0 : i32, i32
  }
  func.func @transform_8(%arg0: i32) -> (i32, i32) {
    %c0_i32 = arith.constant 0 : i32
    %c0_i32_0 = arith.constant 0 : i32
    %c0_i32_1 = arith.constant 0 : i32
    return %c0_i32, %c0_i32_0 : i32, i32
  }
  func.func @transform_9(%arg0: i32) -> (i32, i32) {
    %c0_i32 = arith.constant 0 : i32
    %c0_i32_0 = arith.constant 0 : i32
    %c0_i32_1 = arith.constant 0 : i32
    return %c0_i32, %c0_i32_0 : i32, i32
  }
  func.func @transform_10(%arg0: i32) -> (i32, i32, i32) {
    %c0_i32 = arith.constant 0 : i32
    %c0_i32_0 = arith.constant 0 : i32
    %c0_i32_1 = arith.constant 0 : i32
    return %arg0, %c0_i32, %c0_i32_0 : i32, i32, i32
  }
}

</mosaic_0001>

<bundles_post_ra>
// kernel: resconv_block_forward.1
= control target key start
LH: loop header
LB: loop body
LE: loop exit
PB: predicated region body
PF: predicated region fallthrough
CT: control target
= control target key end

     0   :  { %s3939_s13 = smov 0   ;;  %s6359_s0 = inlined_call_operand.vmem [shape: f32[2,4,1280], index: 0, kind: input, shape index: {}]   ;;  %s6360_s1 = inlined_call_operand.vmem [shape: f32[1,1024], index: 1, kind: input, shape index: {}]   ;;  %s6361_s2 = inlined_call_operand.vmem [shape: bf16[4,108], index: 2, kind: input, shape index: {}]   ;;  %s6362_s3 = inlined_call_operand.vmem [shape: f32[4,1], index: 3, kind: input, shape index: {}]   ;;  %s6363_s4 = inlined_call_operand.vmem [shape: f32[4,1], index: 4, kind: input, shape index: {}]   ;;  %s6364_s5 = inlined_call_operand.vmem [shape: f32[4,1], index: 5, kind: input, shape index: {}]   ;;  %s6365_s6 = inlined_call_operand.vmem [shape: bf16[4,108], index: 6, kind: input, shape index: {}]   ;;  %s6366_s7 = inlined_call_operand.vmem [shape: f32[4,1], index: 7, kind: input, shape index: {}]   ;;  %s6367_s8 = inlined_call_operand.vmem [shape: f32[4,1], index: 8, kind: input, shape index: {}]   ;;  %s6368_s9 = inlined_call_operand.vmem [shape: f32[4,1], index: 9, kind: input, shape index: {}]   ;;  %s6369_s10 = inlined_call_operand.vmem [shape: f32[2,4,1024], index: 10, kind: output, shape index: {}]  }
   0x1   :  { %6474 = sst [smem:[#allocation27_spill]] %s6359_s0 }
   0x2   :  { %6475 = sst [smem:[#allocation28_spill]] %s6360_s1 }
   0x3   :  { %6476 = sst [smem:[#allocation29_spill]] %s6361_s2 }
   0x4   :  { %6477 = sst [smem:[#allocation30_spill]] %s6362_s3 }
   0x5   :  { %6478 = sst [smem:[#allocation31_spill]] %s6363_s4 }
   0x6   :  { %6479 = sst [smem:[#allocation32_spill]] %s6364_s5 }
   0x7   :  { %6480 = sst [smem:[#allocation33_spill]] %s6369_s10 }
   0x8 LB: > { %6481 = sst [smem:[#allocation4_spill]] %s3854_s13  ;;  %s3754_s14 = sadd.s32 4294967295, %s3854_s13   ;;  %s3854_s13 = sphi %s3939_s13, %s20_s13  }
   0x9   : > { %p3758_p0 = scmp.ge.s32.totalorder %s3854_s13, 1  ;;  %p312_p1 = scmp.lt.s32.totalorder %s3854_s13, 3 }
   0xb   : > { %p313_p2 = pnand %p3758_p0, %p312_p1 }
   0xd   : > { %316 = sbr.rel (%p313_p2) target bundleno = 2290 (0x8f2), region = 60 }
  0x12   : > { %p350_p3 = scmp.lt.s32.totalorder %s3754_s14, 1  ;;  %s6483_s0 = sld [smem:[#allocation27_spill]]  ;;  %vm6421_vm0 = vcmask 154624   ;;  %vm6420_vm1 = vcmask 146432   ;;  %vm6422_vm2 = vcmask 138240   ;;  %vm1229_vm3 = vcmask 302080  }
  0x13   : > { %s6413_s19 = smov 19   ;;  %s6397_s20 = smov 18   ;;  %vm1272_vm4 = vcmask 236544   ;;  %vm6423_vm5 = vcmask 1045504   ;;  %vm6432_vm6 = vcmask 228352   ;;  %vm1358_vm7 = vcmask 220160  }
  0x14   : > { %s6759_s14 = smov (!%p350_p3, %s3754_s14), 1  ;;  %s6395_s21 = smov 17   ;;  %vm6394_vm8 = vcmask 965632   ;;  %vm6390_vm9 = vcmask 957440   ;;  %vm6389_vm10 = vcmask 318464   ;;  %vm6388_vm11 = vcmask 310272  }
  0x15   : > { %6482 = sst [smem:[#allocation5_spill]] %s6759_s14  ;;  %s3781_s15 = smul.u32 40, %s6759_s14  ;;  %vm6393_vm12 = vcmask 7168   ;;  %vm6392_vm13 = vcmask 1039360   ;;  %vm6391_vm14 = vcmask 973824   ;;  %vm6402_vm15 = vcmask 728064  }
  0x16   : > { %s6405_s22 = smov 37   ;;  %s6415_s23 = smov 29  }
  0x17   : > { %s6403_s24 = smov 28   ;;  %s6407_s25 = smov 27  }
  0x18   : > { %s3953_s18 = scalar_lea.vmem %s6483_s0, %s3781_s15  ;;  %s6409_s26 = smov 118  }
  0x19   : > { %v3956_v0 = vld [vmem:[%s3953_s18 + $0x8] sm:$0xff]  ;;  %v3959_v1 = vld [vmem:[%s3953_s18 + $0x18] sm:$0xff]  ;;  %v3962_v2 = vld [vmem:[%s3953_s18] sm:$0xff]  ;;  %s6411_s27 = smov 117   ;;  %s6378_s28 = smov 39  }
  0x1a   : > { %6484 = vst [vmem:[#allocation6_spill] sm:$0xff] %v3956_v0  ;;  %6485 = vst [vmem:[#allocation7_spill] sm:$0xff] %v3959_v1  ;;  %1385 = vrot.lane.b32.xlu0 %v3956_v0, %s6413_s19  ;;  %1426 = vrot.lane.b32.xlu1 %v3962_v2, %s6397_s20  ;;  %v3973_v3 = vcombine.high %v3962_v2, %v3962_v2  ;;  %v3977_v4 = vcombine.low %v3956_v0, %v3956_v0  ;;  %v3980_v5 = vld [vmem:[%s3953_s18 + $0x10] sm:$0xff]  ;;  %s6370_s29 = smov 38   ;;  %s6376_s30 = smov 1   ;;  %v4228_v62 = vld [vmem:[%s3953_s18 + $0x20] sm:$0xff] }
  0x1b   : > { %6486 = vst [vmem:[#allocation8_spill] sm:$0xff] %v3962_v2  ;;  %946 = vst [vmem:[#allocation2 + $0x178] sm:$0xf0] %v3956_v0  ;;  %v3985_v6 = vcombine.low %v3980_v5, %v3980_v5  ;;  %v3995_v7 = vcombine.high %v3956_v0, %v3956_v0  ;;  %v4027_v8 = vcombine.high %v3980_v5, %v3980_v5  ;;  %s6374_s11 = smov 127   ;;  %s6372_s12 = smov 119  }
  0x1c   : > { %950 = vst [vmem:[#allocation2 + $0x2f8] sm:$0xf0] %v3959_v1  ;;  %944 = vst [vmem:[#allocation2 + $0x2b8] sm:$0xf0] %v3962_v2  ;;  %s6386_s15 = smov 89   ;;  %s6384_s16 = smov 11   ;;  %v4149_v27 = vcombine.low %v3959_v1, %v3959_v1  ;;  %v4206_v50 = vcombine.low %v3962_v2, %v3962_v2 }
  0x1d   : > { %6487 = vst [vmem:[#allocation9_spill] sm:$0xff] %v3980_v5  ;;  %948 = vst [vmem:[#allocation2 + $0x2e8] sm:$0xf0] %v3980_v5  ;;  %s6382_s17 = smov 10   ;;  %s6495_s2 = sld [smem:[#allocation29_spill]] }
  0x1e   : > { %945 = vst [vmem:[#allocation2 + $0x228] sm:$0xf0] %v3977_v4  ;;  %947 = vst [vmem:[#allocation2 + $0x200] sm:$0xf0] %v3985_v6  ;;  %1430 = vrot.lane.b32.xlu1 %v3956_v0, %s6397_s20  ;;  %1383 = vrot.lane.b32.xlu0 %v3973_v3, %s6413_s19  ;;  %s6517_s3 = sld [smem:[#allocation30_spill]]  ;;  %s6566_s0 = smov 28  }
  0x1f   : > { %949 = vst [vmem:[#allocation2 + $0x208] sm:$0xf0] %v4149_v27  ;;  %s6520_s5 = sld [smem:[#allocation32_spill]]  ;;  %s6572_s13 = smov 111  }
  0x20   : > { %s6549_s1 = sld [smem:[#allocation28_spill]]  ;;  %s6573_s10 = smov 110  }
  0x21   : > { %s6558_s4 = sld [smem:[#allocation31_spill]]  ;;  %s6574_s14 = smov 109  }
  0x22   : > { %1387 = vrot.lane.b32.xlu1 %v3995_v7, %s6413_s19  ;;  %1428 = vrot.lane.b32.xlu0 %v3977_v4, %s6397_s20 }
  0x26   : > { %1471 = vrot.lane.b32.xlu1 %v3956_v0, %s6395_s21  ;;  %1469 = vrot.lane.b32.xlu0 %v3973_v3, %s6395_s21 }
  0x2a   : > { %1213 = vrot.lane.b32.xlu1 %v3956_v0, %s6405_s22  ;;  %1473 = vrot.lane.b32.xlu0 %v3995_v7, %s6395_s21 }
  0x2e   : > { %1256 = vrot.lane.b32.xlu1 %v3977_v4, %s6415_s23  ;;  %1215 = vrot.lane.b32.xlu0 %v3995_v7, %s6405_s22 }
  0x32   : > { %1299 = vrot.lane.b32.xlu1 %v3956_v0, %s6403_s24  ;;  %1258 = vrot.lane.b32.xlu0 %v3956_v0, %s6415_s23 }
  0x36   : > { %1342 = vrot.lane.b32.xlu1 %v3977_v4, %s6407_s25  ;;  %1301 = vrot.lane.b32.xlu0 %v3995_v7, %s6403_s24 }
  0x3a   : > { %1389 = vrot.lane.b32.xlu1 %v3980_v5, %s6413_s19  ;;  %1344 = vrot.lane.b32.xlu0 %v3956_v0, %s6407_s25 }
  0x3e   : > { %1432 = vrot.lane.b32.xlu1 %v3985_v6, %s6397_s20  ;;  %1391 = vrot.lane.b32.xlu0 %v4027_v8, %s6413_s19 }
  0x42   : > { %1475 = vrot.lane.b32.xlu1 %v3980_v5, %s6395_s21  ;;  %1434 = vrot.lane.b32.xlu0 %v3980_v5, %s6397_s20 }
  0x46   : > { %1211 = vrot.lane.b32.xlu1 %v3973_v3, %s6405_s22  ;;  %1477 = vrot.lane.b32.xlu0 %v4027_v8, %s6395_s21 }
  0x4a   : > { %1297 = vrot.lane.b32.xlu1 %v3973_v3, %s6403_s24  ;;  %1254 = vrot.lane.b32.xlu0 %v3962_v2, %s6415_s23 }
  0x4e   : > { %1041 = vrot.lane.b32.xlu1 %v3956_v0, %s6409_s26  ;;  %1340 = vrot.lane.b32.xlu0 %v3962_v2, %s6407_s25 }
  0x52   : > { %1084 = vrot.lane.b32.xlu1 %v3977_v4, %s6411_s27  ;;  %1043 = vrot.lane.b32.xlu0 %v3995_v7, %s6409_s26 }
  0x56   : > { %1127 = vrot.lane.b32.xlu1 %v3956_v0, %s6378_s28  ;;  %1086 = vrot.lane.b32.xlu0 %v3956_v0, %s6411_s27 }
  0x5a   : > { %1170 = vrot.lane.b32.xlu1 %v3977_v4, %s6370_s29  ;;  %1129 = vrot.lane.b32.xlu0 %v3995_v7, %s6378_s28 }
  0x5e   : > { %1217 = vrot.lane.b32.xlu1 %v3980_v5, %s6405_s22  ;;  %1172 = vrot.lane.b32.xlu0 %v3956_v0, %s6370_s29 }
  0x62   : > { %1260 = vrot.lane.b32.xlu1 %v3985_v6, %s6415_s23  ;;  %1219 = vrot.lane.b32.xlu0 %v4027_v8, %s6405_s22 }
  0x66   : > { %1303 = vrot.lane.b32.xlu1 %v3980_v5, %s6403_s24  ;;  %1262 = vrot.lane.b32.xlu0 %v3980_v5, %s6415_s23 }
  0x6a   : > { %1346 = vrot.lane.b32.xlu1 %v3985_v6, %s6407_s25  ;;  %1305 = vrot.lane.b32.xlu0 %v4027_v8, %s6403_s24 }
  0x6e   : > { %1039 = vrot.lane.b32.xlu1 %v3973_v3, %s6409_s26  ;;  %1348 = vrot.lane.b32.xlu0 %v3980_v5, %s6407_s25 }
  0x72   : > { %1125 = vrot.lane.b32.xlu1 %v3973_v3, %s6378_s28  ;;  %1082 = vrot.lane.b32.xlu0 %v3962_v2, %s6411_s27 }
  0x76   : > { %899 = vrot.lane.b32.xlu1 %v3973_v3, %s6376_s30  ;;  %1168 = vrot.lane.b32.xlu0 %v3962_v2, %s6370_s29 }
  0x7a   : > { %955 = vrot.lane.b32.xlu1 %v3956_v0, %s6374_s11  ;;  %901 = vrot.lane.b32.xlu0 %v3956_v0, %s6376_s30 }
  0x7e   : > { %998 = vrot.lane.b32.xlu1 %v3977_v4, %s6372_s12  ;;  %957 = vrot.lane.b32.xlu0 %v3995_v7, %s6374_s11 }
  0x82   : > { %1045 = vrot.lane.b32.xlu1 %v3980_v5, %s6409_s26  ;;  %1000 = vrot.lane.b32.xlu0 %v3956_v0, %s6372_s12 }
  0x86   : > { %1088 = vrot.lane.b32.xlu1 %v3985_v6, %s6411_s27  ;;  %1047 = vrot.lane.b32.xlu0 %v4027_v8, %s6409_s26 }
  0x8a   : > { %1131 = vrot.lane.b32.xlu1 %v3980_v5, %s6378_s28  ;;  %1090 = vrot.lane.b32.xlu0 %v3980_v5, %s6411_s27 }
  0x8c   : > { %v1386_v9 = vpop.permute.xlu0 %1385  ;;  %v1427_v10 = vpop.permute.xlu1 %1426 }
  0x8e   : > { %1174 = vrot.lane.b32.xlu1 %v3985_v6, %s6370_s29  ;;  %1133 = vrot.lane.b32.xlu0 %v4027_v8, %s6378_s28  ;;  %s6435_s28 = smov 90  }
  0x90   : > { %v4113_v11 = vpop.permute.xlu1 %1430  ;;  %v1384_v12 = vpop.permute.xlu0 %1383 }
  0x91   : > { %v1402_v13 = vsel %vm6421_vm0, %v1384_v12, %v1386_v9 }
  0x92   : > { %1418 = vst [vmem:[#allocation2 + $0x240] sm:$0xf] %v1402_v13  ;;  %897 = vrot.lane.b32.xlu1 %v3962_v2, %s6376_s30  ;;  %1176 = vrot.lane.b32.xlu0 %v3980_v5, %s6370_s29  ;;  %s6380_s29 = smov 9  }
  0x94   : > { %v4120_v14 = vpop.permute.xlu1 %1387  ;;  %v1429_v15 = vpop.permute.xlu0 %1428 }
  0x95   : > { %v1403_v16 = vsel %vm6421_vm0, %v1386_v9, %v4120_v14  ;;  %v1445_v17 = vsel %vm6420_vm1, %v1427_v10, %v1429_v15  ;;  %v1446_v18 = vsel %vm6420_vm1, %v1429_v15, %v4113_v11  ;;  %v4232_v10 = vcombine.low %v4228_v62, %v4228_v62 }
  0x96   : > { %1419 = vst [vmem:[#allocation2 + $0x258] sm:$0xf] %v1403_v16  ;;  %1461 = vst [vmem:[#allocation2 + $0x240] sm:$0xf0] %v1445_v17  ;;  %996 = vrot.lane.b32.xlu1 %v3962_v2, %s6372_s12  ;;  %953 = vrot.lane.b32.xlu0 %v3973_v3, %s6374_s11 }
  0x97   : > { %1462 = vst [vmem:[#allocation2 + $0x258] sm:$0xf0] %v1446_v18  ;;  %951 = vst [vmem:[#allocation2 + $0x268] sm:$0xf0] %v4232_v10 }
  0x98   : > { %v1472_v19 = vpop.permute.xlu1 %1471  ;;  %v1470_v20 = vpop.permute.xlu0 %1469 }
  0x99   : > { %v1488_v21 = vsel %vm6422_vm2, %v1470_v20, %v1472_v19 }
  0x9a   : > { %1504 = vst [vmem:[#allocation2 + $0x190] sm:$0xf] %v1488_v21  ;;  %729 = vrot.lane.b32.xlu1 %v3956_v0, %s6386_s15  ;;  %727 = vrot.lane.b32.xlu0 %v3973_v3, %s6386_s15 }
  0x9c   : > { %v4136_v22 = vpop.permute.xlu1 %1213  ;;  %v1474_v23 = vpop.permute.xlu0 %1473 }
  0x9d   : > { %v1489_v24 = vsel %vm6422_vm2, %v1472_v19, %v1474_v23  ;;  %v1609_v30 = vld [vmem:[#allocation2 + $0x240] sm:$0xff] }
  0x9e   : > { %1505 = vst [vmem:[#allocation2 + $0x220] sm:$0xf] %v1489_v24  ;;  %772 = vrot.lane.b32.xlu1 %v3977_v4, %s6384_s16  ;;  %770 = vrot.lane.b32.xlu0 %v3962_v2, %s6384_s16  ;;  %v1610_v35 = vld [vmem:[#allocation2 + $0x258] sm:$0xff] }
  0xa0   : > { %v4143_v25 = vpop.permute.xlu1 %1256  ;;  %v4145_v26 = vpop.permute.xlu0 %1215 }
  0xa1   : > { %v1231_v28 = vsel %vm1229_vm3, %v4136_v22, %v4145_v26  ;;  %v1617_v29 = vld [vmem:[#allocation2 + $0x190] sm:$0xf] }
  0xa2   : > { %1247 = vst [vmem:[#allocation2 + $0x20] sm:$0xf] %v1231_v28  ;;  %815 = vrot.lane.b32.xlu1 %v3956_v0, %s6382_s17  ;;  %813 = vrot.lane.b32.xlu0 %v3973_v3, %s6382_s17  ;;  %v1673_v33 = vpack.c.bf16 %v1617_v29, %v1609_v30 }
  0xa4   : > { %v4159_v31 = vpop.permute.xlu1 %1299  ;;  %v4161_v32 = vpop.permute.xlu0 %1258  ;;  %v1693_v40 = vsel %vm6423_vm5, %v1673_v33, 0 }
  0xa5   : > { %v1274_v34 = vsel %vm1272_vm4, %v4143_v25, %v4161_v32  ;;  %v1618_v36 = vld [vmem:[#allocation2 + $0x220] sm:$0xf] }
  0xa6   : > { %1290 = vst [vmem:[#allocation2 + $0x20] sm:$0xf0] %v1274_v34  ;;  %858 = vrot.lane.b32.xlu1 %v3977_v4, %s6380_s29  ;;  %856 = vrot.lane.b32.xlu0 %v3962_v2, %s6380_s29  ;;  %v1674_v37 = vpack.c.bf16 %v1618_v36, %v1610_v35 }
  0xa8   : > { %v4170_v38 = vpop.permute.xlu1 %1342  ;;  %3762 = vmatprep.subr.msk.bf16.mxu0 %vm6423_vm5, %v1674_v37  ;;  %v4173_v39 = vpop.permute.xlu0 %1301 }
  0xa9   : > { %v1317_v41 = vsel %vm6432_vm6, %v4159_v31, %v4173_v39  ;;  %1719 = vmatpush1.bf16.msra.mxu0 %v1693_v40 }
  0xaa   : > { %1333 = vst [vmem:[#allocation2 + $0x168] sm:$0xf] %v1317_v41  ;;  %905 = vrot.lane.b32.xlu1 %v3980_v5, %s6376_s30  ;;  %903 = vrot.lane.b32.xlu0 %v3995_v7, %s6376_s30  ;;  %s6430_s30 = smov 91  }
  0xac   : > { %v1390_v42 = vpop.permute.xlu1 %1389  ;;  %v4183_v43 = vpop.permute.xlu0 %1344 }
  0xad   : > { %v1404_v44 = vsel %vm6421_vm0, %v4120_v14, %v1390_v42  ;;  %v1360_v45 = vsel %vm1358_vm7, %v4170_v38, %v4183_v43  ;;  %v1594_v55 = vld [vmem:[#allocation2 + $0x20] sm:$0xff] }
  0xae   : > { %1420 = vst [vmem:[#allocation2 + $0x1b8] sm:$0xf] %v1404_v44  ;;  %1376 = vst [vmem:[#allocation2 + $0x168] sm:$0xf0] %v1360_v45  ;;  %961 = vrot.lane.b32.xlu1 %v4027_v8, %s6374_s11  ;;  %959 = vrot.lane.b32.xlu0 %v3980_v5, %s6374_s11  ;;  %s6437_s11 = smov 99  }
  0xb0   : > { %v1433_v46 = vpop.permute.xlu1 %1432  ;;  %v4194_v47 = vpop.permute.xlu0 %1391 }
  0xb1   : > { %v1447_v48 = vsel %vm6420_vm1, %v4113_v11, %v1433_v46  ;;  %v1405_v49 = vsel %vm6421_vm0, %v1390_v42, %v4194_v47 }
  0xb2   : > { %1463 = vst [vmem:[#allocation2 + $0x1b8] sm:$0xf0] %v1447_v48  ;;  %1421 = vst [vmem:[#allocation2 + $0x118] sm:$0xf] %v1405_v49  ;;  %1004 = vrot.lane.b32.xlu1 %v3980_v5, %s6372_s12  ;;  %1002 = vrot.lane.b32.xlu0 %v3985_v6, %s6372_s12  ;;  %s6433_s12 = smov 100  }
  0xb4   : > { %v1476_v51 = vpop.permute.xlu1 %1475  ;;  %v4208_v52 = vpop.permute.xlu0 %1434 }
  0xb5   : > { %v1490_v53 = vsel %vm6422_vm2, %v1474_v23, %v1476_v51  ;;  %v1448_v54 = vsel %vm6420_vm1, %v1433_v46, %v4208_v52  ;;  %v1602_v56 = vld [vmem:[#allocation2 + $0x168] sm:$0xff] }
  0xb6   : > { %1506 = vst [vmem:[#allocation2 + $0x8] sm:$0xf] %v1490_v53  ;;  %1464 = vst [vmem:[#allocation2 + $0x118] sm:$0xf0] %v1448_v54  ;;  %768 = vrot.lane.b32.xlu1 %v4206_v50, %s6384_s16  ;;  %725 = vrot.lane.b32.xlu0 %v3962_v2, %s6386_s15  ;;  %v1666_v57 = vpack.c.bf16 %v1602_v56, %v1594_v55 }
  0xb8   : > { %v1212_v58 = vpop.permute.xlu1 %1211  ;;  %1720 = vmatprep.subr.bf16.mxu0 %v1666_v57  ;;  %v4217_v59 = vpop.permute.xlu0 %1477 }
  0xb9   : > { %v1230_v60 = vsel %vm1229_vm3, %v1212_v58, %v4136_v22  ;;  %v1491_v61 = vsel %vm6422_vm2, %v1476_v51, %v4217_v59  ;;  %v1611_v14 = vld [vmem:[#allocation2 + $0x1b8] sm:$0xff] }
  0xba   : > { %1246 = vst [vmem:[#allocation2 + $0x140] sm:$0xf] %v1230_v60  ;;  %1507 = vst [vmem:[#allocation2 + $0x18] sm:$0xf] %v1491_v61  ;;  %854 = vrot.lane.b32.xlu1 %v4206_v50, %s6380_s29  ;;  %811 = vrot.lane.b32.xlu0 %v3962_v2, %s6382_s17 }
  0xbc   : > { %v1298_v63 = vpop.permute.xlu1 %1297  ;;  %v1255_v9 = vpop.permute.xlu0 %1254 }
  0xbd   : > { %v1316_v11 = vsel %vm6432_vm6, %v1298_v63, %v4159_v31  ;;  %v1273_v12 = vsel %vm1272_vm4, %v1255_v9, %v4143_v25  ;;  %v1619_v13 = vld [vmem:[#allocation2 + $0x8] sm:$0xf]  ;;  %v1612_v19 = vld [vmem:[#allocation2 + $0x118] sm:$0xff] }
  0xbe   : > { %1332 = vst [vmem:[#allocation2 + $0x348] sm:$0xf] %v1316_v11  ;;  %1289 = vst [vmem:[#allocation2 + $0x140] sm:$0xf0] %v1273_v12  ;;  %557 = vrot.lane.b32.xlu1 %v3956_v0, %s6433_s12  ;;  %555 = vrot.lane.b32.xlu0 %v3973_v3, %s6433_s12  ;;  %v1675_v17 = vpack.c.bf16 %v1619_v13, %v1611_v14 }
  0xc0   : > { %v4243_v15 = vpop.permute.xlu1 %1041  ;;  %v1341_v16 = vpop.permute.xlu0 %1340  ;;  %v1699_v24 = vsel %vm6423_vm5, %v1675_v17, 0 }
  0xc1   : > { %v1359_v18 = vsel %vm1358_vm7, %v1341_v16, %v4170_v38  ;;  %v1620_v20 = vld [vmem:[#allocation2 + $0x18] sm:$0xf] }
  0xc2   : > { %1375 = vst [vmem:[#allocation2 + $0x348] sm:$0xf0] %v1359_v18  ;;  %600 = vrot.lane.b32.xlu1 %v3977_v4, %s6437_s11  ;;  %598 = vrot.lane.b32.xlu0 %v3962_v2, %s6437_s11  ;;  %v1676_v21 = vpack.c.bf16 %v1620_v20, %v1612_v19 }
  0xc4   : > { %v4251_v22 = vpop.permute.xlu1 %1084  ;;  %3764 = vmatprep.subr.msk.bf16.mxu1 %vm6423_vm5, %v1676_v21  ;;  %v4254_v23 = vpop.permute.xlu0 %1043 }
  0xc5   : > { %v1059_v25 = vsel %vm6394_vm8, %v4243_v15, %v4254_v23  ;;  %1760 = vmatpush1.bf16.msra.mxu1 %v1699_v24  ;;  %v1593_v31 = vld [vmem:[#allocation2 + $0x140] sm:$0xff] }
  0xc6   : > { %1075 = vst [vmem:[#allocation2 + $0x370] sm:$0xf] %v1059_v25  ;;  %643 = vrot.lane.b32.xlu1 %v3956_v0, %s6430_s30  ;;  %641 = vrot.lane.b32.xlu0 %v3973_v3, %s6430_s30 }
  0xc8   : > { %v4264_v28 = vpop.permute.xlu1 %1127  ;;  %v4266_v29 = vpop.permute.xlu0 %1086 }
  0xc9   : > { %v1102_v30 = vsel %vm6390_vm9, %v4251_v22, %v4266_v29  ;;  %v1601_v33 = vld [vmem:[#allocation2 + $0x348] sm:$0xff] }
  0xca   : > { %1118 = vst [vmem:[#allocation2 + $0x370] sm:$0xf0] %v1102_v30  ;;  %686 = vrot.lane.b32.xlu1 %v3977_v4, %s6435_s28  ;;  %684 = vrot.lane.b32.xlu0 %v3962_v2, %s6435_s28  ;;  %v1665_v34 = vpack.c.bf16 %v1601_v33, %v1593_v31 }
  0xcc   : > { %v4275_v35 = vpop.permute.xlu1 %1170  ;;  %1721 = vmatpush1.bf16.msra.mxu0 %v1665_v34  ;;  %v4277_v36 = vpop.permute.xlu0 %1129 }
  0xcd   : > { %v1145_v37 = vsel %vm6389_vm10, %v4264_v28, %v4277_v36 }
  0xce   : > { %1161 = vst [vmem:[#allocation2 + $0x210] sm:$0xf] %v1145_v37  ;;  %733 = vrot.lane.b32.xlu1 %v3980_v5, %s6386_s15  ;;  %731 = vrot.lane.b32.xlu0 %v3995_v7, %s6386_s15  ;;  %s6418_s15 = smov 101  }
  0xd0   : > { %v1218_v38 = vpop.permute.xlu1 %1217  ;;  %v4286_v40 = vpop.permute.xlu0 %1172 }
  0xd1   : > { %v1232_v41 = vsel %vm1229_vm3, %v4145_v26, %v1218_v38  ;;  %v1188_v42 = vsel %vm6388_vm11, %v4275_v35, %v4286_v40  ;;  %v1578_v53 = vld [vmem:[#allocation2 + $0x370] sm:$0xff] }
  0xd2   : > { %1248 = vst [vmem:[#allocation2 + $0x68] sm:$0xf] %v1232_v41  ;;  %1204 = vst [vmem:[#allocation2 + $0x210] sm:$0xf0] %v1188_v42  ;;  %776 = vrot.lane.b32.xlu1 %v3985_v6, %s6384_s16  ;;  %774 = vrot.lane.b32.xlu0 %v3956_v0, %s6384_s16  ;;  %s6424_s16 = smov 109  }
  0xd4   : > { %v1261_v44 = vpop.permute.xlu1 %1260  ;;  %v4297_v45 = vpop.permute.xlu0 %1219 }
  0xd5   : > { %v1275_v46 = vsel %vm1272_vm4, %v4161_v32, %v1261_v44  ;;  %v1233_v26 = vsel %vm1229_vm3, %v1218_v38, %v4297_v45 }
  0xd6   : > { %1291 = vst [vmem:[#allocation2 + $0x68] sm:$0xf0] %v1275_v46  ;;  %1249 = vst [vmem:[#allocation2 + $0x78] sm:$0xf] %v1233_v26  ;;  %819 = vrot.lane.b32.xlu1 %v3980_v5, %s6382_s17  ;;  %817 = vrot.lane.b32.xlu0 %v3995_v7, %s6382_s17  ;;  %s6426_s17 = smov 110  }
  0xd8   : > { %v1304_v48 = vpop.permute.xlu1 %1303  ;;  %v4307_v49 = vpop.permute.xlu0 %1262 }
  0xd9   : > { %v1318_v51 = vsel %vm6432_vm6, %v4173_v39, %v1304_v48  ;;  %v1276_v32 = vsel %vm1272_vm4, %v1261_v44, %v4307_v49  ;;  %v1586_v54 = vld [vmem:[#allocation2 + $0x210] sm:$0xff] }
  0xda   : > { %1334 = vst [vmem:[#allocation2 + $0x288] sm:$0xf] %v1318_v51  ;;  %1292 = vst [vmem:[#allocation2 + $0x78] sm:$0xf0] %v1276_v32  ;;  %862 = vrot.lane.b32.xlu1 %v3985_v6, %s6380_s29  ;;  %860 = vrot.lane.b32.xlu0 %v3956_v0, %s6380_s29  ;;  %v1658_v55 = vpack.c.bf16 %v1586_v54, %v1578_v53  ;;  %s6428_s29 = smov 111  }
  0xdc   : > { %v1347_v56 = vpop.permute.xlu1 %1346  ;;  %1722 = vmatprep.subr.bf16.mxu0 %v1658_v55  ;;  %v4317_v57 = vpop.permute.xlu0 %1305 }
  0xdd   : > { %v1361_v39 = vsel %vm1358_vm7, %v4183_v43, %v1347_v56  ;;  %v1319_v58 = vsel %vm6432_vm6, %v1304_v48, %v4317_v57  ;;  %v1595_v21 = vld [vmem:[#allocation2 + $0x68] sm:$0xff] }
  0xde   : > { %1377 = vst [vmem:[#allocation2 + $0x288] sm:$0xf0] %v1361_v39  ;;  %1335 = vst [vmem:[#allocation2 + $0x1d0] sm:$0xf] %v1319_v58  ;;  %596 = vrot.lane.b32.xlu1 %v4206_v50, %s6437_s11  ;;  %553 = vrot.lane.b32.xlu0 %v3962_v2, %s6433_s12 }
  0xe0   : > { %v1040_v60 = vpop.permute.xlu1 %1039  ;;  %v4327_v61 = vpop.permute.xlu0 %1348 }
  0xe1   : > { %v1058_v63 = vsel %vm6394_vm8, %v1040_v60, %v4243_v15  ;;  %v1362_v43 = vsel %vm1358_vm7, %v1347_v56, %v4327_v61  ;;  %v1596_v18 = vld [vmem:[#allocation2 + $0x78] sm:$0xff] }
  0xe2   : > { %1074 = vst [vmem:[#allocation2 + $0x218] sm:$0xf] %v1058_v63  ;;  %1378 = vst [vmem:[#allocation2 + $0x1d0] sm:$0xf0] %v1362_v43  ;;  %682 = vrot.lane.b32.xlu1 %v4206_v50, %s6435_s28  ;;  %639 = vrot.lane.b32.xlu0 %v3962_v2, %s6430_s30 }
  0xe4   : > { %v1126_v9 = vpop.permute.xlu1 %1125  ;;  %v1083_v11 = vpop.permute.xlu0 %1082 }
  0xe5   : > { %v1144_v12 = vsel %vm6389_vm10, %v1126_v9, %v4264_v28  ;;  %v1101_v13 = vsel %vm6390_vm9, %v1083_v11, %v4251_v22  ;;  %v1603_v16 = vld [vmem:[#allocation2 + $0x288] sm:$0xff] }
  0xe6   : > { %1160 = vst [vmem:[#allocation2 + $0x30] sm:$0xf] %v1144_v12  ;;  %1117 = vst [vmem:[#allocation2 + $0x218] sm:$0xf0] %v1101_v13  ;;  %380 = vrot.lane.b32.xlu1 %v3956_v0, %s6428_s29  ;;  %378 = vrot.lane.b32.xlu0 %v3973_v3, %s6428_s29  ;;  %v1667_v22 = vpack.c.bf16 %v1603_v16, %v1595_v21 }
  0xe8   : > { %v4345_v14 = vpop.permute.xlu1 %899  ;;  %v1169_v15 = vpop.permute.xlu0 %1168 }
  0xe9   : > { %v1187_v17 = vsel %vm6388_vm11, %v1169_v15, %v4275_v35  ;;  %v1604_v19 = vld [vmem:[#allocation2 + $0x1d0] sm:$0xff] }
  0xea   : > { %1203 = vst [vmem:[#allocation2 + $0x30] sm:$0xf0] %v1187_v17  ;;  %428 = vrot.lane.b32.xlu1 %v3977_v4, %s6426_s17  ;;  %426 = vrot.lane.b32.xlu0 %v3962_v2, %s6426_s17  ;;  %v1668_v20 = vpack.c.bf16 %v1604_v19, %v1596_v18 }
  0xec   : > { %v4353_v24 = vpop.permute.xlu1 %955  ;;  %1761 = vmatprep.subr.bf16.mxu1 %v1668_v20  ;;  %v4355_v25 = vpop.permute.xlu0 %901 }
  0xed   : > { %v917_v28 = vsel %vm6393_vm12, %v4345_v14, %v4355_v25  ;;  %1762 = vmatpush1.bf16.msra.mxu1 %v1667_v22  ;;  %v1577_v34 = vld [vmem:[#allocation2 + $0x218] sm:$0xff] }
  0xee   : > { %933 = vst [vmem:[#allocation2 + $0x228] sm:$0xf] %v917_v28  ;;  %471 = vrot.lane.b32.xlu1 %v3956_v0, %s6424_s16  ;;  %469 = vrot.lane.b32.xlu0 %v3973_v3, %s6424_s16 }
  0xf0   : > { %v999_v30 = vpop.permute.xlu1 %998  ;;  %v4364_v31 = vpop.permute.xlu0 %957 }
  0xf1   : > { %v973_v33 = vsel %vm6392_vm13, %v4353_v24, %v4364_v31  ;;  %v1585_v35 = vld [vmem:[#allocation2 + $0x30] sm:$0xff] }
  0xf2   : > { %989 = vst [vmem:[#allocation2 + $0xf8] sm:$0xf] %v973_v33  ;;  %514 = vrot.lane.b32.xlu1 %v3977_v4, %s6418_s15  ;;  %512 = vrot.lane.b32.xlu0 %v3962_v2, %s6418_s15  ;;  %v1657_v37 = vpack.c.bf16 %v1585_v35, %v1577_v34 }
  0xf4   : > { %v1046_v3 = vpop.permute.xlu1 %1045  ;;  %1723 = vmatpush1.bf16.msra.mxu0 %v1657_v37  ;;  %v4373_v38 = vpop.permute.xlu0 %1000 }
  0xf5   : > { %v1060_v41 = vsel %vm6394_vm8, %v4254_v23, %v1046_v3  ;;  %v1016_v42 = vsel %vm6391_vm14, %v999_v30, %v4373_v38  ;;  %v1562_v32 = vld [vmem:[#allocation2 + $0x228] sm:$0xff] }
  0xf6   : > { %1076 = vst [vmem:[#allocation2 + $0xa8] sm:$0xf] %v1060_v41  ;;  %1032 = vst [vmem:[#allocation2 + $0xf8] sm:$0xf0] %v1016_v42  ;;  %561 = vrot.lane.b32.xlu1 %v3980_v5, %s6433_s12  ;;  %559 = vrot.lane.b32.xlu0 %v3995_v7, %s6433_s12 }
  0xf8   : > { %v1089_v4 = vpop.permute.xlu1 %1088  ;;  %v4383_v44 = vpop.permute.xlu0 %1047 }
  0xf9   : > { %v1103_v46 = vsel %vm6390_vm9, %v4266_v29, %v1089_v4  ;;  %v1061_v23 = vsel %vm6394_vm8, %v1046_v3, %v4383_v44  ;;  %vm700_vm8 = vcmask 736256  }
  0xfa   : > { %1119 = vst [vmem:[#allocation2 + $0xa8] sm:$0xf0] %v1103_v46  ;;  %1077 = vst [vmem:[#allocation2 + $0xc8] sm:$0xf] %v1061_v23  ;;  %604 = vrot.lane.b32.xlu1 %v3985_v6, %s6437_s11  ;;  %602 = vrot.lane.b32.xlu0 %v3956_v0, %s6437_s11 }
  0xfc   : > { %v1132_v26 = vpop.permute.xlu1 %1131  ;;  %v4393_v48 = vpop.permute.xlu0 %1090 }
  0xfd   : > { %v1146_v51 = vsel %vm6389_vm10, %v4277_v36, %v1132_v26  ;;  %v1104_v29 = vsel %vm6390_vm9, %v1089_v4, %v4393_v48  ;;  %v1570_v53 = vld [vmem:[#allocation2 + $0xf8] sm:$0xff]  ;;  %vm6399_vm9 = vcmask 72704   ;;  %v4467_v4 = vcombine.high %v3959_v1, %v3959_v1 }
  0xfe   : > { %1162 = vst [vmem:[#allocation2 + $0x1e0] sm:$0xf] %v1146_v51  ;;  %1120 = vst [vmem:[#allocation2 + $0xc8] sm:$0xf0] %v1104_v29  ;;  %647 = vrot.lane.b32.xlu1 %v3980_v5, %s6430_s30  ;;  %645 = vrot.lane.b32.xlu0 %v3995_v7, %s6430_s30  ;;  %v1650_v54 = vpack.c.bf16 %v1570_v53, %v1562_v32 }
 0x100   : > { %v1175_v55 = vpop.permute.xlu1 %1174  ;;  %1724 = vmatprep.subr.bf16.mxu0 %v1650_v54  ;;  %v4403_v56 = vpop.permute.xlu0 %1133 }
 0x101   : > { %v1189_v36 = vsel %vm6388_vm11, %v4286_v40, %v1175_v55  ;;  %v1147_v39 = vsel %vm6389_vm10, %v1132_v26, %v4403_v56  ;;  %v1579_v19 = vld [vmem:[#allocation2 + $0xa8] sm:$0xff]  ;;  %vm6400_vm10 = vcmask 80896  }
 0x102   : > { %1205 = vst [vmem:[#allocation2 + $0x1e0] sm:$0xf0] %v1189_v36  ;;  %1163 = vst [vmem:[#allocation2 + $0x50] sm:$0xf] %v1147_v39  ;;  %690 = vrot.lane.b32.xlu1 %v3985_v6, %s6435_s28  ;;  %688 = vrot.lane.b32.xlu0 %v3956_v0, %s6435_s28 }
 0x104   : > { %v898_v58 = vpop.permute.xlu1 %897  ;;  %v4413_v60 = vpop.permute.xlu0 %1176 }
 0x105   : > { %v916_v63 = vsel %vm6393_vm12, %v898_v58, %v4345_v14  ;;  %v1190_v40 = vsel %vm6388_vm11, %v1175_v55, %v4413_v60  ;;  %v1580_v17 = vld [vmem:[#allocation2 + $0xc8] sm:$0xff]  ;;  %vm6401_vm11 = vcmask 89088   ;;  %v6441_v55 = vmov 0  }
 0x106   : > { %932 = vst [vmem:[#allocation2 + $0x2b8] sm:$0xf] %v916_v63  ;;  %1206 = vst [vmem:[#allocation2 + $0x50] sm:$0xf0] %v1190_v40  ;;  %424 = vrot.lane.b32.xlu1 %v4206_v50, %s6426_s17  ;;  %376 = vrot.lane.b32.xlu0 %v3962_v2, %s6428_s29 }
 0x107   : > { %1748 = vmatprep.mubr.bf16.mxu0 %v6441_v55  ;;  %1789 = vmatprep.mubr.bf16.mxu1 %v6441_v55 }
 0x108   : > { %v997_v43 = vpop.permute.xlu1 %996  ;;  %v954_v9 = vpop.permute.xlu0 %953  ;;  %3818 = vset.pattern.permute.xlu0 %v6441_v55  ;;  %3819 = vset.pattern.permute.xlu1 %v6441_v55 }
 0x109   : > { %v1015_v11 = vsel %vm6391_vm14, %v997_v43, %v999_v30  ;;  %v972_v12 = vsel %vm6392_vm13, %v954_v9, %v4353_v24  ;;  %v1587_v15 = vld [vmem:[#allocation2 + $0x1e0] sm:$0xff] }
 0x10a   : > { %1031 = vst [vmem:[#allocation2 + $0x270] sm:$0xf0] %v1015_v11  ;;  %988 = vst [vmem:[#allocation2 + $0x270] sm:$0xf] %v972_v12  ;;  %510 = vrot.lane.b32.xlu1 %v4206_v50, %s6418_s15  ;;  %467 = vrot.lane.b32.xlu0 %v3962_v2, %s6424_s16  ;;  %v1659_v20 = vpack.c.bf16 %v1587_v15, %v1579_v19 }
 0x10c   : > { %v4430_v13 = vpop.permute.xlu1 %729  ;;  %v4432_v14 = vpop.permute.xlu0 %727 }
 0x10d   : > { %v745_v16 = vsel %vm6402_vm15, %v4432_v14, %v4430_v13  ;;  %v1588_v18 = vld [vmem:[#allocation2 + $0x50] sm:$0xff]  ;;  %v1561_v28 = vld [vmem:[#allocation2 + $0x2b8] sm:$0xff] }
 0x10e   : > { %761 = vst [vmem:[#allocation2 + $0x298] sm:$0xf] %v745_v16  ;;  %384 = vrot.lane.b32.xlu1 %v3980_v5, %s6428_s29  ;;  %382 = vrot.lane.b32.xlu0 %v3995_v7, %s6428_s29  ;;  %v1660_v50 = vpack.c.bf16 %v1588_v18, %v1580_v17 }
 0x110   : > { %v4441_v21 = vpop.permute.xlu1 %772  ;;  %1763 = vmatprep.subr.bf16.mxu1 %v1660_v50  ;;  %v771_v22 = vpop.permute.xlu0 %770 }
 0x111   : > { %v788_v24 = vsel %vm6401_vm11, %v771_v22, %v4441_v21  ;;  %1764 = vmatpush1.bf16.msra.mxu1 %v1659_v20  ;;  %v1569_v30 = vld [vmem:[#allocation2 + $0x270] sm:$0xff] }
 0x112   : > { %804 = vst [vmem:[#allocation2 + $0x298] sm:$0xf0] %v788_v24  ;;  %432 = vrot.lane.b32.xlu1 %v3985_v6, %s6426_s17  ;;  %430 = vrot.lane.b32.xlu0 %v3956_v0, %s6426_s17  ;;  %v1649_v33 = vpack.c.bf16 %v1569_v30, %v1561_v28 }
 0x114   : > { %v4449_v34 = vpop.permute.xlu1 %815  ;;  %1725 = vmatpush1.bf16.msra.mxu0 %v1649_v33  ;;  %v814_v35 = vpop.permute.xlu0 %813 }
 0x115   : > { %v831_v37 = vsel %vm6400_vm10, %v814_v35, %v4449_v34 }
 0x116   : > { %847 = vst [vmem:[#allocation2 + $0x2f0] sm:$0xf] %v831_v37  ;;  %475 = vrot.lane.b32.xlu1 %v3980_v5, %s6424_s16  ;;  %473 = vrot.lane.b32.xlu0 %v3995_v7, %s6424_s16 }
 0x118   : > { %v4457_v3 = vpop.permute.xlu1 %858  ;;  %v857_v41 = vpop.permute.xlu0 %856 }
 0x119   : > { %v874_v42 = vsel %vm6399_vm9, %v857_v41, %v4457_v3  ;;  %v1546_v32 = vld [vmem:[#allocation2 + $0x298] sm:$0xff] }
 0x11a   : > { %890 = vst [vmem:[#allocation2 + $0x2f0] sm:$0xf0] %v874_v42  ;;  %518 = vrot.lane.b32.xlu1 %v3985_v6, %s6418_s15  ;;  %516 = vrot.lane.b32.xlu0 %v3956_v0, %s6418_s15  ;;  %v4540_v42 = vcombine.high %v4228_v62, %v4228_v62  ;;  %s6496_s15 = smov 10  }
 0x11c   : > { %v4469_v46 = vpop.permute.xlu1 %905  ;;  %v904_v7 = vpop.permute.xlu0 %903 }
 0x11d   : > { %v918_v23 = vsel %vm6393_vm12, %v4355_v25, %v904_v7  ;;  %v919_v26 = vsel %vm6393_vm12, %v904_v7, %v4469_v46  ;;  %vm657_vm12 = vcmask 744448  }
 0x11e   : > { %934 = vst [vmem:[#allocation2 + $0x178] sm:$0xf] %v918_v23  ;;  %935 = vst [vmem:[#allocation2 + $0x200] sm:$0xf] %v919_v26  ;;  %1395 = vrot.lane.b32.xlu1 %v4467_v4, %s6413_s19  ;;  %1393 = vrot.lane.b32.xlu0 %v3959_v1, %s6413_s19 }
 0x120   : > { %v4479_v6 = vpop.permute.xlu1 %961  ;;  %v960_v51 = vpop.permute.xlu0 %959 }
 0x121   : > { %v974_v29 = vsel %vm6392_vm13, %v4364_v31, %v960_v51  ;;  %v975_v25 = vsel %vm6392_vm13, %v960_v51, %v4479_v6  ;;  %v1554_v53 = vld [vmem:[#allocation2 + $0x2f0] sm:$0xff]  ;;  %vm614_vm13 = vcmask 809984  }
 0x122   : > { %990 = vst [vmem:[#allocation2 + $0x1c8] sm:$0xf] %v974_v29  ;;  %991 = vst [vmem:[#allocation2 + $0xb0] sm:$0xf] %v975_v25  ;;  %1438 = vrot.lane.b32.xlu1 %v3959_v1, %s6397_s20  ;;  %1436 = vrot.lane.b32.xlu0 %v4149_v27, %s6397_s20  ;;  %v1642_v54 = vpack.c.bf16 %v1554_v53, %v1546_v32 }
 0x124   : > { %v4491_v31 = vpop.permute.xlu1 %1004  ;;  %1726 = vmatprep.subr.bf16.mxu0 %v1642_v54  ;;  %v1003_v36 = vpop.permute.xlu0 %1002 }
 0x125   : > { %v1017_v39 = vsel %vm6391_vm14, %v4373_v38, %v1003_v36  ;;  %v1018_v58 = vsel %vm6391_vm14, %v1003_v36, %v4491_v31  ;;  %v1564_v12 = vld [vmem:[#allocation2 + $0x200] sm:$0xff]  ;;  %v1563_v18 = vld [vmem:[#allocation2 + $0x178] sm:$0xff]  ;;  %vm571_vm14 = vcmask 818176  }
 0x126   : > { %1033 = vst [vmem:[#allocation2 + $0x1c8] sm:$0xf0] %v1017_v39  ;;  %1034 = vst [vmem:[#allocation2 + $0xb0] sm:$0xf0] %v1018_v58  ;;  %1481 = vrot.lane.b32.xlu1 %v4467_v4, %s6395_s21  ;;  %1479 = vrot.lane.b32.xlu0 %v3959_v1, %s6395_s21 }
 0x128   : > { %v769_v63 = vpop.permute.xlu1 %768  ;;  %v726_v40 = vpop.permute.xlu0 %725 }
 0x129   : > { %v787_v43 = vsel %vm6401_vm11, %v769_v63, %v771_v22  ;;  %v744_v38 = vsel %vm6402_vm15, %v726_v40, %v4432_v14 }
 0x12a   : > { %803 = vst [vmem:[#allocation2 + $0xd8] sm:$0xf0] %v787_v43  ;;  %760 = vst [vmem:[#allocation2 + $0xd8] sm:$0xf] %v744_v38  ;;  %1223 = vrot.lane.b32.xlu1 %v4467_v4, %s6405_s22  ;;  %1221 = vrot.lane.b32.xlu0 %v3959_v1, %s6405_s22 }
 0x12c   : > { %v855_v9 = vpop.permute.xlu1 %854  ;;  %v812_v11 = vpop.permute.xlu0 %811 }
 0x12d   : > { %v873_v15 = vsel %vm6399_vm9, %v855_v9, %v857_v41  ;;  %v830_v16 = vsel %vm6400_vm10, %v812_v11, %v814_v35  ;;  %v1572_v17 = vld [vmem:[#allocation2 + $0xb0] sm:$0xff]  ;;  %v1571_v50 = vld [vmem:[#allocation2 + $0x1c8] sm:$0xff] }
 0x12e   : > { %889 = vst [vmem:[#allocation2 + $0x1f8] sm:$0xf0] %v873_v15  ;;  %846 = vst [vmem:[#allocation2 + $0x1f8] sm:$0xf] %v830_v16  ;;  %1266 = vrot.lane.b32.xlu1 %v3959_v1, %s6415_s23  ;;  %1264 = vrot.lane.b32.xlu0 %v4149_v27, %s6415_s23  ;;  %v1652_v14 = vpack.c.bf16 %v1572_v17, %v1564_v12  ;;  %v1651_v19 = vpack.c.bf16 %v1571_v50, %v1563_v18 }
 0x130   : > { %v4516_v20 = vpop.permute.xlu1 %557  ;;  %1765 = vmatprep.subr.bf16.mxu1 %v1652_v14  ;;  %v4518_v22 = vpop.permute.xlu0 %555 }
 0x131   : > { %v573_v24 = vsel %vm571_vm14, %v4518_v22, %v4516_v20  ;;  %1766 = vmatpush1.bf16.msra.mxu1 %v1651_v19  ;;  %v1545_v35 = vld [vmem:[#allocation2 + $0xd8] sm:$0xff] }
 0x132   : > { %589 = vst [vmem:[#allocation2 + $0x330] sm:$0xf] %v573_v24  ;;  %1309 = vrot.lane.b32.xlu1 %v4467_v4, %s6403_s24  ;;  %1307 = vrot.lane.b32.xlu0 %v3959_v1, %s6403_s24 }
 0x134   : > { %v4527_v28 = vpop.permute.xlu1 %600  ;;  %v4529_v30 = vpop.permute.xlu0 %598 }
 0x135   : > { %v616_v33 = vsel %vm614_vm13, %v4529_v30, %v4527_v28  ;;  %v1553_v37 = vld [vmem:[#allocation2 + $0x1f8] sm:$0xff] }
 0x136   : > { %632 = vst [vmem:[#allocation2 + $0x330] sm:$0xf0] %v616_v33  ;;  %1352 = vrot.lane.b32.xlu1 %v3959_v1, %s6407_s25  ;;  %1350 = vrot.lane.b32.xlu0 %v4149_v27, %s6407_s25  ;;  %v1641_v41 = vpack.c.bf16 %v1553_v37, %v1545_v35 }
 0x138   : > { %v4542_v7 = vpop.permute.xlu1 %643  ;;  %1727 = vmatpush1.bf16.msra.mxu0 %v1641_v41  ;;  %v642_v23 = vpop.permute.xlu0 %641 }
 0x139   : > { %v659_v26 = vsel %vm657_vm12, %v642_v23, %v4542_v7 }
 0x13a   : > { %675 = vst [vmem:[#allocation2 + $0x120] sm:$0xf] %v659_v26  ;;  %1399 = vrot.lane.b32.xlu1 %v4540_v42, %s6413_s19  ;;  %1397 = vrot.lane.b32.xlu0 %v4228_v62, %s6413_s19  ;;  %s6497_s19 = smov 9  }
 0x13c   : > { %v4550_v51 = vpop.permute.xlu1 %686  ;;  %v685_v29 = vpop.permute.xlu0 %684 }
 0x13d   : > { %v702_v25 = vsel %vm700_vm8, %v685_v29, %v4550_v51  ;;  %v1530_v40 = vld [vmem:[#allocation2 + $0x330] sm:$0xff] }
 0x13e   : > { %718 = vst [vmem:[#allocation2 + $0x120] sm:$0xf0] %v702_v25  ;;  %1442 = vrot.lane.b32.xlu1 %v4228_v62, %s6397_s20  ;;  %1440 = vrot.lane.b32.xlu0 %v4232_v10, %s6397_s20  ;;  %s6489_s20 = smov 38  }
 0x140   : > { %v4558_v32 = vpop.permute.xlu1 %733  ;;  %v732_v53 = vpop.permute.xlu0 %731 }
 0x141   : > { %v746_v54 = vsel %vm6402_vm15, %v4430_v13, %v732_v53  ;;  %v747_v36 = vsel %vm6402_vm15, %v732_v53, %v4558_v32  ;;  %vm528_vm15 = vcmask 826368  }
 0x142   : > { %762 = vst [vmem:[#allocation2 + $0xb8] sm:$0xf] %v746_v54  ;;  %763 = vst [vmem:[#allocation2 + $0x170] sm:$0xf] %v747_v36  ;;  %1485 = vrot.lane.b32.xlu1 %v4540_v42, %s6395_s21  ;;  %1483 = vrot.lane.b32.xlu0 %v4228_v62, %s6395_s21  ;;  %s6488_s21 = smov 39  }
 0x144   : > { %v4568_v39 = vpop.permute.xlu1 %776  ;;  %v775_v58 = vpop.permute.xlu0 %774 }
 0x145   : > { %v789_v63 = vsel %vm6401_vm11, %v4441_v21, %v775_v58  ;;  %v790_v13 = vsel %vm6401_vm11, %v775_v58, %v4568_v39  ;;  %v1538_v43 = vld [vmem:[#allocation2 + $0x120] sm:$0xff]  ;;  %vm485_vm11 = vcmask 891904  }
 0x146   : > { %805 = vst [vmem:[#allocation2 + $0xb8] sm:$0xf0] %v789_v63  ;;  %806 = vst [vmem:[#allocation2 + $0x170] sm:$0xf0] %v790_v13  ;;  %1051 = vrot.lane.b32.xlu1 %v4467_v4, %s6409_s26  ;;  %1049 = vrot.lane.b32.xlu0 %v3959_v1, %s6409_s26  ;;  %v1634_v38 = vpack.c.bf16 %v1538_v43, %v1530_v40 }
 0x148   : > { %v4578_v9 = vpop.permute.xlu1 %819  ;;  %1728 = vmatprep.subr.bf16.mxu0 %v1634_v38  ;;  %v818_v11 = vpop.permute.xlu0 %817 }
 0x149   : > { %v832_v21 = vsel %vm6400_vm10, %v4449_v34, %v818_v11  ;;  %v833_v12 = vsel %vm6400_vm10, %v818_v11, %v4578_v9  ;;  %vm6417_vm10 = vcmask 900096  }
 0x14a   : > { %848 = vst [vmem:[#allocation2 + $0x358] sm:$0xf] %v832_v21  ;;  %849 = vst [vmem:[#allocation2 + $0x1c0] sm:$0xf] %v833_v12  ;;  %1094 = vrot.lane.b32.xlu1 %v3959_v1, %s6411_s27  ;;  %1092 = vrot.lane.b32.xlu0 %v4149_v27, %s6411_s27 }
 0x14c   : > { %v4588_v15 = vpop.permute.xlu1 %862  ;;  %v861_v16 = vpop.permute.xlu0 %860 }
 0x14d   : > { %v875_v17 = vsel %vm6399_vm9, %v4457_v3, %v861_v16  ;;  %v876_v34 = vsel %vm6399_vm9, %v861_v16, %v4588_v15  ;;  %v1548_v33 = vld [vmem:[#allocation2 + $0x170] sm:$0xff]  ;;  %vm394_vm9 = vcmask 908288  }
 0x14e   : > { %891 = vst [vmem:[#allocation2 + $0x358] sm:$0xf0] %v875_v17  ;;  %892 = vst [vmem:[#allocation2 + $0x1c0] sm:$0xf0] %v876_v34  ;;  %1137 = vrot.lane.b32.xlu1 %v4467_v4, %s6488_s21  ;;  %1135 = vrot.lane.b32.xlu0 %v3959_v1, %s6488_s21 }
 0x150   : > { %v597_v18 = vpop.permute.xlu1 %596  ;;  %v554_v50 = vpop.permute.xlu0 %553 }
 0x151   : > { %v615_v14 = vsel %vm614_vm13, %v597_v18, %v4529_v30  ;;  %v572_v19 = vsel %vm571_vm14, %v554_v50, %v4518_v22  ;;  %v1547_v30 = vld [vmem:[#allocation2 + $0xb8] sm:$0xff] }
 0x152   : > { %631 = vst [vmem:[#allocation2 + $0x28] sm:$0xf0] %v615_v14  ;;  %588 = vst [vmem:[#allocation2 + $0x28] sm:$0xf] %v572_v19  ;;  %1180 = vrot.lane.b32.xlu1 %v3959_v1, %s6489_s20  ;;  %1178 = vrot.lane.b32.xlu0 %v4149_v27, %s6489_s20 }
 0x154   : > { %v683_v3 = vpop.permute.xlu1 %682  ;;  %v640_v24 = vpop.permute.xlu0 %639 }
 0x155   : > { %v701_v35 = vsel %vm700_vm8, %v683_v3, %v685_v29  ;;  %v658_v37 = vsel %vm657_vm12, %v640_v24, %v642_v23  ;;  %v1556_v41 = vld [vmem:[#allocation2 + $0x1c0] sm:$0xff]  ;;  %v1555_v26 = vld [vmem:[#allocation2 + $0x358] sm:$0xff] }
 0x156   : > { %717 = vst [vmem:[#allocation2 + $0x350] sm:$0xf0] %v701_v35  ;;  %674 = vst [vmem:[#allocation2 + $0x350] sm:$0xf] %v658_v37  ;;  %1227 = vrot.lane.b32.xlu1 %v4540_v42, %s6405_s22  ;;  %1225 = vrot.lane.b32.xlu0 %v4228_v62, %s6405_s22  ;;  %v1644_v22 = vpack.c.bf16 %v1556_v41, %v1548_v33  ;;  %v1643_v25 = vpack.c.bf16 %v1555_v26, %v1547_v30  ;;  %s6491_s22 = smov 127  }
 0x158   : > { %v4612_v53 = vpop.permute.xlu1 %380  ;;  %1767 = vmatprep.subr.bf16.mxu1 %v1644_v22  ;;  %v4614_v29 = vpop.permute.xlu0 %378 }
 0x159   : > { %v396_v23 = vsel %vm394_vm9, %v4614_v29, %v4612_v53  ;;  %1768 = vmatpush1.bf16.msra.mxu1 %v1643_v25  ;;  %v1529_v63 = vld [vmem:[#allocation2 + $0x28] sm:$0xff] }
 0x15a   : > { %412 = vst [vmem:[#allocation2 + $0xd0] sm:$0xf] %v396_v23  ;;  %1270 = vrot.lane.b32.xlu1 %v4228_v62, %s6415_s23  ;;  %1268 = vrot.lane.b32.xlu0 %v4232_v10, %s6415_s23  ;;  %s6506_s23 = smov 101  }
 0x15c   : > { %v4623_v54 = vpop.permute.xlu1 %428  ;;  %v427_v36 = vpop.permute.xlu0 %426 }
 0x15d   : > { %v444_v58 = vsel %vm6417_vm10, %v427_v36, %v4623_v54  ;;  %v1537_v13 = vld [vmem:[#allocation2 + $0x350] sm:$0xff] }
 0x15e   : > { %460 = vst [vmem:[#allocation2 + $0xd0] sm:$0xf0] %v444_v58  ;;  %1313 = vrot.lane.b32.xlu1 %v4540_v42, %s6403_s24  ;;  %1311 = vrot.lane.b32.xlu0 %v4228_v62, %s6403_s24  ;;  %v1633_v40 = vpack.c.bf16 %v1537_v13, %v1529_v63  ;;  %s6490_s24 = smov 1  }
 0x160   : > { %v4631_v43 = vpop.permute.xlu1 %471  ;;  %1729 = vmatpush1.bf16.msra.mxu0 %v1633_v40  ;;  %v470_v38 = vpop.permute.xlu0 %469 }
 0x161   : > { %v487_v11 = vsel %vm485_vm11, %v470_v38, %v4631_v43 }
 0x162   : > { %503 = vst [vmem:[#allocation2 + $0x110] sm:$0xf] %v487_v11  ;;  %1356 = vrot.lane.b32.xlu1 %v4228_v62, %s6407_s25  ;;  %1354 = vrot.lane.b32.xlu0 %v4232_v10, %s6407_s25  ;;  %s6492_s25 = smov 119  }
 0x164   : > { %v4639_v21 = vpop.permute.xlu1 %514  ;;  %v513_v12 = vpop.permute.xlu0 %512 }
 0x165   : > { %v530_v16 = vsel %vm528_vm15, %v513_v12, %v4639_v21  ;;  %v1514_v24 = vld [vmem:[#allocation2 + $0xd0] sm:$0xff] }
 0x166   : > { %546 = vst [vmem:[#allocation2 + $0x110] sm:$0xf0] %v530_v16  ;;  %909 = vrot.lane.b32.xlu1 %v3959_v1, %s6490_s24  ;;  %907 = vrot.lane.b32.xlu0 %v4027_v8, %s6490_s24 }
 0x168   : > { %v4647_v17 = vpop.permute.xlu1 %561  ;;  %v560_v34 = vpop.permute.xlu0 %559 }
 0x169   : > { %v574_v18 = vsel %vm571_vm14, %v4516_v20, %v560_v34  ;;  %v575_v50 = vsel %vm571_vm14, %v560_v34, %v4647_v17 }
 0x16a   : > { %590 = vst [vmem:[#allocation2 + $0x2d0] sm:$0xf] %v574_v18  ;;  %591 = vst [vmem:[#allocation2 + $0x198] sm:$0xf] %v575_v50  ;;  %965 = vrot.lane.b32.xlu1 %v4467_v4, %s6491_s22  ;;  %963 = vrot.lane.b32.xlu0 %v3959_v1, %s6491_s22 }
 0x16c   : > { %v4657_v14 = vpop.permute.xlu1 %604  ;;  %v603_v19 = vpop.permute.xlu0 %602 }
 0x16d   : > { %v617_v3 = vsel %vm614_vm13, %v4527_v28, %v603_v19  ;;  %v618_v20 = vsel %vm614_vm13, %v603_v19, %v4657_v14  ;;  %v1522_v33 = vld [vmem:[#allocation2 + $0x110] sm:$0xff] }
 0x16e   : > { %633 = vst [vmem:[#allocation2 + $0x2d0] sm:$0xf0] %v617_v3  ;;  %634 = vst [vmem:[#allocation2 + $0x198] sm:$0xf0] %v618_v20  ;;  %1008 = vrot.lane.b32.xlu1 %v3959_v1, %s6492_s25  ;;  %1006 = vrot.lane.b32.xlu0 %v4149_v27, %s6492_s25  ;;  %v1626_v35 = vpack.c.bf16 %v1522_v33, %v1514_v24 }
 0x170   : > { %v4667_v37 = vpop.permute.xlu1 %647  ;;  %1730 = vmatprep.subr.bf16.mxu0 %v1626_v35  ;;  %v646_v41 = vpop.permute.xlu0 %645 }
 0x171   : > { %v660_v28 = vsel %vm657_vm12, %v4542_v7, %v646_v41  ;;  %v661_v30 = vsel %vm657_vm12, %v646_v41, %v4667_v37 }
 0x172   : > { %676 = vst [vmem:[#allocation2 + $0x1a0] sm:$0xf] %v660_v28  ;;  %677 = vst [vmem:[#allocation2 + $0x260] sm:$0xf] %v661_v30  ;;  %1055 = vrot.lane.b32.xlu1 %v4540_v42, %s6409_s26  ;;  %1053 = vrot.lane.b32.xlu0 %v4228_v62, %s6409_s26  ;;  %s6493_s26 = smov 89  }
 0x174   : > { %v4677_v26 = vpop.permute.xlu1 %690  ;;  %v689_v22 = vpop.permute.xlu0 %688 }
 0x175   : > { %v703_v25 = vsel %vm700_vm8, %v4550_v51, %v689_v22  ;;  %v704_v7 = vsel %vm700_vm8, %v689_v22, %v4677_v26  ;;  %v1532_v11 = vld [vmem:[#allocation2 + $0x198] sm:$0xff] }
 0x176   : > { %719 = vst [vmem:[#allocation2 + $0x1a0] sm:$0xf0] %v703_v25  ;;  %720 = vst [vmem:[#allocation2 + $0x260] sm:$0xf0] %v704_v7  ;;  %1098 = vrot.lane.b32.xlu1 %v4228_v62, %s6411_s27  ;;  %1096 = vrot.lane.b32.xlu0 %v4232_v10, %s6411_s27  ;;  %s6494_s27 = smov 11  }
 0x178   : > { %v425_v23 = vpop.permute.xlu1 %424  ;;  %v377_v58 = vpop.permute.xlu0 %376 }
 0x179   : > { %v443_v63 = vsel %vm6417_vm10, %v425_v23, %v427_v36  ;;  %v395_v13 = vsel %vm394_vm9, %v377_v58, %v4614_v29  ;;  %v1531_v36 = vld [vmem:[#allocation2 + $0x2d0] sm:$0xff] }
 0x17a   : > { %459 = vst [vmem:[#allocation2 + $0x2b0] sm:$0xf0] %v443_v63  ;;  %411 = vst [vmem:[#allocation2 + $0x2b0] sm:$0xf] %v395_v13  ;;  %1141 = vrot.lane.b32.xlu1 %v4540_v42, %s6488_s21  ;;  %1139 = vrot.lane.b32.xlu0 %v4228_v62, %s6488_s21 }
 0x17c   : > { %v511_v51 = vpop.permute.xlu1 %510  ;;  %v468_v40 = vpop.permute.xlu0 %467 }
 0x17d   : > { %v529_v16 = vsel %vm528_vm15, %v511_v51, %v513_v12  ;;  %v486_v34 = vsel %vm485_vm11, %v468_v40, %v470_v38  ;;  %v1540_v18 = vld [vmem:[#allocation2 + $0x260] sm:$0xff] }
 0x17e   : > { %v1539_v50 = vld [vmem:[#allocation2 + $0x1a0] sm:$0xff]  ;;  %545 = vst [vmem:[#allocation2 + $0x108] sm:$0xf0] %v529_v16  ;;  %502 = vst [vmem:[#allocation2 + $0x108] sm:$0xf] %v486_v34  ;;  %1184 = vrot.lane.b32.xlu1 %v4228_v62, %s6489_s20  ;;  %1182 = vrot.lane.b32.xlu0 %v4232_v10, %s6489_s20  ;;  %v1636_v29 = vpack.c.bf16 %v1540_v18, %v1532_v11 }
 0x17f   : > { %v1635_v19 = vpack.c.bf16 %v1539_v50, %v1531_v36  ;;  %v4755_v11 = vld [vmem:[%s3953_s18 + $0x20] sm:$0xff] }
 0x180   : > { %v4700_v3 = vpop.permute.xlu1 %384  ;;  %1769 = vmatprep.subr.bf16.mxu1 %v1636_v29  ;;  %v383_v20 = vpop.permute.xlu0 %382 }
 0x181   : > { %v397_v38 = vsel %vm394_vm9, %v4612_v53, %v383_v20  ;;  %v398_v12 = vsel %vm394_vm9, %v383_v20, %v4700_v3  ;;  %1770 = vmatpush1.bf16.msra.mxu1 %v1635_v19  ;;  %v1513_v35 = vld [vmem:[#allocation2 + $0x2b0] sm:$0xff] }
 0x182   : > { %413 = vst [vmem:[#allocation2 + $0x10] sm:$0xf] %v397_v38  ;;  %414 = vst [vmem:[#allocation2 + $0x48] sm:$0xf] %v398_v12  ;;  %737 = vrot.lane.b32.xlu1 %v3959_v1, %s6493_s26  ;;  %735 = vrot.lane.b32.xlu0 %v4027_v8, %s6493_s26 }
 0x184   : > { %v4710_v62 = vpop.permute.xlu1 %432  ;;  %v431_v24 = vpop.permute.xlu0 %430 }
 0x185   : > { %v445_v33 = vsel %vm6417_vm10, %v4623_v54, %v431_v24  ;;  %v446_v53 = vsel %vm6417_vm10, %v431_v24, %v4710_v62  ;;  %v1521_v41 = vld [vmem:[#allocation2 + $0x108] sm:$0xff]  ;;  %v4725_v54 = vld [vmem:[%s6495_s2] sm:$0x3]  ;;  %vm1687_vm10 = vcmask 883712  }
 0x186   : > { %461 = vst [vmem:[#allocation2 + $0x10] sm:$0xf0] %v445_v33  ;;  %462 = vst [vmem:[#allocation2 + $0x48] sm:$0xf0] %v446_v53  ;;  %780 = vrot.lane.b32.xlu1 %v4149_v27, %s6494_s27  ;;  %778 = vrot.lane.b32.xlu0 %v3980_v5, %s6494_s27  ;;  %v1625_v28 = vpack.c.bf16 %v1521_v41, %v1513_v35 }
 0x188   : > { %v4720_v30 = vpop.permute.xlu1 %475  ;;  %1731 = vmatpush1.bf16.msra.mxu0 %v1625_v28  ;;  %v474_v22 = vpop.permute.xlu0 %473 }
 0x189   : > { %v488_v25 = vsel %vm485_vm11, %v4631_v43, %v474_v22  ;;  %v489_v7 = vsel %vm485_vm11, %v474_v22, %v4720_v30 }
 0x18a   : > { %504 = vst [vmem:[#allocation2 + $0x90] sm:$0xf] %v488_v25  ;;  %505 = vst [vmem:[#allocation2 + $0x318] sm:$0xf] %v489_v7  ;;  %823 = vrot.lane.b32.xlu1 %v3959_v1, %s6496_s15  ;;  %821 = vrot.lane.b32.xlu0 %v4027_v8, %s6496_s15 }
 0x18b   : > { %3763 = vmatmul.mubr.msk.bf16.vlgmr.msra.gmra.mxu0 %vm1687_vm10, %v4725_v54 }
 0x18c   : > { %v4737_v23 = vpop.permute.xlu1 %518  ;;  %v517_v58 = vpop.permute.xlu0 %516  ;;  %1830 = vmatprep.mubr.bf16.mxu0 %v6441_v55 }
 0x18d   : > { %v531_v43 = vsel %vm528_vm15, %v4639_v21, %v517_v58  ;;  %v532_v63 = vsel %vm528_vm15, %v517_v58, %v4737_v23  ;;  %v1516_v18 = vld [vmem:[#allocation2 + $0x48] sm:$0xff]  ;;  %v1515_v29 = vld [vmem:[#allocation2 + $0x10] sm:$0xff] }
 0x18e   : > { %547 = vst [vmem:[#allocation2 + $0x90] sm:$0xf0] %v531_v43  ;;  %548 = vst [vmem:[#allocation2 + $0x318] sm:$0xf0] %v532_v63  ;;  %866 = vrot.lane.b32.xlu1 %v4149_v27, %s6497_s19  ;;  %864 = vrot.lane.b32.xlu0 %v3980_v5, %s6497_s19 }
 0x190   : > { %v4748_v13 = vpop.permute.xlu1 %1395  ;;  %v1394_v51 = vpop.permute.xlu0 %1393 }
 0x191   : > { %v1406_v40 = vsel %vm6421_vm0, %v4194_v47, %v1394_v51  ;;  %v1407_v21 = vsel %vm6421_vm0, %v1394_v51, %v4748_v13 }
 0x192   : > { %1422 = vst [vmem:[#allocation2 + $0x88] sm:$0xf] %v1406_v40  ;;  %1423 = vst [vmem:[#allocation2 + $0x368] sm:$0xf] %v1407_v21  ;;  %913 = vrot.lane.b32.xlu1 %v4755_v11, %s6490_s24  ;;  %911 = vrot.lane.b32.xlu0 %v4467_v4, %s6490_s24 }
 0x194   : > { %v4761_v16 = vpop.permute.xlu1 %1438  ;;  %v1437_v34 = vpop.permute.xlu0 %1436 }
 0x195   : > { %v1449_v47 = vsel %vm6420_vm1, %v4208_v52, %v1437_v34  ;;  %v1450_v36 = vsel %vm6420_vm1, %v1437_v34, %v4761_v16  ;;  %v1524_v50 = vld [vmem:[#allocation2 + $0x318] sm:$0xff]  ;;  %v1523_v19 = vld [vmem:[#allocation2 + $0x90] sm:$0xff] }
 0x196   : > { %1465 = vst [vmem:[#allocation2 + $0x88] sm:$0xf0] %v1449_v47  ;;  %1466 = vst [vmem:[#allocation2 + $0x368] sm:$0xf0] %v1450_v36  ;;  %969 = vrot.lane.b32.xlu1 %v4540_v42, %s6491_s22  ;;  %967 = vrot.lane.b32.xlu0 %v4755_v11, %s6491_s22  ;;  %v1628_v20 = vpack.c.bf16 %v1524_v50, %v1516_v18  ;;  %v1627_v38 = vpack.c.bf16 %v1523_v19, %v1515_v29 }
 0x198   : > { %v4771_v12 = vpop.permute.xlu1 %1481  ;;  %1771 = vmatprep.subr.bf16.mxu1 %v1628_v20  ;;  %v1480_v52 = vpop.permute.xlu0 %1479 }
 0x199   : > { %v1492_v24 = vsel %vm6422_vm2, %v4217_v59, %v1480_v52  ;;  %v1493_v33 = vsel %vm6422_vm2, %v1480_v52, %v4771_v12  ;;  %1772 = vmatpush1.bf16.msra.mxu1 %v1627_v38 }
 0x19a   : > { %1508 = vst [vmem:[#allocation2] sm:$0xf] %v1492_v24  ;;  %1509 = vst [vmem:[#allocation2 + $0x2a0] sm:$0xf] %v1493_v33  ;;  %1012 = vrot.lane.b32.xlu1 %v4755_v11, %s6492_s25  ;;  %1010 = vrot.lane.b32.xlu0 %v4232_v10, %s6492_s25 }
 0x19c   : > { %v4781_v42 = vpop.permute.xlu1 %1223  ;;  %v1222_v53 = vpop.permute.xlu0 %1221  ;;  %3765 = vmatmul.mubr.msk.bf16.vlgmr.msra.gmra.mxu1 %vm1687_vm10, %v4725_v54 }
 0x19d   : > { %v1234_v59 = vsel %vm1229_vm3, %v4297_v45, %v1222_v53  ;;  %v1235_v35 = vsel %vm1229_vm3, %v1222_v53, %v4781_v42  ;;  %1871 = vmatprep.mubr.bf16.mxu1 %v6441_v55  ;;  %v1614_v22 = vld [vmem:[#allocation2 + $0x368] sm:$0xff] }
 0x19e   : > { %1250 = vst [vmem:[#allocation2 + $0x188] sm:$0xf] %v1234_v59  ;;  %1251 = vst [vmem:[#allocation2 + $0x238] sm:$0xf] %v1235_v35  ;;  %565 = vrot.lane.b32.xlu1 %v3959_v1, %s6433_s12  ;;  %563 = vrot.lane.b32.xlu0 %v4027_v8, %s6433_s12  ;;  %v1613_v58 = vld [vmem:[#allocation2 + $0x88] sm:$0xff] }
 0x1a0   : > { %v4794_v41 = vpop.permute.xlu1 %1266  ;;  %v1265_v28 = vpop.permute.xlu0 %1264 }
 0x1a1   : > { %v1277_v45 = vsel %vm1272_vm4, %v4307_v49, %v1265_v28  ;;  %v1278_v25 = vsel %vm1272_vm4, %v1265_v28, %v4794_v41  ;;  %v1622_v7 = vld [vmem:[#allocation2 + $0x2a0] sm:$0xf] }
 0x1a2   : > { %v1621_v43 = vld [vmem:[#allocation2] sm:$0xf]  ;;  %1293 = vst [vmem:[#allocation2 + $0x188] sm:$0xf0] %v1277_v45  ;;  %1294 = vst [vmem:[#allocation2 + $0x238] sm:$0xf0] %v1278_v25  ;;  %608 = vrot.lane.b32.xlu1 %v4149_v27, %s6437_s11  ;;  %606 = vrot.lane.b32.xlu0 %v3980_v5, %s6437_s11  ;;  %v1678_v63 = vpack.c.bf16 %v1622_v7, %v1614_v22 }
 0x1a3   : > { %v1677_v51 = vpack.c.bf16 %v1621_v43, %v1613_v58 }
 0x1a4   : > { %v4804_v40 = vpop.permute.xlu1 %1309  ;;  %3766 = vmatprep.subr.msk.bf16.mxu0 %vm6423_vm5, %v1678_v63  ;;  %v1308_v49 = vpop.permute.xlu0 %1307 }
 0x1a5   : > { %v1705_v21 = vsel %vm6423_vm5, %v1677_v51, 0  ;;  %v1320_v34 = vsel %vm6432_vm6, %v4317_v57, %v1308_v49  ;;  %v1321_v18 = vsel %vm6432_vm6, %v1308_v49, %v4804_v40 }
 0x1a6   : > { %1801 = vmatpush1.bf16.msra.mxu0 %v1705_v21  ;;  %1336 = vst [vmem:[#allocation2 + $0x280] sm:$0xf] %v1320_v34  ;;  %1337 = vst [vmem:[#allocation2 + $0x300] sm:$0xf] %v1321_v18  ;;  %651 = vrot.lane.b32.xlu1 %v3959_v1, %s6430_s30 }
 0x1a7   : > { %649 = vrot.lane.b32.xlu0 %v4027_v8, %s6430_s30 }
 0x1a8   : > { %v4816_v47 = vpop.permute.xlu1 %1352  ;;  %v1351_v36 = vpop.permute.xlu0 %1350 }
 0x1a9   : > { %v1363_v50 = vsel %vm1358_vm7, %v4327_v61, %v1351_v36  ;;  %v1364_v57 = vsel %vm1358_vm7, %v1351_v36, %v4816_v47  ;;  %v1598_v24 = vld [vmem:[#allocation2 + $0x238] sm:$0xff] }
 0x1aa   : > { %1379 = vst [vmem:[#allocation2 + $0x280] sm:$0xf0] %v1363_v50  ;;  %1380 = vst [vmem:[#allocation2 + $0x300] sm:$0xf0] %v1364_v57  ;;  %694 = vrot.lane.b32.xlu1 %v4149_v27, %s6435_s28 }
 0x1ab   : > { %692 = vrot.lane.b32.xlu0 %v3980_v5, %s6435_s28 }
 0x1ac   : > { %v1400_v29 = vpop.permute.xlu1 %1399  ;;  %v1398_v19 = vpop.permute.xlu0 %1397 }
 0x1ad   : > { %v1408_v20 = vsel %vm6421_vm0, %v4748_v13, %v1398_v19  ;;  %v1409_v38 = vsel %vm6421_vm0, %v1398_v19, %v1400_v29  ;;  %v1597_v13 = vld [vmem:[#allocation2 + $0x188] sm:$0xff] }
 0x1ae   : > { %1424 = vst [vmem:[#allocation2 + $0x180] sm:$0xf] %v1408_v20  ;;  %1425 = vst [vmem:[#allocation2 + $0x250] sm:$0xf] %v1409_v38  ;;  %741 = vrot.lane.b32.xlu1 %v4755_v11, %s6493_s26 }
 0x1af   : > { %739 = vrot.lane.b32.xlu0 %v4467_v4, %s6493_s26 }
 0x1b0   : > { %v1443_v61 = vpop.permute.xlu1 %1442  ;;  %v1441_v52 = vpop.permute.xlu0 %1440 }
 0x1b1   : > { %v1451_v33 = vsel %vm6420_vm1, %v4761_v16, %v1441_v52  ;;  %v1452_v53 = vsel %vm6420_vm1, %v1441_v52, %v1443_v61  ;;  %v1606_v59 = vld [vmem:[#allocation2 + $0x300] sm:$0xff]  ;;  %vm6498_vm1 = vcmask 965632  }
 0x1b2   : > { %v1605_v35 = vld [vmem:[#allocation2 + $0x280] sm:$0xff]  ;;  %1467 = vst [vmem:[#allocation2 + $0x180] sm:$0xf0] %v1451_v33  ;;  %1468 = vst [vmem:[#allocation2 + $0x250] sm:$0xf0] %v1452_v53  ;;  %784 = vrot.lane.b32.xlu1 %v4232_v10, %s6494_s27  ;;  %v1670_v28 = vpack.c.bf16 %v1606_v59, %v1598_v24 }
 0x1b3   : > { %782 = vrot.lane.b32.xlu0 %v3959_v1, %s6494_s27  ;;  %v1669_v22 = vpack.c.bf16 %v1605_v35, %v1597_v13  ;;  %vm6499_vm0 = vmmov %vm6498_vm1 }
 0x1b4   : > { %v1486_v45 = vpop.permute.xlu1 %1485  ;;  %1802 = vmatprep.subr.bf16.mxu0 %v1670_v28  ;;  %v1484_v25 = vpop.permute.xlu0 %1483 }
 0x1b5   : > { %v1494_v16 = vsel %vm6422_vm2, %v4771_v12, %v1484_v25  ;;  %v1495_v7 = vsel %vm6422_vm2, %v1484_v25, %v1486_v45  ;;  %1803 = vmatpush1.bf16.msra.mxu0 %v1669_v22  ;;  %vm6500_vm2 = vcmask 957440  }
 0x1b6   : > { %1510 = vst [vmem:[#allocation2 + $0x1b0] sm:$0xf] %v1494_v16  ;;  %1511 = vst [vmem:[#allocation2 + $0x150] sm:$0xf] %v1495_v7  ;;  %827 = vrot.lane.b32.xlu1 %v4755_v11, %s6496_s15 }
 0x1b7   : > { %825 = vrot.lane.b32.xlu0 %v4467_v4, %s6496_s15 }
 0x1b8   : > { %v4847_v58 = vpop.permute.xlu1 %1051  ;;  %v1050_v43 = vpop.permute.xlu0 %1049 }
 0x1b9   : > { %v1062_v63 = vsel %vm6498_vm1, %v4383_v44, %v1050_v43  ;;  %v1063_v12 = vsel %vm6499_vm0, %v1050_v43, %v4847_v58  ;;  %v1616_v21 = vld [vmem:[#allocation2 + $0x250] sm:$0xff]  ;;  %vm6501_vm1 = vmmov %vm6500_vm2  ;;  %v1615_v36 = vld [vmem:[#allocation2 + $0x180] sm:$0xff]  ;;  %vm6502_vm0 = vcmask 318464  }
 0x1ba   : > { %1078 = vst [vmem:[#allocation2 + $0x338] sm:$0xf] %v1062_v63  ;;  %1079 = vst [vmem:[#allocation2 + $0x230] sm:$0xf] %v1063_v12  ;;  %870 = vrot.lane.b32.xlu1 %v4232_v10, %s6497_s19 }
 0x1bb   : > { %868 = vrot.lane.b32.xlu0 %v3959_v1, %s6497_s19 }
 0x1bc   : > { %v4857_v51 = vpop.permute.xlu1 %1094  ;;  %v1093_v49 = vpop.permute.xlu0 %1092 }
 0x1bd   : > { %v1105_v34 = vsel %vm6500_vm2, %v4393_v48, %v1093_v49  ;;  %v1106_v44 = vsel %vm6501_vm1, %v1093_v49, %v4857_v51  ;;  %v1624_v18 = vld [vmem:[#allocation2 + $0x150] sm:$0xf]  ;;  %vm6503_vm2 = vmmov %vm6502_vm0  ;;  %vm6504_vm1 = vcmask 310272  }
 0x1be   : > { %v1623_v50 = vld [vmem:[#allocation2 + $0x1b0] sm:$0xf]  ;;  %1121 = vst [vmem:[#allocation2 + $0x338] sm:$0xf0] %v1105_v34  ;;  %1122 = vst [vmem:[#allocation2 + $0x230] sm:$0xf0] %v1106_v44  ;;  %388 = vrot.lane.b32.xlu1 %v3959_v1, %s6428_s29  ;;  %v1680_v57 = vpack.c.bf16 %v1624_v18, %v1616_v21 }
 0x1bf   : > { %386 = vrot.lane.b32.xlu0 %v4027_v8, %s6428_s29  ;;  %v1679_v29 = vpack.c.bf16 %v1623_v50, %v1615_v36 }
 0x1c0   : > { %v4867_v19 = vpop.permute.xlu1 %1137  ;;  %3768 = vmatprep.subr.msk.bf16.mxu1 %vm6423_vm5, %v1680_v57  ;;  %v1136_v48 = vpop.permute.xlu0 %1135 }
 0x1c1   : > { %v1711_v20 = vsel %vm6423_vm5, %v1679_v29, 0  ;;  %v1148_v38 = vsel %vm6502_vm0, %v4403_v56, %v1136_v48  ;;  %v1149_v61 = vsel %vm6503_vm2, %v1136_v48, %v4867_v19  ;;  %vm6505_vm0 = vmmov %vm6504_vm1  ;;  %vm6507_vm2 = vcmask 7168  }
 0x1c2   : > { %1842 = vmatpush1.bf16.msra.mxu1 %v1711_v20  ;;  %1164 = vst [vmem:[#allocation2 + $0x80] sm:$0xf] %v1148_v38  ;;  %1165 = vst [vmem:[#allocation2 + $0x1f0] sm:$0xf] %v1149_v61  ;;  %436 = vrot.lane.b32.xlu1 %v4149_v27, %s6426_s17 }
 0x1c3   : > { %434 = vrot.lane.b32.xlu0 %v3980_v5, %s6426_s17 }
 0x1c4   : > { %v4879_v52 = vpop.permute.xlu1 %1180  ;;  %v1179_v24 = vpop.permute.xlu0 %1178 }
 0x1c5   : > { %v1191_v33 = vsel %vm6504_vm1, %v4413_v60, %v1179_v24  ;;  %v1192_v56 = vsel %vm6505_vm0, %v1179_v24, %v4879_v52  ;;  %v1582_v22 = vld [vmem:[#allocation2 + $0x230] sm:$0xff]  ;;  %vm6508_vm1 = vmmov %vm6507_vm2  ;;  %vm6509_vm0 = vcmask 1039360  }
 0x1c6   : > { %1207 = vst [vmem:[#allocation2 + $0x80] sm:$0xf0] %v1191_v33  ;;  %1208 = vst [vmem:[#allocation2 + $0x1f0] sm:$0xf0] %v1192_v56  ;;  %479 = vrot.lane.b32.xlu1 %v3959_v1, %s6424_s16 }
 0x1c7   : > { %477 = vrot.lane.b32.xlu0 %v4027_v8, %s6424_s16 }
 0x1c8   : > { %v1228_v53 = vpop.permute.xlu1 %1227  ;;  %v1226_v59 = vpop.permute.xlu0 %1225 }
 0x1c9   : > { %v1236_v13 = vsel %vm1229_vm3, %v4781_v42, %v1226_v59  ;;  %v1237_v35 = vsel %vm1229_vm3, %v1226_v59, %v1228_v53  ;;  %v1581_v42 = vld [vmem:[#allocation2 + $0x338] sm:$0xff] }
 0x1ca   : > { %1252 = vst [vmem:[#allocation2 + $0x2c8] sm:$0xf] %v1236_v13  ;;  %1253 = vst [vmem:[#allocation2 + $0x70] sm:$0xf] %v1237_v35  ;;  %522 = vrot.lane.b32.xlu1 %v4149_v27, %s6506_s23 }
 0x1cb   : > { %520 = vrot.lane.b32.xlu0 %v3980_v5, %s6506_s23 }
 0x1cc   : > { %v1271_v60 = vpop.permute.xlu1 %1270  ;;  %v1269_v28 = vpop.permute.xlu0 %1268 }
 0x1cd   : > { %v1279_v8 = vsel %vm1272_vm4, %v4794_v41, %v1269_v28  ;;  %v1280_v45 = vsel %vm1272_vm4, %v1269_v28, %v1271_v60  ;;  %v1590_v25 = vld [vmem:[#allocation2 + $0x1f0] sm:$0xff]  ;;  %v1589_v16 = vld [vmem:[#allocation2 + $0x80] sm:$0xff] }
 0x1ce   : > { %1295 = vst [vmem:[#allocation2 + $0x2c8] sm:$0xf0] %v1279_v8  ;;  %1296 = vst [vmem:[#allocation2 + $0x70] sm:$0xf0] %v1280_v45  ;;  %569 = vrot.lane.b32.xlu1 %v4755_v11, %s6433_s12  ;;  %v1662_v27 = vpack.c.bf16 %v1590_v25, %v1582_v22  ;;  %v1661_v7 = vpack.c.bf16 %v1589_v16, %v1581_v42 }
 0x1cf   : > { %567 = vrot.lane.b32.xlu0 %v4467_v4, %s6433_s12  ;;  %s6563_s12 = smov 17  }
 0x1d0   : > { %v1314_v43 = vpop.permute.xlu1 %1313  ;;  %1804 = vmatprep.subr.bf16.mxu0 %v1662_v27  ;;  %v1312_v63 = vpop.permute.xlu0 %1311 }
 0x1d1   : > { %v1322_v41 = vsel %vm6432_vm6, %v4804_v40, %v1312_v63  ;;  %v1323_v12 = vsel %vm6432_vm6, %v1312_v63, %v1314_v43  ;;  %1805 = vmatpush1.bf16.msra.mxu0 %v1661_v7  ;;  %vm6533_vm6 = vcmask 1039360  }
 0x1d2   : > { %1338 = vst [vmem:[#allocation2 + $0x308] sm:$0xf] %v1322_v41  ;;  %1339 = vst [vmem:[#allocation2 + $0x290] sm:$0xf] %v1323_v12  ;;  %612 = vrot.lane.b32.xlu1 %v4232_v10, %s6437_s11 }
 0x1d3   : > { %610 = vrot.lane.b32.xlu0 %v3959_v1, %s6437_s11  ;;  %s6565_s11 = smov 117  }
 0x1d4   : > { %v1357_v49 = vpop.permute.xlu1 %1356  ;;  %v1355_v21 = vpop.permute.xlu0 %1354 }
 0x1d5   : > { %v1365_v34 = vsel %vm1358_vm7, %v4816_v47, %v1355_v21  ;;  %v1366_v44 = vsel %vm1358_vm7, %v1355_v21, %v1357_v49  ;;  %v1600_v29 = vld [vmem:[#allocation2 + $0x70] sm:$0xff]  ;;  %v1599_v38 = vld [vmem:[#allocation2 + $0x2c8] sm:$0xff] }
 0x1d6   : > { %1381 = vst [vmem:[#allocation2 + $0x308] sm:$0xf0] %v1365_v34  ;;  %1382 = vst [vmem:[#allocation2 + $0x290] sm:$0xf0] %v1366_v44  ;;  %655 = vrot.lane.b32.xlu1 %v4755_v11, %s6430_s30 }
 0x1d7   : > { %653 = vrot.lane.b32.xlu0 %v4467_v4, %s6430_s30  ;;  %s6562_s30 = smov 18  }
 0x1d8   : > { %v4917_v40 = vpop.permute.xlu1 %909  ;;  %v908_v18 = vpop.permute.xlu0 %907 }
 0x1d9   : > { %v920_v36 = vsel %vm6507_vm2, %v4469_v46, %v908_v18  ;;  %v921_v50 = vsel %vm6508_vm1, %v908_v18, %v4917_v40  ;;  %vm6510_vm2 = vmmov %vm6509_vm0  ;;  %vm6511_vm1 = vcmask 973824  }
 0x1da   : > { %936 = vst [vmem:[#allocation2 + $0x2e8] sm:$0xf] %v920_v36  ;;  %937 = vst [vmem:[#allocation2 + $0x208] sm:$0xf] %v921_v50  ;;  %698 = vrot.lane.b32.xlu1 %v4232_v10, %s6435_s28 }
 0x1db   : > { %696 = vrot.lane.b32.xlu0 %v3959_v1, %s6435_s28  ;;  %s6564_s28 = smov 37  }
 0x1dc   : > { %v4927_v47 = vpop.permute.xlu1 %965  ;;  %v964_v57 = vpop.permute.xlu0 %963 }
 0x1dd   : > { %v976_v48 = vsel %vm6509_vm0, %v4479_v6, %v964_v57  ;;  %v977_v46 = vsel %vm6510_vm2, %v964_v57, %v4927_v47  ;;  %v1608_v20 = vld [vmem:[#allocation2 + $0x290] sm:$0xff]  ;;  %v1607_v61 = vld [vmem:[#allocation2 + $0x308] sm:$0xff]  ;;  %vm6512_vm0 = vmmov %vm6511_vm1  ;;  %vm6513_vm2 = vcmask 965632  }
 0x1de   : > { %992 = vst [vmem:[#allocation2 + $0x138] sm:$0xf] %v976_v48  ;;  %993 = vst [vmem:[#allocation2 + $0x2c0] sm:$0xf] %v977_v46  ;;  %392 = vrot.lane.b32.xlu1 %v4755_v11, %s6428_s29  ;;  %v1672_v24 = vpack.c.bf16 %v1608_v20, %v1600_v29  ;;  %v1671_v33 = vpack.c.bf16 %v1607_v61, %v1599_v38 }
 0x1df   : > { %390 = vrot.lane.b32.xlu0 %v4467_v4, %s6428_s29  ;;  %vm6514_vm5 = vmmov %vm6513_vm2  ;;  %s6561_s29 = smov 27  }
 0x1e0   : > { %v4937_v56 = vpop.permute.xlu1 %1008  ;;  %1843 = vmatprep.subr.bf16.mxu1 %v1672_v24  ;;  %v1007_v6 = vpop.permute.xlu0 %1006 }
 0x1e1   : > { %v1019_v53 = vsel %vm6511_vm1, %v4491_v31, %v1007_v6  ;;  %v1020_v59 = vsel %vm6512_vm0, %v1007_v6, %v4937_v56  ;;  %1844 = vmatpush1.bf16.msra.mxu1 %v1671_v33  ;;  %v1566_v8 = vld [vmem:[#allocation2 + $0x208] sm:$0xff]  ;;  %vm6515_vm1 = vcmask 957440  }
 0x1e2   : > { %1035 = vst [vmem:[#allocation2 + $0x138] sm:$0xf0] %v1019_v53  ;;  %1036 = vst [vmem:[#allocation2 + $0x2c0] sm:$0xf0] %v1020_v59  ;;  %440 = vrot.lane.b32.xlu1 %v4232_v10, %s6426_s17 }
 0x1e3   : > { %438 = vrot.lane.b32.xlu0 %v3959_v1, %s6426_s17  ;;  %vm6516_vm0 = vmmov %vm6515_vm1  ;;  %s6560_s17 = smov 19  }
 0x1e4   : > { %v1056_v13 = vpop.permute.xlu1 %1055  ;;  %v1054_v35 = vpop.permute.xlu0 %1053 }
 0x1e5   : > { %v1064_v60 = vsel %vm6513_vm2, %v4847_v58, %v1054_v35  ;;  %v1065_v28 = vsel %vm6514_vm5, %v1054_v35, %v1056_v13  ;;  %v1565_v58 = vld [vmem:[#allocation2 + $0x2e8] sm:$0xff]  ;;  %vm6518_vm5 = vcmask 318464  }
 0x1e6   : > { %1080 = vst [vmem:[#allocation2 + $0xc0] sm:$0xf] %v1064_v60  ;;  %1081 = vst [vmem:[#allocation2 + $0x128] sm:$0xf] %v1065_v28  ;;  %483 = vrot.lane.b32.xlu1 %v4755_v11, %s6424_s16 }
 0x1e7   : > { %481 = vrot.lane.b32.xlu0 %v4467_v4, %s6424_s16  ;;  %vm6519_vm2 = vmmov %vm6518_vm5  ;;  %s6559_s16 = smov 29  }
 0x1e8   : > { %v1099_v31 = vpop.permute.xlu1 %1098  ;;  %v1097_v22 = vpop.permute.xlu0 %1096 }
 0x1e9   : > { %v1107_v45 = vsel %vm6515_vm1, %v4857_v51, %v1097_v22  ;;  %v1108_v25 = vsel %vm6516_vm0, %v1097_v22, %v1099_v31  ;;  %v1574_v42 = vld [vmem:[#allocation2 + $0x2c0] sm:$0xff]  ;;  %v1573_v16 = vld [vmem:[#allocation2 + $0x138] sm:$0xff]  ;;  %vm6521_vm1 = vcmask 310272  }
 0x1ea   : > { %1123 = vst [vmem:[#allocation2 + $0xc0] sm:$0xf0] %v1107_v45  ;;  %1124 = vst [vmem:[#allocation2 + $0x128] sm:$0xf0] %v1108_v25  ;;  %526 = vrot.lane.b32.xlu1 %v4232_v10, %s6506_s23  ;;  %v1654_v4 = vpack.c.bf16 %v1574_v42, %v1566_v8  ;;  %v1653_v11 = vpack.c.bf16 %v1573_v16, %v1565_v58  ;;  %v1681_v51 = vld [vmem:[%s6517_s3] sm:$0xf] }
 0x1eb   : > { %524 = vrot.lane.b32.xlu0 %v3959_v1, %s6506_s23  ;;  %v2014_v10 = vld [vmem:[%s6520_s5] sm:$0xf]  ;;  %vm6522_vm0 = vmmov %vm6521_vm1  ;;  %s6569_s3 = smov 90   ;;  %s6571_s5 = smov 91  }
 0x1ec   : > { %v1142_v27 = vpop.permute.xlu1 %1141  ;;  %1806 = vmatprep.subr.bf16.mxu0 %v1654_v4  ;;  %v1140_v7 = vpop.permute.xlu0 %1139 }
 0x1ed   : > { %v1150_v43 = vsel %vm6518_vm5, %v4867_v19, %v1140_v7  ;;  %v1151_v63 = vsel %vm6519_vm2, %v1140_v7, %v1142_v27  ;;  %1807 = vmatpush1.bf16.msra.mxu0 %v1653_v11  ;;  %vm6523_vm5 = vcmask 728064  }
 0x1ee   : > { %1166 = vst [vmem:[#allocation2 + $0x160] sm:$0xf] %v1150_v43  ;;  %1167 = vst [vmem:[#allocation2 + $0x60] sm:$0xf] %v1151_v63 }
 0x1ef   : > { %1684 = vperm.xlu0 %3818, %v1681_v51   ;;  %vm6524_vm2 = vmmov %vm6523_vm5 }
 0x1f0   : > { %v1185_v41 = vpop.permute.xlu1 %1184  ;;  %v1183_v12 = vpop.permute.xlu0 %1182 }
 0x1f1   : > { %v1193_v49 = vsel %vm6521_vm1, %v4879_v52, %v1183_v12  ;;  %v1194_v21 = vsel %vm6522_vm0, %v1183_v12, %v1185_v41  ;;  %v1584_v52 = vld [vmem:[#allocation2 + $0x128] sm:$0xff]  ;;  %vm6525_vm1 = vcmask 89088   ;;  %v1583_v46 = vld [vmem:[#allocation2 + $0xc0] sm:$0xff] }
 0x1f2   : > { %1209 = vst [vmem:[#allocation2 + $0x160] sm:$0xf0] %v1193_v49  ;;  %1210 = vst [vmem:[#allocation2 + $0x60] sm:$0xf0] %v1194_v21 }
 0x1f3   : > { %2017 = vperm.xlu0 %3818, %v2014_v10   ;;  %vm6526_vm0 = vmmov %vm6525_vm1 }
 0x1f4   : > { %v4973_v19 = vpop.permute.xlu1 %737  ;;  %v736_v34 = vpop.permute.xlu0 %735 }
 0x1f5   : > { %v748_v44 = vsel %vm6523_vm5, %v4558_v32, %v736_v34  ;;  %v749_v18 = vsel %vm6524_vm2, %v736_v34, %v4973_v19  ;;  %vm6527_vm5 = vcmask 80896  }
 0x1f6   : > { %764 = vst [vmem:[#allocation2 + $0x98] sm:$0xf] %v748_v44  ;;  %765 = vst [vmem:[#allocation2 + $0xa0] sm:$0xf] %v749_v18 }
 0x1f7   : > { %vm6528_vm2 = vmmov %vm6527_vm5 }
 0x1f8   : > { %v4979_v36 = vpop.permute.xlu1 %780  ;;  %v779_v50 = vpop.permute.xlu0 %778 }
 0x1f9   : > { %v791_v57 = vsel %vm6525_vm1, %v4568_v39, %v779_v50  ;;  %v792_v29 = vsel %vm6526_vm0, %v779_v50, %v4979_v36  ;;  %v1592_v48 = vld [vmem:[#allocation2 + $0x60] sm:$0xff]  ;;  %vm6529_vm1 = vcmask 72704  }
 0x1fa   : > { %v1591_v20 = vld [vmem:[#allocation2 + $0x160] sm:$0xff]  ;;  %807 = vst [vmem:[#allocation2 + $0x98] sm:$0xf0] %v791_v57  ;;  %808 = vst [vmem:[#allocation2 + $0xa0] sm:$0xf0] %v792_v29  ;;  %v1664_v32 = vpack.c.bf16 %v1592_v48, %v1584_v52 }
 0x1fb   : > { %v1663_v38 = vpack.c.bf16 %v1591_v20, %v1583_v46  ;;  %vm6530_vm0 = vmmov %vm6529_vm1 }
 0x1fc   : > { %v4985_v61 = vpop.permute.xlu1 %823  ;;  %1845 = vmatprep.subr.bf16.mxu1 %v1664_v32  ;;  %v822_v24 = vpop.permute.xlu0 %821 }
 0x1fd   : > { %v834_v33 = vsel %vm6527_vm5, %v4578_v9, %v822_v24  ;;  %v835_v39 = vsel %vm6528_vm2, %v822_v24, %v4985_v61  ;;  %1846 = vmatpush1.bf16.msra.mxu1 %v1663_v38  ;;  %vm6531_vm5 = vcmask 7168  }
 0x1fe   : > { %850 = vst [vmem:[#allocation2 + $0x248] sm:$0xf] %v834_v33  ;;  %851 = vst [vmem:[#allocation2 + $0x340] sm:$0xf] %v835_v39 }
 0x1ff   : > { %vm6532_vm2 = vmmov %vm6531_vm5 }
 0x200   : > { %v4991_v6 = vpop.permute.xlu1 %866  ;;  %v865_v53 = vpop.permute.xlu0 %864 }
 0x201   : > { %v877_v59 = vsel %vm6529_vm1, %v4588_v15, %v865_v53  ;;  %v878_v13 = vsel %vm6530_vm0, %v865_v53, %v4991_v6  ;;  %v1550_v8 = vld [vmem:[#allocation2 + $0xa0] sm:$0xff]  ;;  %vm6534_vm1 = vmmov %vm6533_vm6  ;;  %v1549_v42 = vld [vmem:[#allocation2 + $0x98] sm:$0xff]  ;;  %vm6535_vm0 = vcmask 973824  }
 0x202   : > { %893 = vst [vmem:[#allocation2 + $0x248] sm:$0xf0] %v877_v59  ;;  %894 = vst [vmem:[#allocation2 + $0x340] sm:$0xf0] %v878_v13 }
 0x204   : > { %v914_v35 = vpop.permute.xlu1 %913  ;;  %v912_v60 = vpop.permute.xlu0 %911 }
 0x205   : > { %v922_v9 = vsel %vm6531_vm5, %v4917_v40, %v912_v60  ;;  %v923_v28 = vsel %vm6532_vm2, %v912_v60, %v914_v35  ;;  %vm6536_vm5 = vmmov %vm6535_vm0 }
 0x206   : > { %938 = vst [vmem:[#allocation2 + $0x2f8] sm:$0xf] %v922_v9  ;;  %939 = vst [vmem:[#allocation2 + $0x268] sm:$0xf] %v923_v28 }
 0x208   : > { %v970_v31 = vpop.permute.xlu1 %969  ;;  %v968_v22 = vpop.permute.xlu0 %967 }
 0x209   : > { %v978_v15 = vsel %vm6533_vm6, %v4927_v47, %v968_v22  ;;  %v979_v45 = vsel %vm6534_vm1, %v968_v22, %v970_v31  ;;  %v1558_v25 = vld [vmem:[#allocation2 + $0x340] sm:$0xff]  ;;  %v1557_v58 = vld [vmem:[#allocation2 + $0x248] sm:$0xff]  ;;  %vm6537_vm6 = vcmask 728064   ;;  %vm6539_vm1 = vcmask 89088  }
 0x20a   : > { %994 = vst [vmem:[#allocation2 + $0xe8] sm:$0xf] %v978_v15  ;;  %995 = vst [vmem:[#allocation2 + $0x1d8] sm:$0xf] %v979_v45  ;;  %v1646_v16 = vpack.c.bf16 %v1558_v25, %v1550_v8  ;;  %v1645_v4 = vpack.c.bf16 %v1557_v58, %v1549_v42 }
 0x20b   : > { %vm6538_vm2 = vmmov %vm6537_vm6 }
 0x20c   : > { %v1013_v40 = vpop.permute.xlu1 %1012  ;;  %1808 = vmatprep.subr.bf16.mxu0 %v1646_v16  ;;  %v1011_v11 = vpop.permute.xlu0 %1010 }
 0x20d   : > { %v1021_v27 = vsel %vm6535_vm0, %v4937_v56, %v1011_v11  ;;  %v1022_v7 = vsel %vm6536_vm5, %v1011_v11, %v1013_v40  ;;  %1809 = vmatpush1.bf16.msra.mxu0 %v1645_v4  ;;  %v1568_v56 = vld [vmem:[#allocation2 + $0x268] sm:$0xff]  ;;  %v1567_v34 = vld [vmem:[#allocation2 + $0x2f8] sm:$0xff]  ;;  %vm6540_vm0 = vmmov %vm6539_vm1  ;;  %vm6541_vm5 = vcmask 80896  }
 0x20e   : > { %1037 = vst [vmem:[#allocation2 + $0xe8] sm:$0xf0] %v1021_v27  ;;  %1038 = vst [vmem:[#allocation2 + $0x1d8] sm:$0xf0] %v1022_v7 }
 0x210   : > { %v5006_v47 = vpop.permute.xlu1 %565  ;;  %v564_v51 = vpop.permute.xlu0 %563 }
 0x211   : > { %v576_v43 = vsel %vm571_vm14, %v4647_v17, %v564_v51  ;;  %v577_v63 = vsel %vm571_vm14, %v564_v51, %v5006_v47 }
 0x212   : > { %592 = vst [vmem:[#allocation2 + $0x1a8] sm:$0xf] %v576_v43  ;;  %593 = vst [vmem:[#allocation2 + $0x158] sm:$0xf] %v577_v63 }
 0x214   : > { %v5012_v10 = vpop.permute.xlu1 %608  ;;  %v607_v41 = vpop.permute.xlu0 %606 }
 0x215   : > { %v619_v12 = vsel %vm614_vm13, %v4657_v14, %v607_v41  ;;  %v620_v49 = vsel %vm614_vm13, %v607_v41, %v5012_v10  ;;  %v1576_v21 = vld [vmem:[#allocation2 + $0x1d8] sm:$0xff]  ;;  %v1575_v44 = vld [vmem:[#allocation2 + $0xe8] sm:$0xff] }
 0x216   : > { %635 = vst [vmem:[#allocation2 + $0x1a8] sm:$0xf0] %v619_v12  ;;  %636 = vst [vmem:[#allocation2 + $0x158] sm:$0xf0] %v620_v49  ;;  %v1656_v17 = vpack.c.bf16 %v1576_v21, %v1568_v56  ;;  %v1655_v18 = vpack.c.bf16 %v1575_v44, %v1567_v34 }
 0x218   : > { %v5018_v50 = vpop.permute.xlu1 %651  ;;  %1847 = vmatprep.subr.bf16.mxu1 %v1656_v17 }
 0x219   : > { %v650_v52 = vpop.permute.xlu0 %649  ;;  %1848 = vmatpush1.bf16.msra.mxu1 %v1655_v18 }
 0x21a   : > { %v662_v57 = vsel %vm657_vm12, %v4667_v37, %v650_v52  ;;  %v663_v14 = vsel %vm657_vm12, %v650_v52, %v5018_v50 }
 0x21b   : > { %678 = vst [vmem:[#allocation2 + $0xe0] sm:$0xf] %v662_v57  ;;  %679 = vst [vmem:[#allocation2 + $0x130] sm:$0xf] %v663_v14 }
 0x21c   : > { %v5024_v29 = vpop.permute.xlu1 %694 }
 0x21d   : > { %v693_v48 = vpop.permute.xlu0 %692  ;;  %v1534_v53 = vld [vmem:[#allocation2 + $0x158] sm:$0xff]  ;;  %v1533_v35 = vld [vmem:[#allocation2 + $0x1a8] sm:$0xff] }
 0x21e   : > { %v705_v46 = vsel %vm700_vm8, %v4677_v26, %v693_v48  ;;  %v706_v20 = vsel %vm700_vm8, %v693_v48, %v5024_v29 }
 0x21f   : > { %721 = vst [vmem:[#allocation2 + $0xe0] sm:$0xf0] %v705_v46  ;;  %722 = vst [vmem:[#allocation2 + $0x130] sm:$0xf0] %v706_v20 }
 0x220   : > { %v742_v32 = vpop.permute.xlu1 %741 }
 0x221   : > { %v740_v38 = vpop.permute.xlu0 %739 }
 0x222   : > { %v750_v37 = vsel %vm6537_vm6, %v4973_v19, %v740_v38  ;;  %v751_v24 = vsel %vm6538_vm2, %v740_v38, %v742_v32  ;;  %vm6542_vm6 = vmmov %vm6541_vm5  ;;  %vm6543_vm2 = vcmask 72704  }
 0x223   : > { %766 = vst [vmem:[#allocation2 + $0x320] sm:$0xf] %v750_v37  ;;  %767 = vst [vmem:[#allocation2 + $0xf0] sm:$0xf] %v751_v24 }
 0x224   : > { %v785_v33 = vpop.permute.xlu1 %784 }
 0x225   : > { %v783_v39 = vpop.permute.xlu0 %782 }
 0x226   : > { %v793_v26 = vsel %vm6539_vm1, %v4979_v36, %v783_v39  ;;  %v794_v59 = vsel %vm6540_vm0, %v783_v39, %v785_v33  ;;  %v1542_v13 = vld [vmem:[#allocation2 + $0x130] sm:$0xff]  ;;  %v1541_v60 = vld [vmem:[#allocation2 + $0xe0] sm:$0xff]  ;;  %vm6544_vm1 = vmmov %vm6543_vm2  ;;  %vm6545_vm0 = vcmask 900096  }
 0x227   : > { %809 = vst [vmem:[#allocation2 + $0x320] sm:$0xf0] %v793_v26  ;;  %810 = vst [vmem:[#allocation2 + $0xf0] sm:$0xf0] %v794_v59  ;;  %v1638_v9 = vpack.c.bf16 %v1542_v13, %v1534_v53  ;;  %v1637_v28 = vpack.c.bf16 %v1541_v60, %v1533_v35 }
 0x228   : > { %v828_v19 = vpop.permute.xlu1 %827 }
 0x229   : > { %1810 = vmatprep.subr.bf16.mxu0 %v1638_v9  ;;  %v826_v31 = vpop.permute.xlu0 %825 }
 0x22a   : > { %v836_v22 = vsel %vm6541_vm5, %v4985_v61, %v826_v31  ;;  %v837_v8 = vsel %vm6542_vm6, %v826_v31, %v828_v19  ;;  %1811 = vmatpush1.bf16.msra.mxu0 %v1637_v28  ;;  %vm6546_vm5 = vmmov %vm6545_vm0 }
 0x22b   : > { %852 = vst [vmem:[#allocation2 + $0x2a8] sm:$0xf] %v836_v22  ;;  %853 = vst [vmem:[#allocation2 + $0x310] sm:$0xf] %v837_v8 }
 0x22c   : > { %v871_v36 = vpop.permute.xlu1 %870  ;;  %vm6547_vm6 = vmmov %vm6545_vm0 }
 0x22d   : > { %v869_v15 = vpop.permute.xlu0 %868 }
 0x22e   : > { %v879_v45 = vsel %vm6543_vm2, %v4991_v6, %v869_v15  ;;  %v880_v25 = vsel %vm6544_vm1, %v869_v15, %v871_v36  ;;  %v1552_v11 = vld [vmem:[#allocation2 + $0xf0] sm:$0xff]  ;;  %v1551_v51 = vld [vmem:[#allocation2 + $0x320] sm:$0xff]  ;;  %vm6548_vm2 = vmmov %vm6545_vm0  ;;  %vm6473_vm1 = vcmask 1043456  }
 0x22f   : > { %895 = vst [vmem:[#allocation2 + $0x2a8] sm:$0xf0] %v879_v45  ;;  %896 = vst [vmem:[#allocation2 + $0x310] sm:$0xf0] %v880_v25 }
 0x230   : > { %v5042_v42 = vpop.permute.xlu1 %388 }
 0x231   : > { %v387_v58 = vpop.permute.xlu0 %386 }
 0x232   : > { %v399_v61 = vsel %vm394_vm9, %v4700_v3, %v387_v58  ;;  %v400_v16 = vsel %vm394_vm9, %v387_v58, %v5042_v42 }
 0x233   : > { %415 = vst [vmem:[#allocation2 + $0x360] sm:$0xf] %v399_v61  ;;  %416 = vst [vmem:[#allocation2 + $0x328] sm:$0xf] %v400_v16 }
 0x234   : > { %v5048_v4 = vpop.permute.xlu1 %436 }
 0x235   : > { %v435_v40 = vpop.permute.xlu0 %434 }
 0x236   : > { %v447_v6 = vsel %vm6545_vm0, %v4710_v62, %v435_v40  ;;  %v448_v27 = vsel %vm6546_vm5, %v435_v40, %v5048_v4  ;;  %v1560_v7 = vld [vmem:[#allocation2 + $0x310] sm:$0xff]  ;;  %v1559_v43 = vld [vmem:[#allocation2 + $0x2a8] sm:$0xff]  ;;  %vm6584_vm0 = vcmask 154624  }
 0x237   : > { %463 = vst [vmem:[#allocation2 + $0x360] sm:$0xf0] %v447_v6  ;;  %464 = vst [vmem:[#allocation2 + $0x328] sm:$0xf0] %v448_v27  ;;  %v1648_v3 = vpack.c.bf16 %v1560_v7, %v1552_v11  ;;  %v1647_v63 = vpack.c.bf16 %v1559_v43, %v1551_v51 }
 0x238   : > { %v5054_v41 = vpop.permute.xlu1 %479  ;;  %vm6585_vm5 = vmmov %vm6584_vm0 }
 0x239   : > { %1849 = vmatprep.subr.bf16.mxu1 %v1648_v3  ;;  %v478_v56 = vpop.permute.xlu0 %477 }
 0x23a   : > { %v490_v12 = vsel %vm485_vm11, %v4720_v30, %v478_v56  ;;  %v491_v62 = vsel %vm485_vm11, %v478_v56, %v5054_v41  ;;  %1850 = vmatpush1.bf16.msra.mxu1 %v1647_v63 }
 0x23b   : > { %506 = vst [vmem:[#allocation2 + $0x148] sm:$0xf] %v490_v12  ;;  %507 = vst [vmem:[#allocation2 + $0x100] sm:$0xf] %v491_v62 }
 0x23c   : > { %v5060_v49 = vpop.permute.xlu1 %522 }
 0x23d   : > { %v521_v21 = vpop.permute.xlu0 %520 }
 0x23e   : > { %v533_v34 = vsel %vm528_vm15, %v4737_v23, %v521_v21  ;;  %v534_v44 = vsel %vm528_vm15, %v521_v21, %v5060_v49  ;;  %v1518_v48 = vld [vmem:[#allocation2 + $0x328] sm:$0xff]  ;;  %v1517_v32 = vld [vmem:[#allocation2 + $0x360] sm:$0xff] }
 0x23f   : > { %549 = vst [vmem:[#allocation2 + $0x148] sm:$0xf0] %v533_v34  ;;  %550 = vst [vmem:[#allocation2 + $0x100] sm:$0xf0] %v534_v44 }
 0x240   : > { %v570_v17 = vpop.permute.xlu1 %569 }
 0x241   : > { %v568_v18 = vpop.permute.xlu0 %567 }
 0x242   : > { %v578_v30 = vsel %vm571_vm14, %v5006_v47, %v568_v18  ;;  %v579_v52 = vsel %vm571_vm14, %v568_v18, %v570_v17  ;;  %v1881_v17 = vlaneseq }
 0x243   : > { %594 = vst [vmem:[#allocation2 + $0x2e0] sm:$0xf] %v578_v30  ;;  %595 = vst [vmem:[#allocation2 + $0x278] sm:$0xf] %v579_v52 }
 0x244   : > { %v613_v57 = vpop.permute.xlu1 %612  ;;  %v1882_v30 = vshrl.u32 %v1881_v17, 7  ;;  %v2000_v17 = vld [vmem:[%s6558_s4] sm:$0xf]  ;;  %s6570_s4 = smov 100  }
 0x245   : > { %v611_v14 = vpop.permute.xlu0 %610 }
 0x246   : > { %v621_v23 = vsel %vm614_vm13, %v5012_v10, %v611_v14  ;;  %v622_v46 = vsel %vm614_vm13, %v611_v14, %v613_v57  ;;  %v1526_v20 = vld [vmem:[#allocation2 + $0x100] sm:$0xff]  ;;  %v1525_v38 = vld [vmem:[#allocation2 + $0x148] sm:$0xff] }
 0x247   : > { %637 = vst [vmem:[#allocation2 + $0x2e0] sm:$0xf0] %v621_v23  ;;  %638 = vst [vmem:[#allocation2 + $0x278] sm:$0xf0] %v622_v46  ;;  %v1630_v37 = vpack.c.bf16 %v1526_v20, %v1518_v48  ;;  %v1629_v24 = vpack.c.bf16 %v1525_v38, %v1517_v32  ;;  %v1883_v48 = vsub.s32 0, %v1882_v30  ;;  %v1887_v23 = vsub.s32 1, %v1882_v30 }
 0x248   : > { %v656_v47 = vpop.permute.xlu1 %655  ;;  %v366_v46 = vld [vmem:[%s6549_s1] sm:$0xff]  ;;  %s6567_s1 = smov 118  }
 0x249   : > { %1812 = vmatprep.subr.bf16.mxu0 %v1630_v37  ;;  %v654_v33 = vpop.permute.xlu0 %653  ;;  %v5107_v37 = vrot.slane %v366_v46, %v1883_v48 }
 0x24a   : > { %v664_v39 = vsel %vm657_vm12, %v5018_v50, %v654_v33  ;;  %v665_v53 = vsel %vm657_vm12, %v654_v33, %v656_v47  ;;  %1813 = vmatpush1.bf16.msra.mxu0 %v1629_v24  ;;  %v5109_v24 = vrot.slane %v366_v46, %v1887_v23  ;;  %v1891_v47 = vsub.s32 2, %v1882_v30 }
 0x24b   : > { %680 = vst [vmem:[#allocation2 + $0x1e8] sm:$0xf] %v664_v39  ;;  %681 = vst [vmem:[#allocation2 + $0x38] sm:$0xf] %v665_v53  ;;  %v5075_v10 = vpop.f32.mrf.mxu0  ;;  %v1895_v53 = vsub.s32 3, %v1882_v30 }
 0x24c   : > { %v699_v26 = vpop.permute.xlu1 %698  ;;  %6550 = vst [vmem:[#allocation10_spill] sm:$0xff] %v5107_v37  ;;  %6551 = vst [vmem:[#allocation11_spill] sm:$0xff] %v5109_v24  ;;  %v5111_v39 = vrot.slane %v366_v46, %v1891_v47 }
 0x24d   : > { %v697_v59 = vpop.permute.xlu0 %696  ;;  %3767 = vmatmul.mubr.msk.bf16.vlgmr.msra.gmra.mxu0 %vm1687_vm10, %v4725_v54  ;;  %v5082_v60 = vpop.f32.mrf.mxu0 }
 0x24e   : > { %v707_v13 = vsel %vm700_vm8, %v5024_v29, %v697_v59  ;;  %v708_v35 = vsel %vm700_vm8, %v697_v59, %v699_v26  ;;  %3424 = vmatprep.mubr.bf16.mxu0 %v6441_v55  ;;  %v1536_v8 = vld [vmem:[#allocation2 + $0x278] sm:$0xff]  ;;  %v1535_v25 = vld [vmem:[#allocation2 + $0x2e0] sm:$0xff]  ;;  %6552 = vst [vmem:[#allocation12_spill] sm:$0xff] %v5111_v39 }
 0x24f   : > { %723 = vst [vmem:[#allocation2 + $0x1e8] sm:$0xf0] %v707_v13  ;;  %724 = vst [vmem:[#allocation2 + $0x38] sm:$0xf0] %v708_v35  ;;  %v1754_v50 = vpop.f32.mrf.mxu0  ;;  %v1899_v35 = vsub.s32 4, %v1882_v30 }
 0x250   : > { %v393_v9 = vpop.permute.xlu1 %392  ;;  %v5115_v50 = vrot.slane %v366_v46, %v1895_v53 }
 0x251   : > { %v391_v28 = vpop.permute.xlu0 %390  ;;  %v1755_v54 = vpop.f32.mrf.mxu0 }
 0x252   : > { %v401_v19 = vsel %vm394_vm9, %v5042_v42, %v391_v28  ;;  %v402_v31 = vsel %vm394_vm9, %v391_v28, %v393_v9  ;;  %6553 = vst [vmem:[#allocation13_spill] sm:$0xff] %v5115_v50  ;;  %v5120_v28 = vrot.slane %v366_v46, %v1899_v35 }
 0x253   : > { %417 = vst [vmem:[#allocation2 + $0x40] sm:$0xf] %v401_v19  ;;  %418 = vst [vmem:[#allocation2 + $0x378] sm:$0xf] %v402_v31 }
 0x254   : > { %v441_v29 = vpop.permute.xlu1 %440  ;;  %6554 = vst [vmem:[#allocation14_spill] sm:$0xff] %v5120_v28 }
 0x255   : > { %v439_v22 = vpop.permute.xlu0 %438 }
 0x256   : > { %v449_v36 = vsel %vm6547_vm6, %v5048_v4, %v439_v22  ;;  %v450_v15 = vsel %vm6548_vm2, %v439_v22, %v441_v29  ;;  %v1544_v45 = vld [vmem:[#allocation2 + $0x38] sm:$0xff]  ;;  %v1543_v58 = vld [vmem:[#allocation2 + $0x1e8] sm:$0xff]  ;;  %v1903_v22 = vsub.s32 5, %v1882_v30  ;;  %vm6586_vm6 = vmmov %vm6584_vm0  ;;  %vm6587_vm2 = vcmask 146432  }
 0x257   : > { %465 = vst [vmem:[#allocation2 + $0x40] sm:$0xf0] %v449_v36  ;;  %466 = vst [vmem:[#allocation2 + $0x378] sm:$0xf0] %v450_v15  ;;  %v1640_v61 = vpack.c.bf16 %v1544_v45, %v1536_v8  ;;  %v1639_v42 = vpack.c.bf16 %v1543_v58, %v1535_v25  ;;  %v1907_v58 = vsub.s32 6, %v1882_v30 }
 0x258   : > { %v484_v16 = vpop.permute.xlu1 %483  ;;  %v5126_v25 = vrot.slane %v366_v46, %v1903_v22 }
 0x259   : > { %1851 = vmatprep.subr.bf16.mxu1 %v1640_v61  ;;  %v482_v40 = vpop.permute.xlu0 %481 }
 0x25a   : > { %v492_v11 = vsel %vm485_vm11, %v5054_v41, %v482_v40  ;;  %v493_v6 = vsel %vm485_vm11, %v482_v40, %v484_v16  ;;  %1852 = vmatpush1.bf16.msra.mxu1 %v1639_v42  ;;  %6555 = vst [vmem:[#allocation15_spill] sm:$0xff] %v5126_v25  ;;  %v1911_v40 = vsub.s32 7, %v1882_v30 }
 0x25b   : > { %508 = vst [vmem:[#allocation2 + $0x58] sm:$0xf] %v492_v11  ;;  %509 = vst [vmem:[#allocation2 + $0x2d8] sm:$0xf] %v493_v6  ;;  %v5130_v11 = vrot.slane %v366_v46, %v1907_v58 }
 0x25c   : > { %v527_v4 = vpop.permute.xlu1 %526  ;;  %v1791_v43 = vpop.f32.mrf.mxu1 }
 0x25d   : > { %v525_v27 = vpop.permute.xlu0 %524  ;;  %6556 = vst [vmem:[#allocation16_spill] sm:$0xff] %v5130_v11 }
 0x25e   : > { %v535_v7 = vsel %vm528_vm15, %v5060_v49, %v525_v27  ;;  %v536_v51 = vsel %vm528_vm15, %v525_v27, %v527_v4  ;;  %v1793_v3 = vpop.f32.mrf.mxu1  ;;  %v1520_v12 = vld [vmem:[#allocation2 + $0x378] sm:$0xff]  ;;  %v1519_v62 = vld [vmem:[#allocation2 + $0x40] sm:$0xff] }
 0x25f   : > { %551 = vst [vmem:[#allocation2 + $0x58] sm:$0xf0] %v535_v7  ;;  %552 = vst [vmem:[#allocation2 + $0x2d8] sm:$0xf0] %v536_v51  ;;  %v3845_v49 = vld [vmem:[%s6495_s2] sm:$0x3]  ;;  %v5133_v51 = vrot.slane %v366_v46, %v1911_v40 }
 0x260   : > { %v1795_v63 = vpop.f32.mrf.mxu1  ;;  %s6568_s2 = smov 99  }
 0x261   : > { %6557 = vst [vmem:[#allocation17_spill] sm:$0xff] %v5133_v51 }
 0x262   : > { %v1796_v56 = vpop.f32.mrf.mxu1 }
 0x266   : > { %v1528_v41 = vld [vmem:[#allocation2 + $0x2d8] sm:$0xff] }
 0x267   : > { %v1527_v21 = vld [vmem:[#allocation2 + $0x58] sm:$0xff]  ;;  %v1632_v34 = vpack.c.bf16 %v1528_v41, %v1520_v12 }
 0x268   : > { %v1631_v44 = vpack.c.bf16 %v1527_v21, %v1519_v62 }
 0x269   : > { %1853 = vmatprep.subr.bf16.mxu1 %v1632_v34 }
 0x26a   : > { %1854 = vmatpush1.bf16.msra.mxu1 %v1631_v44  ;;  %v1685_v14 = vpop.permute.xlu0 %1684 }
 0x26b   : > { %v1751_v32 = vadd.f32 %v5075_v10, %v1685_v14  ;;  %v1753_v38 = vadd.f32 %v5082_v60, %v1685_v14  ;;  %v1792_v33 = vadd.f32 %v1791_v43, %v1685_v14  ;;  %v1794_v13 = vadd.f32 %v1793_v3, %v1685_v14 }
 0x26d   : > { %3769 = vmatmul.mubr.msk.bf16.vlgmr.msra.gmra.mxu1 %vm1687_vm10, %v3845_v49  ;;  %v1921_v26 = vmul.f32 %v5107_v37, %v1751_v32  ;;  %v1922_v59 = vmul.f32 %v5109_v24, %v1753_v38  ;;  %v1923_v10 = vmul.f32 %v5111_v39, %v1792_v33  ;;  %v1924_v54 = vmul.f32 %v5115_v50, %v1794_v13 }
 0x26e   : > { %3465 = vmatprep.mubr.bf16.mxu1 %v6441_v55 }
 0x26f   : > { %v1930_v60 = vsel %vm6473_vm1, %v1921_v26, 0.0  ;;  %v1931_v9 = vsel %vm6473_vm1, %v1922_v59, 0.0  ;;  %v1933_v29 = vsel %vm6473_vm1, %v1923_v10, 0.0  ;;  %v1935_v15 = vsel %vm6473_vm1, %v1924_v54, 0.0 }
 0x270   : > { %v1932_v19 = vadd.f32 %v1931_v9, %v1930_v60 }
 0x272   : > { %v1934_v8 = vadd.f32 %v1933_v29, %v1932_v19 }
 0x274   : > { %v1936_v61 = vadd.f32 %v1935_v15, %v1934_v8 }
 0x30d   : > { %v1832_v18 = vpop.f32.mrf.mxu0 }
 0x30e   : > { %v1833_v31 = vadd.f32 %v1832_v18, %v1685_v14 }
 0x30f   : > { %v1834_v52 = vpop.f32.mrf.mxu0 }
 0x310   : > { %v1925_v36 = vmul.f32 %v5120_v28, %v1833_v31  ;;  %v1835_v45 = vadd.f32 %v1834_v52, %v1685_v14 }
 0x311   : > { %v1836_v57 = vpop.f32.mrf.mxu0 }
 0x312   : > { %v1937_v42 = vsel %vm6473_vm1, %v1925_v36, 0.0  ;;  %v1926_v16 = vmul.f32 %v5126_v25, %v1835_v45 }
 0x313   : > { %v1837_v20 = vpop.f32.mrf.mxu0  ;;  %v1938_v6 = vadd.f32 %v1937_v42, %v1936_v61 }
 0x314   : > { %v1939_v27 = vsel %vm6473_vm1, %v1926_v16, 0.0 }
 0x315   : > { %v1940_v56 = vadd.f32 %v1939_v27, %v1938_v6 }
 0x32d   : > { %v1873_v4 = vpop.f32.mrf.mxu1 }
 0x32e   : > { %v1874_v7 = vadd.f32 %v1873_v4, %v1685_v14 }
 0x32f   : > { %v1875_v43 = vpop.f32.mrf.mxu1 }
 0x330   : > { %v1927_v3 = vmul.f32 %v5130_v11, %v1874_v7  ;;  %v1876_v63 = vadd.f32 %v1875_v43, %v1685_v14 }
 0x331   : > { %v1877_v12 = vpop.f32.mrf.mxu1 }
 0x332   : > { %v1941_v41 = vsel %vm6473_vm1, %v1927_v3, 0.0  ;;  %v1928_v62 = vmul.f32 %v5133_v51, %v1876_v63  ;;  %v3883_v63 = vmov 0.0  }
 0x333   : > { %v1942_v21 = vadd.f32 %v1941_v41, %v1940_v56  ;;  %v1878_v34 = vpop.f32.mrf.mxu1  ;;  %2044 = vst [vmem:[#allocation3] sm:$0xf] %v3883_v63  ;;  %2045 = vst [vmem:[#allocation3 + $0x24] sm:$0xf] %v3883_v63  ;;  %v2018_v56 = vpop.permute.xlu0 %2017 }
 0x334   : > { %v1943_v44 = vsel %vm6473_vm1, %v1928_v62, 0.0 }
 0x335   : > { %v1944_v49 = vadd.f32 %v1943_v44, %v1942_v21 }
 0x337   : > { %1945 = vadd.xlane.f32.xlu1 %v1944_v49 }
 0x348   : > { %2003 = vperm.xlu1 %3819, %v2000_v17  }
 0x3c0   : > { %v1946_v18 = vpop.xlane.xlu1 %1945 }
 0x3c1   : > { %v1947_v30 = vmul.f32 0.001953125, %v1946_v18 }
 0x3c3   : > { %v1948_v52 = vsub.f32 %v1921_v26, %v1947_v30  ;;  %v1949_v57 = vsub.f32 %v1922_v59, %v1947_v30  ;;  %v1950_v14 = vsub.f32 %v1923_v10, %v1947_v30  ;;  %v1951_v48 = vsub.f32 %v1924_v54, %v1947_v30 }
 0x3c4   : > { %v1952_v23 = vsub.f32 %v1925_v36, %v1947_v30  ;;  %v1953_v46 = vsub.f32 %v1926_v16, %v1947_v30  ;;  %v1954_v33 = vsub.f32 %v1927_v3, %v1947_v30  ;;  %v1955_v26 = vsub.f32 %v1928_v62, %v1947_v30  ;;  %v2004_v34 = vpop.permute.xlu1 %2003 }
 0x3c5   : > { %v1956_v20 = vmul.f32 %v1948_v52, %v5107_v37  ;;  %v1957_v32 = vmul.f32 %v1949_v57, %v5109_v24  ;;  %v1958_v38 = vmul.f32 %v1950_v14, %v5111_v39  ;;  %v1959_v47 = vmul.f32 %v1951_v48, %v5115_v50 }
 0x3c6   : > { %v1960_v53 = vmul.f32 %v1952_v23, %v5120_v28  ;;  %v1961_v59 = vmul.f32 %v1953_v46, %v5126_v25  ;;  %v1962_v54 = vmul.f32 %v1954_v33, %v5130_v11  ;;  %v1963_v36 = vmul.f32 %v1955_v26, %v5133_v51 }
 0x3c7   : > { %v1964_v13 = vmul.f32 %v1956_v20, %v1956_v20  ;;  %v1965_v35 = vmul.f32 %v1957_v32, %v1957_v32  ;;  %v1966_v60 = vmul.f32 %v1958_v38, %v1958_v38  ;;  %v1967_v10 = vmul.f32 %v1959_v47, %v1959_v47 }
 0x3c8   : > { %v1968_v29 = vmul.f32 %v1960_v53, %v1960_v53  ;;  %v1969_v15 = vmul.f32 %v1961_v59, %v1961_v59  ;;  %v1970_v61 = vmul.f32 %v1962_v54, %v1962_v54  ;;  %v1971_v40 = vmul.f32 %v1963_v36, %v1963_v36 }
 0x3c9   : > { %v1972_v9 = vsel %vm6473_vm1, %v1964_v13, 0.0  ;;  %v1973_v19 = vsel %vm6473_vm1, %v1965_v35, 0.0  ;;  %v1975_v22 = vsel %vm6473_vm1, %v1966_v60, 0.0  ;;  %v1977_v45 = vsel %vm6473_vm1, %v1967_v10, 0.0 }
 0x3ca   : > { %v1974_v31 = vadd.f32 %v1973_v19, %v1972_v9  ;;  %v1979_v42 = vsel %vm6473_vm1, %v1968_v29, 0.0  ;;  %v1981_v6 = vsel %vm6473_vm1, %v1969_v15, 0.0  ;;  %v1983_v27 = vsel %vm6473_vm1, %v1970_v61, 0.0 }
 0x3cb   : > { %v1985_v43 = vsel %vm6473_vm1, %v1971_v40, 0.0 }
 0x3cc   : > { %v1976_v8 = vadd.f32 %v1975_v22, %v1974_v31 }
 0x3ce   : > { %v1978_v58 = vadd.f32 %v1977_v45, %v1976_v8 }
 0x3d0   : > { %v1980_v16 = vadd.f32 %v1979_v42, %v1978_v58 }
 0x3d2   : > { %v1982_v4 = vadd.f32 %v1981_v6, %v1980_v16 }
 0x3d4   : > { %v1984_v7 = vadd.f32 %v1983_v27, %v1982_v4 }
 0x3d6   : > { %v1986_v3 = vadd.f32 %v1985_v43, %v1984_v7 }
 0x3d8   : > { %1987 = vadd.xlane.f32.xlu0 %v1986_v3 }
 0x461   : > { %v1988_v12 = vpop.xlane.xlu0 %1987 }
 0x462   : > { %v1989_v41 = vmul.f32 0.001953125, %v1988_v12 }
 0x464   : > { %v1990_v62 = vadd.f32 1e-05, %v1989_v41 }
 0x466   : > { %3840 = vrsqrt.f32 %v1990_v62 }
 0x473   : > { %v3841_v21 = vpop.eup %3840 }
 0x474   : > { %v1992_v44 = vmul.f32 %v3841_v21, %v1956_v20  ;;  %v1993_v49 = vmul.f32 %v3841_v21, %v1957_v32  ;;  %v1994_v17 = vmul.f32 %v3841_v21, %v1958_v38  ;;  %v1995_v18 = vmul.f32 %v3841_v21, %v1959_v47 }
 0x475   : > { %v1996_v30 = vmul.f32 %v3841_v21, %v1960_v53  ;;  %v1997_v52 = vmul.f32 %v3841_v21, %v1961_v59  ;;  %v1998_v57 = vmul.f32 %v3841_v21, %v1962_v54  ;;  %v1999_v14 = vmul.f32 %v3841_v21, %v1963_v36 }
 0x476   : > { %v2006_v48 = vmul.f32 %v2004_v34, %v1992_v44  ;;  %v2007_v23 = vmul.f32 %v2004_v34, %v1993_v49  ;;  %v2008_v46 = vmul.f32 %v2004_v34, %v1994_v17  ;;  %v2009_v33 = vmul.f32 %v2004_v34, %v1995_v18 }
 0x477   : > { %v2010_v13 = vmul.f32 %v2004_v34, %v1996_v30  ;;  %v2011_v35 = vmul.f32 %v2004_v34, %v1997_v52  ;;  %v2012_v60 = vmul.f32 %v2004_v34, %v1998_v57  ;;  %v2013_v26 = vmul.f32 %v2004_v34, %v1999_v14 }
 0x478   : > { %v2020_v10 = vadd.f32 %v2018_v56, %v2006_v48  ;;  %v2021_v9 = vadd.f32 %v2018_v56, %v2007_v23  ;;  %v2022_v19 = vadd.f32 %v2018_v56, %v2008_v46  ;;  %v2023_v31 = vadd.f32 %v2018_v56, %v2009_v33 }
 0x479   : > { %v2024_v20 = vadd.f32 %v2018_v56, %v2010_v13  ;;  %v2025_v32 = vadd.f32 %v2018_v56, %v2011_v35  ;;  %v2026_v38 = vadd.f32 %v2018_v56, %v2012_v60  ;;  %v2027_v47 = vadd.f32 %v2018_v56, %v2013_v26 }
 0x47a   : > { %v2028_v53 = vmax.f32 %v2020_v10, 0.0  ;;  %v2029_v59 = vmax.f32 %v2021_v9, 0.0  ;;  %v2030_v54 = vmax.f32 %v2022_v19, 0.0  ;;  %v2031_v29 = vmax.f32 %v2023_v31, 0.0 }
 0x47b   : > { %v2032_v22 = vmax.f32 %v2024_v20, 0.0  ;;  %v2033_v8 = vmax.f32 %v2025_v32, 0.0  ;;  %v2034_v36 = vmax.f32 %v2026_v38, 0.0  ;;  %v2035_v15 = vmax.f32 %v2027_v47, 0.0 }
 0x47c   : > { %v2036_v45 = vmul.f32 %v2028_v53, %v5107_v37  ;;  %v2037_v58 = vmul.f32 %v2029_v59, %v5109_v24  ;;  %v2038_v61 = vmul.f32 %v2030_v54, %v5111_v39  ;;  %v2039_v42 = vmul.f32 %v2031_v29, %v5115_v50 }
 0x47d   : > { %v2040_v16 = vmul.f32 %v2032_v22, %v5120_v28  ;;  %v2041_v40 = vmul.f32 %v2033_v8, %v5126_v25  ;;  %v2042_v6 = vmul.f32 %v2034_v36, %v5130_v11  ;;  %v2043_v4 = vmul.f32 %v2035_v15, %v5133_v51 }
 0x47e   : > { %v2054_v27 = vcombine.low %v2036_v45, %v2037_v58  ;;  %v2055_v7 = vcombine.low %v2038_v61, %v2039_v42 }
 0x47f   : > { %v2056_v43 = vcombine.low %v2040_v16, %v2041_v40  ;;  %v2057_v3 = vcombine.low %v2042_v6, %v2043_v4 }
 0x480   : > { %2062 = vst [vmem:[#allocation3 + $0x4] sm:$0xff] %v2054_v27  ;;  %2063 = vst [vmem:[#allocation3 + $0xc] sm:$0xff] %v2055_v7 }
 0x481   : > { %2064 = vst [vmem:[#allocation3 + $0x14] sm:$0xff] %v2056_v43  ;;  %2065 = vst [vmem:[#allocation3 + $0x1c] sm:$0xff] %v2057_v3 }
 0x487   : > { %v5166_v63 = vld [vmem:[#allocation3] sm:$0xff]  ;;  %v5168_v56 = vld [vmem:[#allocation3 + $0x8] sm:$0xff] }
 0x488   : > { %v5170_v12 = vld [vmem:[#allocation3 + $0x10] sm:$0xff]  ;;  %v5172_v41 = vld [vmem:[#allocation3 + $0x18] sm:$0xff]  ;;  %v5174_v62 = vld [vmem:[#allocation3 + $0x20] sm:$0xff]  ;;  %2635 = vst [vmem:[#allocation2 + $0x2b8] sm:$0xf0] %v5166_v63  ;;  %2942 = vrot.lane.b32.xlu0 %v5168_v56, %s6559_s16  ;;  %3066 = vrot.lane.b32.xlu1 %v5168_v56, %s6560_s17  ;;  %v5184_v21 = vcombine.low %v5168_v56, %v5168_v56  ;;  %v5310_v17 = vcombine.high %v5168_v56, %v5168_v56 }
 0x489   : > { %2637 = vst [vmem:[#allocation2 + $0x178] sm:$0xf0] %v5168_v56  ;;  %2639 = vst [vmem:[#allocation2 + $0x2e8] sm:$0xf0] %v5170_v12  ;;  %v5190_v34 = vcombine.low %v5170_v12, %v5170_v12  ;;  %v5194_v44 = vcombine.low %v5172_v41, %v5172_v41  ;;  %v5199_v49 = vcombine.low %v5174_v62, %v5174_v62 }
 0x48a   : > { %2641 = vst [vmem:[#allocation2 + $0x2f8] sm:$0xf0] %v5172_v41  ;;  %2636 = vst [vmem:[#allocation2 + $0x228] sm:$0xf0] %v5184_v21  ;;  %v5314_v18 = vcombine.high %v5166_v63, %v5166_v63  ;;  %v5362_v60 = vcombine.high %v5170_v12, %v5170_v12  ;;  %v5470_v7 = vcombine.low %v5166_v63, %v5166_v63 }
 0x48b   : > { %2638 = vst [vmem:[#allocation2 + $0x200] sm:$0xf0] %v5190_v34  ;;  %2640 = vst [vmem:[#allocation2 + $0x208] sm:$0xf0] %v5194_v44 }
 0x48c   : > { %3026 = vrot.lane.b32.xlu0 %v5168_v56, %s6561_s29  ;;  %3106 = vrot.lane.b32.xlu1 %v5166_v63, %s6562_s30  ;;  %2642 = vst [vmem:[#allocation2 + $0x268] sm:$0xf0] %v5199_v49  ;;  %6575 = vst [vmem:[#allocation18_spill] sm:$0xff] %v5362_v60 }
 0x490   : > { %3114 = vrot.lane.b32.xlu0 %v5170_v12, %s6562_s30  ;;  %3110 = vrot.lane.b32.xlu1 %v5168_v56, %s6562_s30 }
 0x494   : > { %2938 = vrot.lane.b32.xlu0 %v5166_v63, %s6559_s16  ;;  %3150 = vrot.lane.b32.xlu1 %v5168_v56, %s6563_s12 }
 0x498   : > { %3022 = vrot.lane.b32.xlu0 %v5166_v63, %s6561_s29  ;;  %2898 = vrot.lane.b32.xlu1 %v5168_v56, %s6564_s28 }
 0x49c   : > { %2774 = vrot.lane.b32.xlu0 %v5168_v56, %s6565_s11  ;;  %2982 = vrot.lane.b32.xlu1 %v5168_v56, %s6566_s0 }
 0x4a0   : > { %2858 = vrot.lane.b32.xlu0 %v5168_v56, %s6489_s20  ;;  %3070 = vrot.lane.b32.xlu1 %v5170_v12, %s6560_s17 }
 0x4a4   : > { %2946 = vrot.lane.b32.xlu0 %v5170_v12, %s6559_s16  ;;  %3154 = vrot.lane.b32.xlu1 %v5170_v12, %s6563_s12 }
 0x4a8   : > { %3030 = vrot.lane.b32.xlu0 %v5170_v12, %s6561_s29  ;;  %2730 = vrot.lane.b32.xlu1 %v5168_v56, %s6567_s1 }
 0x4ac   : > { %2770 = vrot.lane.b32.xlu0 %v5166_v63, %s6565_s11  ;;  %2814 = vrot.lane.b32.xlu1 %v5168_v56, %s6488_s21 }
 0x4b0   : > { %2854 = vrot.lane.b32.xlu0 %v5166_v63, %s6489_s20  ;;  %2902 = vrot.lane.b32.xlu1 %v5170_v12, %s6564_s28 }
 0x4b4   : > { %2593 = vrot.lane.b32.xlu0 %v5168_v56, %s6490_s24  ;;  %2986 = vrot.lane.b32.xlu1 %v5170_v12, %s6566_s0 }
 0x4b8   : > { %2690 = vrot.lane.b32.xlu0 %v5168_v56, %s6492_s25  ;;  %2646 = vrot.lane.b32.xlu1 %v5168_v56, %s6491_s22 }
 0x4bc   : > { %2778 = vrot.lane.b32.xlu0 %v5170_v12, %s6565_s11  ;;  %2734 = vrot.lane.b32.xlu1 %v5170_v12, %s6567_s1 }
 0x4c0   : > { %2862 = vrot.lane.b32.xlu0 %v5170_v12, %s6489_s20  ;;  %2818 = vrot.lane.b32.xlu1 %v5170_v12, %s6488_s21 }
 0x4c4   : > { %2465 = vrot.lane.b32.xlu0 %v5166_v63, %s6494_s27  ;;  %2589 = vrot.lane.b32.xlu1 %v5166_v63, %s6490_s24 }
 0x4c8   : > { %2549 = vrot.lane.b32.xlu0 %v5166_v63, %s6497_s19  ;;  %2686 = vrot.lane.b32.xlu1 %v5166_v63, %s6492_s25 }
 0x4cc   : > { %2650 = vrot.lane.b32.xlu0 %v5170_v12, %s6491_s22  ;;  %2425 = vrot.lane.b32.xlu1 %v5168_v56, %s6493_s26 }
 0x4d0   : > { %2421 = vrot.lane.b32.xlu0 %v5166_v63, %s6493_s26  ;;  %2509 = vrot.lane.b32.xlu1 %v5168_v56, %s6496_s15 }
 0x4d4   : > { %2505 = vrot.lane.b32.xlu0 %v5166_v63, %s6496_s15  ;;  %2597 = vrot.lane.b32.xlu1 %v5170_v12, %s6490_s24 }
 0x4d8   : > { %2297 = vrot.lane.b32.xlu0 %v5166_v63, %s6568_s2  ;;  %2694 = vrot.lane.b32.xlu1 %v5170_v12, %s6492_s25 }
 0x4dc   : > { %2381 = vrot.lane.b32.xlu0 %v5166_v63, %s6569_s3  ;;  %2257 = vrot.lane.b32.xlu1 %v5168_v56, %s6570_s4 }
 0x4e0   : > { %2469 = vrot.lane.b32.xlu0 %v5168_v56, %s6494_s27  ;;  %2341 = vrot.lane.b32.xlu1 %v5168_v56, %s6571_s5 }
 0x4e4   : > { %2553 = vrot.lane.b32.xlu0 %v5168_v56, %s6497_s19  ;;  %2429 = vrot.lane.b32.xlu1 %v5170_v12, %s6493_s26 }
 0x4e8   : > { %2253 = vrot.lane.b32.xlu0 %v5166_v63, %s6570_s4  ;;  %2513 = vrot.lane.b32.xlu1 %v5170_v12, %s6496_s15 }
 0x4ec   : > { %2337 = vrot.lane.b32.xlu0 %v5166_v63, %s6571_s5  ;;  %2084 = vrot.lane.b32.xlu1 %v5168_v56, %s6572_s13 }
 0x4f0   : > { %2129 = vrot.lane.b32.xlu0 %v5166_v63, %s6573_s10  ;;  %2173 = vrot.lane.b32.xlu1 %v5168_v56, %s6574_s14 }
 0x4f4   : > { %3068 = vrot.lane.b32.xlu0 %v5310_v17, %s6560_s17  ;;  %3064 = vrot.lane.b32.xlu1 %v5314_v18, %s6560_s17 }
 0x4f8   : > { %3108 = vrot.lane.b32.xlu0 %v5184_v21, %s6562_s30  ;;  %2940 = vrot.lane.b32.xlu1 %v5184_v21, %s6559_s16 }
 0x4fa   : > { %v5324_v30 = vpop.permute.xlu0 %2942  ;;  %v5326_v52 = vpop.permute.xlu1 %3066 }
 0x4fc   : > { %3148 = vrot.lane.b32.xlu0 %v5314_v18, %s6563_s12  ;;  %3024 = vrot.lane.b32.xlu1 %v5184_v21, %s6561_s29 }
 0x4fe   : > { %v5332_v57 = vpop.permute.xlu0 %3026  ;;  %v5334_v14 = vpop.permute.xlu1 %3106 }
 0x500   : > { %3152 = vrot.lane.b32.xlu0 %v5310_v17, %s6563_s12  ;;  %3112 = vrot.lane.b32.xlu1 %v5190_v34, %s6562_s30 }
 0x502   : > { %v5340_v48 = vpop.permute.xlu0 %3114  ;;  %v5342_v23 = vpop.permute.xlu1 %3110 }
 0x504   : > { %2900 = vrot.lane.b32.xlu0 %v5310_v17, %s6564_s28  ;;  %2896 = vrot.lane.b32.xlu1 %v5314_v18, %s6564_s28 }
 0x506   : > { %v5348_v46 = vpop.permute.xlu0 %2938  ;;  %v5350_v33 = vpop.permute.xlu1 %3150 }
 0x508   : > { %2984 = vrot.lane.b32.xlu0 %v5310_v17, %s6566_s0  ;;  %2980 = vrot.lane.b32.xlu1 %v5314_v18, %s6566_s0 }
 0x50a   : > { %v5356_v13 = vpop.permute.xlu0 %3022  ;;  %v5358_v35 = vpop.permute.xlu1 %2898 }
 0x50c   : > { %3072 = vrot.lane.b32.xlu0 %v5362_v60, %s6560_s17  ;;  %2772 = vrot.lane.b32.xlu1 %v5184_v21, %s6565_s11 }
 0x50e   : > { %v5368_v26 = vpop.permute.xlu0 %2774  ;;  %v5370_v10 = vpop.permute.xlu1 %2982 }
 0x510   : > { %3156 = vrot.lane.b32.xlu0 %v5362_v60, %s6563_s12  ;;  %2856 = vrot.lane.b32.xlu1 %v5184_v21, %s6489_s20 }
 0x512   : > { %v5376_v9 = vpop.permute.xlu0 %2858  ;;  %v5378_v19 = vpop.permute.xlu1 %3070 }
 0x514   : > { %2732 = vrot.lane.b32.xlu0 %v5310_v17, %s6567_s1  ;;  %2944 = vrot.lane.b32.xlu1 %v5190_v34, %s6559_s16 }
 0x516   : > { %v5384_v31 = vpop.permute.xlu0 %2946  ;;  %v5386_v20 = vpop.permute.xlu1 %3154 }
 0x518   : > { %2816 = vrot.lane.b32.xlu0 %v5310_v17, %s6488_s21  ;;  %3028 = vrot.lane.b32.xlu1 %v5190_v34, %s6561_s29 }
 0x51a   : > { %v5392_v32 = vpop.permute.xlu0 %3030  ;;  %v5394_v38 = vpop.permute.xlu1 %2730 }
 0x51c   : > { %2904 = vrot.lane.b32.xlu0 %v5362_v60, %s6564_s28  ;;  %2728 = vrot.lane.b32.xlu1 %v5314_v18, %s6567_s1 }
 0x51e   : > { %v5400_v47 = vpop.permute.xlu0 %2770  ;;  %v5402_v53 = vpop.permute.xlu1 %2814 }
 0x520   : > { %2988 = vrot.lane.b32.xlu0 %v5362_v60, %s6566_s0  ;;  %2812 = vrot.lane.b32.xlu1 %v5314_v18, %s6488_s21 }
 0x522   : > { %v5408_v59 = vpop.permute.xlu0 %2854  ;;  %v5410_v54 = vpop.permute.xlu1 %2902 }
 0x524   : > { %2648 = vrot.lane.b32.xlu0 %v5310_v17, %s6491_s22  ;;  %2591 = vrot.lane.b32.xlu1 %v5314_v18, %s6490_s24 }
 0x526   : > { %v5416_v29 = vpop.permute.xlu0 %2593  ;;  %v5418_v22 = vpop.permute.xlu1 %2986 }
 0x528   : > { %2736 = vrot.lane.b32.xlu0 %v5362_v60, %s6567_s1  ;;  %2688 = vrot.lane.b32.xlu1 %v5184_v21, %s6492_s25 }
 0x52a   : > { %v5424_v8 = vpop.permute.xlu0 %2690  ;;  %v5426_v36 = vpop.permute.xlu1 %2646 }
 0x52c   : > { %2820 = vrot.lane.b32.xlu0 %v5362_v60, %s6488_s21  ;;  %2776 = vrot.lane.b32.xlu1 %v5190_v34, %s6565_s11 }
 0x52e   : > { %v5432_v15 = vpop.permute.xlu0 %2778  ;;  %v5434_v45 = vpop.permute.xlu1 %2734 }
 0x530   : > { %2644 = vrot.lane.b32.xlu0 %v5314_v18, %s6491_s22  ;;  %2860 = vrot.lane.b32.xlu1 %v5190_v34, %s6489_s20 }
 0x532   : > { %v5440_v58 = vpop.permute.xlu0 %2862  ;;  %v5442_v61 = vpop.permute.xlu1 %2818 }
 0x534   : > { %2423 = vrot.lane.b32.xlu0 %v5314_v18, %s6493_s26  ;;  %2467 = vrot.lane.b32.xlu1 %v5184_v21, %s6494_s27 }
 0x536   : > { %v5448_v42 = vpop.permute.xlu0 %2465  ;;  %v5450_v16 = vpop.permute.xlu1 %2589 }
 0x538   : > { %2507 = vrot.lane.b32.xlu0 %v5314_v18, %s6496_s15  ;;  %2551 = vrot.lane.b32.xlu1 %v5184_v21, %s6497_s19 }
 0x53a   : > { %v5456_v40 = vpop.permute.xlu0 %2549  ;;  %v5458_v6 = vpop.permute.xlu1 %2686 }
 0x53c   : > { %2595 = vrot.lane.b32.xlu0 %v5310_v17, %s6490_s24  ;;  %2652 = vrot.lane.b32.xlu1 %v5362_v60, %s6491_s22 }
 0x53e   : > { %v5464_v4 = vpop.permute.xlu0 %2650  ;;  %v5466_v27 = vpop.permute.xlu1 %2425 }
 0x540   : > { %2692 = vrot.lane.b32.xlu0 %v5190_v34, %s6492_s25  ;;  %2463 = vrot.lane.b32.xlu1 %v5470_v7, %s6494_s27 }
 0x542   : > { %v5476_v43 = vpop.permute.xlu0 %2421  ;;  %v5478_v3 = vpop.permute.xlu1 %2509 }
 0x544   : > { %2255 = vrot.lane.b32.xlu0 %v5314_v18, %s6570_s4  ;;  %2547 = vrot.lane.b32.xlu1 %v5470_v7, %s6497_s19 }
 0x546   : > { %v5484_v55 = vpop.permute.xlu0 %2505  ;;  %v5486_v1 = vpop.permute.xlu1 %2597 }
 0x548   : > { %2339 = vrot.lane.b32.xlu0 %v5314_v18, %s6571_s5  ;;  %2299 = vrot.lane.b32.xlu1 %v5184_v21, %s6568_s2 }
 0x54a   : > { %v5492_v5 = vpop.permute.xlu0 %2297  ;;  %v5494_v0 = vpop.permute.xlu1 %2694 }
 0x54b   : > { %6576 = vst [vmem:[#allocation19_spill] sm:$0xff] %v5492_v5 }
 0x54c   : > { %2427 = vrot.lane.b32.xlu0 %v5310_v17, %s6493_s26  ;;  %2383 = vrot.lane.b32.xlu1 %v5184_v21, %s6569_s3 }
 0x54e   : > { %v5500_v2 = vpop.permute.xlu0 %2381  ;;  %v5502_v51 = vpop.permute.xlu1 %2257 }
 0x54f   : > { %6577 = vst [vmem:[#allocation20_spill] sm:$0xff] %v5500_v2 }
 0x550   : > { %2511 = vrot.lane.b32.xlu0 %v5310_v17, %s6496_s15  ;;  %2471 = vrot.lane.b32.xlu1 %v5190_v34, %s6494_s27 }
 0x552   : > { %v5508_v11 = vpop.permute.xlu0 %2469  ;;  %v5510_v25 = vpop.permute.xlu1 %2341 }
 0x553   : > { %6578 = vst [vmem:[#allocation21_spill] sm:$0xff] %v5510_v25 }
 0x554   : > { %2082 = vrot.lane.b32.xlu0 %v5314_v18, %s6572_s13  ;;  %2555 = vrot.lane.b32.xlu1 %v5190_v34, %s6497_s19 }
 0x556   : > { %v5516_v28 = vpop.permute.xlu0 %2553  ;;  %v5518_v50 = vpop.permute.xlu1 %2429 }
 0x557   : > { %6579 = vst [vmem:[#allocation22_spill] sm:$0xff] %v5518_v50 }
 0x558   : > { %2171 = vrot.lane.b32.xlu0 %v5314_v18, %s6574_s14  ;;  %2295 = vrot.lane.b32.xlu1 %v5470_v7, %s6568_s2 }
 0x55a   : > { %v5524_v39 = vpop.permute.xlu0 %2253  ;;  %v5526_v24 = vpop.permute.xlu1 %2513 }
 0x55b   : > { %6580 = vst [vmem:[#allocation23_spill] sm:$0xff] %v5526_v24 }
 0x55c   : > { %2213 = vrot.lane.b32.xlu0 %v5166_v63, %s6506_s23  ;;  %2379 = vrot.lane.b32.xlu1 %v5470_v7, %s6569_s3 }
 0x55e   : > { %v5532_v37 = vpop.permute.xlu0 %2337  ;;  %v5534_v60 = vpop.permute.xlu1 %2084 }
 0x55f   : > { %6581 = vst [vmem:[#allocation24_spill] sm:$0xff] %v5534_v60 }
 0x560   : > { %2259 = vrot.lane.b32.xlu0 %v5310_v17, %s6570_s4  ;;  %2131 = vrot.lane.b32.xlu1 %v5184_v21, %s6573_s10 }
 0x562   : > { %v5540_v18 = vpop.permute.xlu0 %2129  ;;  %v5542_v2 = vpop.permute.xlu1 %2173 }
 0x563   : > { %6582 = vst [vmem:[#allocation25_spill] sm:$0xff] %v5540_v18  ;;  %6583 = vst [vmem:[#allocation26_spill] sm:$0xff] %v5542_v2 }
 0x564   : > { %2301 = vrot.lane.b32.xlu0 %v5168_v56, %s6568_s2  ;;  %2215 = vrot.lane.b32.xlu1 %v5184_v21, %s6506_s23 }
 0x566   : > { %v3069_v24 = vpop.permute.xlu0 %3068  ;;  %v3065_v50 = vpop.permute.xlu1 %3064 }
 0x567   : > { %v3083_v60 = vsel %vm6584_vm0, %v5326_v52, %v3069_v24  ;;  %v3084_v5 = vsel %vm6585_vm5, %v3069_v24, %v5378_v19  ;;  %v3082_v25 = vsel %vm6586_vm6, %v3065_v50, %v5326_v52  ;;  %vm6588_vm0 = vmmov %vm6587_vm2  ;;  %vm6589_vm5 = vcmask 138240  }
 0x568   : > { %3099 = vst [vmem:[#allocation2 + $0x258] sm:$0xf] %v3083_v60  ;;  %3100 = vst [vmem:[#allocation2 + $0x1b8] sm:$0xf] %v3084_v5  ;;  %2343 = vrot.lane.b32.xlu0 %v5310_v17, %s6571_s5  ;;  %2261 = vrot.lane.b32.xlu1 %v5170_v12, %s6570_s4 }
 0x569   : > { %3098 = vst [vmem:[#allocation2 + $0x240] sm:$0xf] %v3082_v25  ;;  %vm6590_vm6 = vmmov %vm6589_vm5 }
 0x56a   : > { %v3109_v21 = vpop.permute.xlu0 %3108  ;;  %v2941_v18 = vpop.permute.xlu1 %2940 }
 0x56b   : > { %v3124_v2 = vsel %vm6587_vm2, %v5334_v14, %v3109_v21  ;;  %v3125_v24 = vsel %vm6588_vm0, %v3109_v21, %v5342_v23  ;;  %v2956_v50 = vsel %vm1272_vm4, %v5348_v46, %v2941_v18  ;;  %v2957_v5 = vsel %vm1272_vm4, %v2941_v18, %v5324_v30  ;;  %vm6591_vm2 = vmmov %vm6589_vm5 }
 0x56c   : > { %3140 = vst [vmem:[#allocation2 + $0x240] sm:$0xf0] %v3124_v2  ;;  %3141 = vst [vmem:[#allocation2 + $0x258] sm:$0xf0] %v3125_v24  ;;  %2385 = vrot.lane.b32.xlu0 %v5168_v56, %s6569_s3  ;;  %2303 = vrot.lane.b32.xlu1 %v5190_v34, %s6568_s2 }
 0x56d   : > { %2972 = vst [vmem:[#allocation2 + $0x140] sm:$0xf0] %v2956_v50  ;;  %2973 = vst [vmem:[#allocation2 + $0x20] sm:$0xf0] %v2957_v5 }
 0x56e   : > { %v3149_v25 = vpop.permute.xlu0 %3148  ;;  %v3025_v52 = vpop.permute.xlu1 %3024 }
 0x56f   : > { %v3166_v14 = vsel %vm6589_vm5, %v3149_v25, %v5350_v33  ;;  %v3040_v46 = vsel %vm1358_vm7, %v5356_v13, %v3025_v52  ;;  %v3041_v2 = vsel %vm1358_vm7, %v3025_v52, %v5332_v57  ;;  %vm6592_vm5 = vmmov %vm6588_vm0 }
 0x570   : > { %3182 = vst [vmem:[#allocation2 + $0x190] sm:$0xf] %v3166_v14  ;;  %3056 = vst [vmem:[#allocation2 + $0x348] sm:$0xf0] %v3040_v46  ;;  %2080 = vrot.lane.b32.xlu0 %v5166_v63, %s6572_s13  ;;  %2345 = vrot.lane.b32.xlu1 %v5170_v12, %s6571_s5 }
 0x571   : > { %3057 = vst [vmem:[#allocation2 + $0x168] sm:$0xf0] %v3041_v2 }
 0x572   : > { %v3153_v60 = vpop.permute.xlu0 %3152  ;;  %v3113_v18 = vpop.permute.xlu1 %3112 }
 0x573   : > { %v3167_v21 = vsel %vm6590_vm6, %v5350_v33, %v3153_v60  ;;  %v3168_v13 = vsel %vm6591_vm2, %v3153_v60, %v5386_v20  ;;  %v3126_v24 = vsel %vm6588_vm0, %v5342_v23, %v3113_v18  ;;  %v3127_v50 = vsel %vm6592_vm5, %v3113_v18, %v5340_v48 }
 0x574   : > { %3183 = vst [vmem:[#allocation2 + $0x220] sm:$0xf] %v3167_v21  ;;  %3184 = vst [vmem:[#allocation2 + $0x8] sm:$0xf] %v3168_v13  ;;  %2169 = vrot.lane.b32.xlu0 %v5166_v63, %s6574_s14  ;;  %2387 = vrot.lane.b32.xlu1 %v5190_v34, %s6569_s3  ;;  %v3287_v63 = vld [vmem:[#allocation2 + $0x240] sm:$0xff]  ;;  %vm6593_vm6 = vcmask 228352  }
 0x575   : > { %3142 = vst [vmem:[#allocation2 + $0x1b8] sm:$0xf0] %v3126_v24  ;;  %3143 = vst [vmem:[#allocation2 + $0x118] sm:$0xf0] %v3127_v50  ;;  %v3288_v13 = vld [vmem:[#allocation2 + $0x258] sm:$0xff]  ;;  %vm6596_vm5 = vcmask 1045504  }
 0x576   : > { %v2901_v33 = vpop.permute.xlu0 %2900  ;;  %v2897_v5 = vpop.permute.xlu1 %2896  ;;  %vm6594_vm2 = vmmov %vm6593_vm6 }
 0x577   : > { %v2915_v25 = vsel %vm1229_vm3, %v5358_v35, %v2901_v33  ;;  %v2916_v23 = vsel %vm1229_vm3, %v2901_v33, %v5410_v54  ;;  %v2914_v52 = vsel %vm1229_vm3, %v2897_v5, %v5358_v35  ;;  %v3295_v14 = vld [vmem:[#allocation2 + $0x190] sm:$0xf]  ;;  %vm6595_vm0 = vmmov %vm6594_vm2 }
 0x578   : > { %2931 = vst [vmem:[#allocation2 + $0x20] sm:$0xf] %v2915_v25  ;;  %2932 = vst [vmem:[#allocation2 + $0x68] sm:$0xf] %v2916_v23  ;;  %2086 = vrot.lane.b32.xlu0 %v5310_v17, %s6572_s13  ;;  %2127 = vrot.lane.b32.xlu1 %v5470_v7, %s6573_s10  ;;  %v3351_v60 = vpack.c.bf16 %v3295_v14, %v3287_v63 }
 0x579   : > { %2930 = vst [vmem:[#allocation2 + $0x140] sm:$0xf] %v2914_v52 }
 0x57a   : > { %v2985_v46 = vpop.permute.xlu0 %2984  ;;  %v2981_v2 = vpop.permute.xlu1 %2980 }
 0x57b   : > { %v2999_v18 = vsel %vm6593_vm6, %v5370_v10, %v2985_v46  ;;  %v3000_v35 = vsel %vm6594_vm2, %v2985_v46, %v5418_v22  ;;  %v2998_v21 = vsel %vm6595_vm0, %v2981_v2, %v5370_v10  ;;  %v3296_v24 = vld [vmem:[#allocation2 + $0x220] sm:$0xf]  ;;  %vm6597_vm6 = vmmov %vm6596_vm5  ;;  %vm6598_vm2 = vcmask 154624  }
 0x57c   : > { %3015 = vst [vmem:[#allocation2 + $0x168] sm:$0xf] %v2999_v18  ;;  %3016 = vst [vmem:[#allocation2 + $0x288] sm:$0xf] %v3000_v35  ;;  %2133 = vrot.lane.b32.xlu0 %v5168_v56, %s6573_s10  ;;  %2211 = vrot.lane.b32.xlu1 %v5470_v7, %s6506_s23  ;;  %v3352_v50 = vpack.c.bf16 %v3296_v24, %v3288_v13  ;;  %v3369_v25 = vsel %vm6597_vm6, %v3351_v60, 0  ;;  %vm6599_vm0 = vcmask 957440  }
 0x57d   : > { %3014 = vst [vmem:[#allocation2 + $0x348] sm:$0xf] %v2998_v21  ;;  %vm6600_vm1 = vmmov %vm6599_vm0 }
 0x57e   : > { %3770 = vmatprep.subr.msk.bf16.mxu0 %vm6596_vm5, %v3352_v50  ;;  %v5613_v33 = vpop.permute.xlu0 %3072  ;;  %v2773_v5 = vpop.permute.xlu1 %2772  ;;  %vm6601_vm5 = vcmask 138240   ;;  %v3289_v50 = vld [vmem:[#allocation2 + $0x1b8] sm:$0xff] }
 0x57f   : > { %v3085_v10 = vsel %vm6598_vm2, %v5378_v19, %v5613_v33  ;;  %v2788_v23 = vsel %vm6599_vm0, %v5400_v47, %v2773_v5  ;;  %v2789_v52 = vsel %vm6600_vm1, %v2773_v5, %v5368_v26  ;;  %3395 = vmatpush1.bf16.msra.mxu0 %v3369_v25  ;;  %v3272_v19 = vld [vmem:[#allocation2 + $0x20] sm:$0xff]  ;;  %vm6602_vm1 = vcmask 310272   ;;  %v3297_v5 = vld [vmem:[#allocation2 + $0x8] sm:$0xf] }
 0x580   : > { %3101 = vst [vmem:[#allocation2 + $0x118] sm:$0xf] %v3085_v10  ;;  %2804 = vst [vmem:[#allocation2 + $0x218] sm:$0xf0] %v2788_v23  ;;  %2175 = vrot.lane.b32.xlu0 %v5310_v17, %s6574_s14  ;;  %2088 = vrot.lane.b32.xlu1 %v5170_v12, %s6572_s13  ;;  %v3271_v60 = vld [vmem:[#allocation2 + $0x140] sm:$0xff]  ;;  %vm6604_vm2 = vcmask 965632   ;;  %v3353_v23 = vpack.c.bf16 %v3297_v5, %v3289_v50 }
 0x581   : > { %2805 = vst [vmem:[#allocation2 + $0x370] sm:$0xf0] %v2789_v52  ;;  %vm6603_vm6 = vmmov %vm6602_vm1 }
 0x582   : > { %v5627_v7 = vpop.permute.xlu0 %3156  ;;  %v2857_v14 = vpop.permute.xlu1 %2856  ;;  %vm6605_vm0 = vmmov %vm6604_vm2 }
 0x583   : > { %v3169_v47 = vsel %vm6601_vm5, %v5386_v20, %v5627_v7  ;;  %v2872_v63 = vsel %vm6602_vm1, %v5408_v59, %v2857_v14  ;;  %v2873_v46 = vsel %vm6603_vm6, %v2857_v14, %v5376_v9  ;;  %v3280_v2 = vld [vmem:[#allocation2 + $0x168] sm:$0xff]  ;;  %vm6606_vm5 = vcmask 318464  }
 0x584   : > { %v3279_v17 = vld [vmem:[#allocation2 + $0x348] sm:$0xff]  ;;  %3185 = vst [vmem:[#allocation2 + $0x18] sm:$0xf] %v3169_v47  ;;  %2888 = vst [vmem:[#allocation2 + $0x30] sm:$0xf0] %v2872_v63  ;;  %2217 = vrot.lane.b32.xlu0 %v5168_v56, %s6506_s23  ;;  %2135 = vrot.lane.b32.xlu1 %v5190_v34, %s6573_s10  ;;  %v3344_v18 = vpack.c.bf16 %v3280_v2, %v3272_v19  ;;  %vm6608_vm6 = vcmask 1045504  }
 0x585   : > { %2889 = vst [vmem:[#allocation2 + $0x210] sm:$0xf0] %v2873_v46  ;;  %v3343_v20 = vpack.c.bf16 %v3279_v17, %v3271_v60  ;;  %vm6607_vm1 = vmmov %vm6606_vm5  ;;  %v5670_v17 = vcombine.high %v5172_v41, %v5172_v41 }
 0x586   : > { %v2733_v35 = vpop.permute.xlu0 %2732  ;;  %3396 = vmatprep.subr.bf16.mxu0 %v3344_v18  ;;  %v2945_v59 = vpop.permute.xlu1 %2944 }
 0x587   : > { %v2747_v21 = vsel %vm6604_vm2, %v5394_v38, %v2733_v35  ;;  %v2748_v13 = vsel %vm6605_vm0, %v2733_v35, %v5434_v45  ;;  %v2958_v24 = vsel %vm1272_vm4, %v5324_v30, %v2945_v59  ;;  %v2959_v56 = vsel %vm1272_vm4, %v2945_v59, %v5384_v31  ;;  %3397 = vmatpush1.bf16.msra.mxu0 %v3343_v20  ;;  %v3290_v47 = vld [vmem:[#allocation2 + $0x118] sm:$0xff]  ;;  %vm6609_vm2 = vmmov %vm6608_vm6 }
 0x588   : > { %2763 = vst [vmem:[#allocation2 + $0x370] sm:$0xf] %v2747_v21  ;;  %2764 = vst [vmem:[#allocation2 + $0xa8] sm:$0xf] %v2748_v13  ;;  %3074 = vrot.lane.b32.xlu0 %v5172_v41, %s6560_s17  ;;  %2177 = vrot.lane.b32.xlu1 %v5170_v12, %s6574_s14  ;;  %v3375_v60 = vsel %vm6609_vm2, %v3353_v23, 0 }
 0x589   : > { %2974 = vst [vmem:[#allocation2 + $0x68] sm:$0xf0] %v2958_v24  ;;  %2975 = vst [vmem:[#allocation2 + $0x78] sm:$0xf0] %v2959_v56 }
 0x58a   : > { %v2817_v25 = vpop.permute.xlu0 %2816  ;;  %v3029_v10 = vpop.permute.xlu1 %3028 }
 0x58b   : > { %v2831_v30 = vsel %vm6606_vm5, %v5402_v53, %v2817_v25  ;;  %v2832_v52 = vsel %vm6607_vm1, %v2817_v25, %v5442_v61  ;;  %v3042_v14 = vsel %vm1358_vm7, %v5332_v57, %v3029_v10  ;;  %v3043_v19 = vsel %vm1358_vm7, %v3029_v10, %v5392_v32  ;;  %v3298_v63 = vld [vmem:[#allocation2 + $0x18] sm:$0xf] }
 0x58c   : > { %2847 = vst [vmem:[#allocation2 + $0x210] sm:$0xf] %v2831_v30  ;;  %2848 = vst [vmem:[#allocation2 + $0x1e0] sm:$0xf] %v2832_v52  ;;  %3116 = vrot.lane.b32.xlu0 %v5194_v44, %s6562_s30  ;;  %2219 = vrot.lane.b32.xlu1 %v5190_v34, %s6506_s23  ;;  %v3354_v46 = vpack.c.bf16 %v3298_v63, %v3290_v47  ;;  %vm6610_vm5 = vcmask 228352  }
 0x58d   : > { %3058 = vst [vmem:[#allocation2 + $0x288] sm:$0xf0] %v3042_v14  ;;  %3059 = vst [vmem:[#allocation2 + $0x1d0] sm:$0xf0] %v3043_v19 }
 0x58e   : > { %v5664_v2 = vpop.permute.xlu0 %2904  ;;  %3772 = vmatprep.subr.msk.bf16.mxu1 %vm6608_vm6, %v3354_v46  ;;  %v2729_v57 = vpop.permute.xlu1 %2728  ;;  %vm6611_vm6 = vcmask 1039360  }
 0x58f   : > { %v2917_v18 = vsel %vm1229_vm3, %v5410_v54, %v5664_v2  ;;  %v2746_v20 = vsel %vm6605_vm0, %v2729_v57, %v5394_v38  ;;  %3436 = vmatpush1.bf16.msra.mxu1 %v3375_v60  ;;  %v3256_v38 = vld [vmem:[#allocation2 + $0x370] sm:$0xff]  ;;  %vm6612_vm2 = vmmov %vm6611_vm6  ;;  %vm6613_vm0 = vcmask 7168  }
 0x590   : > { %2933 = vst [vmem:[#allocation2 + $0x78] sm:$0xf] %v2917_v18  ;;  %2762 = vst [vmem:[#allocation2 + $0x218] sm:$0xf] %v2746_v20  ;;  %3158 = vrot.lane.b32.xlu0 %v5172_v41, %s6563_s12  ;;  %3076 = vrot.lane.b32.xlu1 %v5670_v17, %s6560_s17  ;;  %v3273_v57 = vld [vmem:[#allocation2 + $0x68] sm:$0xff] }
 0x592   : > { %v5681_v34 = vpop.permute.xlu0 %2988  ;;  %v2813_v35 = vpop.permute.xlu1 %2812 }
 0x593   : > { %v3001_v59 = vsel %vm6610_vm5, %v5418_v22, %v5681_v34  ;;  %v2830_v54 = vsel %vm6607_vm1, %v2813_v35, %v5402_v53  ;;  %v3264_v21 = vld [vmem:[#allocation2 + $0x210] sm:$0xff]  ;;  %vm6614_vm5 = vmmov %vm6613_vm0  ;;  %vm6615_vm1 = vcmask 965632  }
 0x594   : > { %3017 = vst [vmem:[#allocation2 + $0x1d0] sm:$0xf] %v3001_v59  ;;  %2846 = vst [vmem:[#allocation2 + $0x30] sm:$0xf] %v2830_v54  ;;  %2906 = vrot.lane.b32.xlu0 %v5172_v41, %s6564_s28  ;;  %3118 = vrot.lane.b32.xlu1 %v5172_v41, %s6562_s30  ;;  %v3336_v13 = vpack.c.bf16 %v3264_v21, %v3256_v38  ;;  %v3281_v30 = vld [vmem:[#allocation2 + $0x288] sm:$0xff] }
 0x595   : > { %v3345_v60 = vpack.c.bf16 %v3281_v30, %v3273_v57 }
 0x596   : > { %v2649_v24 = vpop.permute.xlu0 %2648  ;;  %3398 = vmatprep.subr.bf16.mxu0 %v3336_v13  ;;  %v2592_v56 = vpop.permute.xlu1 %2591 }
 0x597   : > { %v2663_v22 = vsel %vm6611_vm6, %v5426_v36, %v2649_v24  ;;  %v2664_v53 = vsel %vm6612_vm2, %v2649_v24, %v5464_v4  ;;  %v2607_v50 = vsel %vm6613_vm0, %v5450_v16, %v2592_v56  ;;  %v2608_v5 = vsel %vm6614_vm5, %v2592_v56, %v5416_v29  ;;  %v3255_v23 = vld [vmem:[#allocation2 + $0x218] sm:$0xff] }
 0x598   : > { %2679 = vst [vmem:[#allocation2 + $0xf8] sm:$0xf] %v2663_v22  ;;  %2680 = vst [vmem:[#allocation2 + $0x1c8] sm:$0xf] %v2664_v53  ;;  %2948 = vrot.lane.b32.xlu0 %v5194_v44, %s6559_s16  ;;  %3160 = vrot.lane.b32.xlu1 %v5670_v17, %s6563_s12  ;;  %vm6616_vm6 = vcmask 973824   ;;  %v3274_v47 = vld [vmem:[#allocation2 + $0x78] sm:$0xff] }
 0x599   : > { %2623 = vst [vmem:[#allocation2 + $0x2b8] sm:$0xf] %v2607_v50  ;;  %2624 = vst [vmem:[#allocation2 + $0x228] sm:$0xf] %v2608_v5  ;;  %vm6618_vm0 = vcmask 318464   ;;  %vm6619_vm5 = vcmask 957440  }
 0x59a   : > { %v5704_v25 = vpop.permute.xlu0 %2736  ;;  %v2689_v10 = vpop.permute.xlu1 %2688  ;;  %vm6617_vm2 = vmmov %vm6616_vm6 }
 0x59b   : > { %v2749_v16 = vsel %vm6615_vm1, %v5434_v45, %v5704_v25  ;;  %v2704_v52 = vsel %vm6616_vm6, %v5458_v6, %v2689_v10  ;;  %v2705_v14 = vsel %vm6617_vm2, %v2689_v10, %v5424_v8  ;;  %v3263_v19 = vld [vmem:[#allocation2 + $0x30] sm:$0xff]  ;;  %vm6620_vm1 = vmmov %vm6619_vm5  ;;  %vm6621_vm6 = vcmask 1039360  }
 0x59c   : > { %v3282_v63 = vld [vmem:[#allocation2 + $0x1d0] sm:$0xff]  ;;  %2765 = vst [vmem:[#allocation2 + $0xc8] sm:$0xf] %v2749_v16  ;;  %2720 = vst [vmem:[#allocation2 + $0x270] sm:$0xf0] %v2704_v52  ;;  %2990 = vrot.lane.b32.xlu0 %v5172_v41, %s6566_s0  ;;  %2908 = vrot.lane.b32.xlu1 %v5670_v17, %s6564_s28  ;;  %v3335_v46 = vpack.c.bf16 %v3263_v19, %v3255_v23  ;;  %vm6622_vm2 = vcmask 310272   ;;  %v5754_v23 = vcombine.high %v5174_v62, %v5174_v62 }
 0x59d   : > { %2721 = vst [vmem:[#allocation2 + $0xf8] sm:$0xf0] %v2705_v14  ;;  %v3346_v45 = vpack.c.bf16 %v3282_v63, %v3274_v47 }
 0x59e   : > { %v5717_v6 = vpop.permute.xlu0 %2820  ;;  %3399 = vmatpush1.bf16.msra.mxu0 %v3335_v46  ;;  %v2777_v18 = vpop.permute.xlu1 %2776 }
 0x59f   : > { %3437 = vmatprep.subr.bf16.mxu1 %v3346_v45  ;;  %v2833_v20 = vsel %vm6618_vm0, %v5442_v61, %v5717_v6  ;;  %v2790_v35 = vsel %vm6619_vm5, %v5368_v26, %v2777_v18  ;;  %v2791_v59 = vsel %vm6620_vm1, %v2777_v18, %v5432_v15  ;;  %vm6623_vm0 = vmmov %vm6622_vm2  ;;  %vm6624_vm5 = vcmask 728064  }
 0x5a0   : > { %3438 = vmatpush1.bf16.msra.mxu1 %v3345_v60  ;;  %2849 = vst [vmem:[#allocation2 + $0x50] sm:$0xf] %v2833_v20  ;;  %2806 = vst [vmem:[#allocation2 + $0xa8] sm:$0xf0] %v2790_v35  ;;  %3032 = vrot.lane.b32.xlu0 %v5194_v44, %s6561_s29  ;;  %v3240_v13 = vld [vmem:[#allocation2 + $0x228] sm:$0xff]  ;;  %v3239_v30 = vld [vmem:[#allocation2 + $0x2b8] sm:$0xff] }
 0x5a1   : > { %2807 = vst [vmem:[#allocation2 + $0xc8] sm:$0xf0] %v2791_v59  ;;  %2950 = vrot.lane.b32.xlu1 %v5172_v41, %s6559_s16  ;;  %vm6625_vm1 = vmmov %vm6624_vm5 }
 0x5a2   : > { %v2645_v54 = vpop.permute.xlu0 %2644  ;;  %v2861_v38 = vpop.permute.xlu1 %2860 }
 0x5a3   : > { %v2662_v61 = vsel %vm6621_vm6, %v2645_v54, %v5426_v36  ;;  %v2874_v26 = vsel %vm6622_vm2, %v5376_v9, %v2861_v38  ;;  %v2875_v21 = vsel %vm6623_vm0, %v2861_v38, %v5440_v58  ;;  %vm6626_vm6 = vcmask 89088  }
 0x5a4   : > { %v3248_v24 = vld [vmem:[#allocation2 + $0xf8] sm:$0xff]  ;;  %2678 = vst [vmem:[#allocation2 + $0x270] sm:$0xf] %v2662_v61  ;;  %2890 = vst [vmem:[#allocation2 + $0x1e0] sm:$0xf0] %v2874_v26  ;;  %3078 = vrot.lane.b32.xlu0 %v5174_v62, %s6560_s17  ;;  %vm6628_vm0 = vcmask 80896  }
 0x5a5   : > { %2891 = vst [vmem:[#allocation2 + $0x50] sm:$0xf0] %v2875_v21  ;;  %2992 = vrot.lane.b32.xlu1 %v5670_v17, %s6566_s0  ;;  %v3328_v56 = vpack.c.bf16 %v3248_v24, %v3240_v13  ;;  %vm6627_vm2 = vmmov %vm6626_vm6 }
 0x5a6   : > { %v2424_v22 = vpop.permute.xlu0 %2423  ;;  %v2468_v36 = vpop.permute.xlu1 %2467 }
 0x5a7   : > { %3400 = vmatprep.subr.bf16.mxu0 %v3328_v56  ;;  %v2439_v9 = vsel %vm6624_vm5, %v5476_v43, %v2424_v22  ;;  %v2440_v53 = vsel %vm6625_vm1, %v2424_v22, %v5466_v27  ;;  %v2482_v50 = vsel %vm6626_vm6, %v5448_v42, %v2468_v36  ;;  %v2483_v5 = vsel %vm6627_vm2, %v2468_v36, %v5508_v11  ;;  %v3257_v52 = vld [vmem:[#allocation2 + $0xa8] sm:$0xff]  ;;  %vm6629_vm5 = vmmov %vm6628_vm0 }
 0x5a8   : > { %2455 = vst [vmem:[#allocation2 + $0xd8] sm:$0xf] %v2439_v9  ;;  %2456 = vst [vmem:[#allocation2 + $0x298] sm:$0xf] %v2440_v53  ;;  %3120 = vrot.lane.b32.xlu0 %v5199_v49, %s6562_s30  ;;  %v3258_v16 = vld [vmem:[#allocation2 + $0xc8] sm:$0xff]  ;;  %vm6630_vm1 = vcmask 72704  }
 0x5a9   : > { %2498 = vst [vmem:[#allocation2 + $0x298] sm:$0xf0] %v2482_v50  ;;  %2499 = vst [vmem:[#allocation2 + $0xb8] sm:$0xf0] %v2483_v5  ;;  %3034 = vrot.lane.b32.xlu1 %v5172_v41, %s6561_s29  ;;  %vm6632_vm2 = vcmask 7168  }
 0x5aa   : > { %v2508_v43 = vpop.permute.xlu0 %2507  ;;  %v2552_v10 = vpop.permute.xlu1 %2551  ;;  %vm6631_vm6 = vmmov %vm6630_vm1 }
 0x5ab   : > { %v2523_v14 = vsel %vm6628_vm0, %v5484_v55, %v2508_v43  ;;  %v2524_v19 = vsel %vm6629_vm5, %v2508_v43, %v5478_v3  ;;  %v2566_v47 = vsel %vm6630_vm1, %v5456_v40, %v2552_v10  ;;  %v2567_v63 = vsel %vm6631_vm6, %v2552_v10, %v5516_v28  ;;  %v3247_v46 = vld [vmem:[#allocation2 + $0x270] sm:$0xff]  ;;  %v3265_v57 = vld [vmem:[#allocation2 + $0x1e0] sm:$0xff]  ;;  %vm6633_vm0 = vmmov %vm6632_vm2 }
 0x5ac   : > { %v3266_v45 = vld [vmem:[#allocation2 + $0x50] sm:$0xff]  ;;  %2539 = vst [vmem:[#allocation2 + $0x1f8] sm:$0xf] %v2523_v14  ;;  %2540 = vst [vmem:[#allocation2 + $0x2f0] sm:$0xf] %v2524_v19  ;;  %3162 = vrot.lane.b32.xlu0 %v5174_v62, %s6563_s12  ;;  %v3327_v55 = vpack.c.bf16 %v3247_v46, %v3239_v30  ;;  %v3337_v18 = vpack.c.bf16 %v3265_v57, %v3257_v52  ;;  %vm6634_vm5 = vcmask 1039360  }
 0x5ad   : > { %2582 = vst [vmem:[#allocation2 + $0x2f0] sm:$0xf0] %v2566_v47  ;;  %2583 = vst [vmem:[#allocation2 + $0x358] sm:$0xf0] %v2567_v63  ;;  %3080 = vrot.lane.b32.xlu1 %v5754_v23, %s6560_s17  ;;  %v3338_v60 = vpack.c.bf16 %v3266_v45, %v3258_v16  ;;  %vm6635_vm1 = vcmask 973824   ;;  %v6639_v43 = vld [vmem:[#allocation21_spill] sm:$0xff] }
 0x5ae   : > { %v2596_v20 = vpop.permute.xlu0 %2595  ;;  %3401 = vmatpush1.bf16.msra.mxu0 %v3327_v55  ;;  %v5768_v35 = vpop.permute.xlu1 %2652  ;;  %vm6636_vm6 = vmmov %vm6635_vm1  ;;  %v6642_v45 = vld [vmem:[#allocation22_spill] sm:$0xff]  ;;  %v6644_v55 = vld [vmem:[#allocation20_spill] sm:$0xff] }
 0x5af   : > { %3439 = vmatprep.subr.bf16.mxu1 %v3338_v60  ;;  %v2609_v59 = vsel %vm6632_vm2, %v5416_v29, %v2596_v20  ;;  %v2610_v54 = vsel %vm6633_vm0, %v2596_v20, %v5486_v1  ;;  %v2665_v38 = vsel %vm6634_vm5, %v5464_v4, %v5768_v35  ;;  %vm6637_vm2 = vcmask 89088  }
 0x5b0   : > { %3440 = vmatpush1.bf16.msra.mxu1 %v3337_v18  ;;  %2625 = vst [vmem:[#allocation2 + $0x178] sm:$0xf] %v2609_v59  ;;  %2626 = vst [vmem:[#allocation2 + $0x200] sm:$0xf] %v2610_v54  ;;  %2738 = vrot.lane.b32.xlu0 %v5172_v41, %s6567_s1  ;;  %v3224_v13 = vld [vmem:[#allocation2 + $0x298] sm:$0xff]  ;;  %vm6638_vm0 = vcmask 72704  }
 0x5b1   : > { %2681 = vst [vmem:[#allocation2 + $0xb0] sm:$0xf] %v2665_v38  ;;  %3122 = vrot.lane.b32.xlu1 %v5174_v62, %s6562_s30  ;;  %vm6641_vm5 = vcmask 728064  }
 0x5b2   : > { %v2693_v61 = vpop.permute.xlu0 %2692  ;;  %v2464_v26 = vpop.permute.xlu1 %2463 }
 0x5b3   : > { %v2706_v29 = vsel %vm6635_vm1, %v5424_v8, %v2693_v61  ;;  %v2707_v21 = vsel %vm6636_vm6, %v2693_v61, %v5494_v0  ;;  %v2481_v4 = vsel %vm6637_vm2, %v2464_v26, %v5448_v42  ;;  %vm6643_vm1 = vmmov %vm6641_vm5  ;;  %vm6645_vm6 = vcmask 80896   ;;  %v6646_v61 = vld [vmem:[#allocation23_spill] sm:$0xff] }
 0x5b4   : > { %v3232_v24 = vld [vmem:[#allocation2 + $0x2f0] sm:$0xff]  ;;  %2722 = vst [vmem:[#allocation2 + $0x1c8] sm:$0xf0] %v2706_v29  ;;  %2723 = vst [vmem:[#allocation2 + $0xb0] sm:$0xf0] %v2707_v21  ;;  %2780 = vrot.lane.b32.xlu0 %v5194_v44, %s6565_s11 }
 0x5b5   : > { %2497 = vst [vmem:[#allocation2 + $0xd8] sm:$0xf0] %v2481_v4  ;;  %3164 = vrot.lane.b32.xlu1 %v5754_v23, %s6563_s12  ;;  %v3320_v56 = vpack.c.bf16 %v3232_v24, %v3224_v13  ;;  %vm6647_vm2 = vmmov %vm6645_vm6 }
 0x5b6   : > { %v2256_v22 = vpop.permute.xlu0 %2255  ;;  %v2548_v8 = vpop.permute.xlu1 %2547 }
 0x5b7   : > { %3402 = vmatprep.subr.bf16.mxu0 %v3320_v56  ;;  %v2271_v36 = vsel %vm571_vm14, %v5524_v39, %v2256_v22  ;;  %v2272_v42 = vsel %vm571_vm14, %v2256_v22, %v5502_v51  ;;  %v2565_v9 = vsel %vm6638_vm0, %v2548_v8, %v5456_v40  ;;  %v3242_v5 = vld [vmem:[#allocation2 + $0x200] sm:$0xff]  ;;  %v6640_v40 = vld [vmem:[#allocation19_spill] sm:$0xff]  ;;  %v3241_v52 = vld [vmem:[#allocation2 + $0x178] sm:$0xff]  ;;  %vm6648_vm0 = vcmask 89088  }
 0x5b8   : > { %2287 = vst [vmem:[#allocation2 + $0x28] sm:$0xf] %v2271_v36  ;;  %2288 = vst [vmem:[#allocation2 + $0x330] sm:$0xf] %v2272_v42  ;;  %2822 = vrot.lane.b32.xlu0 %v5172_v41, %s6488_s21  ;;  %v5850_v56 = vld [vmem:[#allocation3 + $0x20] sm:$0xff]  ;;  %v6651_v42 = vld [vmem:[#allocation26_spill] sm:$0xff] }
 0x5b9   : > { %2581 = vst [vmem:[#allocation2 + $0x1f8] sm:$0xf0] %v2565_v9  ;;  %2740 = vrot.lane.b32.xlu1 %v5670_v17, %s6567_s1 }
 0x5ba   : > { %v2340_v53 = vpop.permute.xlu0 %2339  ;;  %v5801_v50 = vpop.permute.xlu1 %2299 }
 0x5bb   : > { %v2355_v39 = vsel %vm657_vm12, %v5532_v37, %v2340_v53  ;;  %v2356_v10 = vsel %vm657_vm12, %v2340_v53, %v6639_v43  ;;  %v2314_v30 = vsel %vm614_vm13, %v6640_v40, %v5801_v50  ;;  %v3250_v16 = vld [vmem:[#allocation2 + $0xb0] sm:$0xff]  ;;  %v3249_v14 = vld [vmem:[#allocation2 + $0x1c8] sm:$0xff] }
 0x5bc   : > { %2371 = vst [vmem:[#allocation2 + $0x350] sm:$0xf] %v2355_v39  ;;  %2372 = vst [vmem:[#allocation2 + $0x120] sm:$0xf] %v2356_v10  ;;  %2864 = vrot.lane.b32.xlu0 %v5194_v44, %s6489_s20  ;;  %v3330_v37 = vpack.c.bf16 %v3250_v16, %v3242_v5  ;;  %v3329_v19 = vpack.c.bf16 %v3249_v14, %v3241_v52  ;;  %v3223_v18 = vld [vmem:[#allocation2 + $0xd8] sm:$0xff] }
 0x5bd   : > { %2330 = vst [vmem:[#allocation2 + $0x330] sm:$0xf0] %v2314_v30  ;;  %2782 = vrot.lane.b32.xlu1 %v5172_v41, %s6565_s11 }
 0x5be   : > { %v2428_v47 = vpop.permute.xlu0 %2427  ;;  %3441 = vmatprep.subr.bf16.mxu1 %v3330_v37  ;;  %v5814_v63 = vpop.permute.xlu1 %2383 }
 0x5bf   : > { %v2441_v46 = vsel %vm6641_vm5, %v5466_v27, %v2428_v47  ;;  %v2442_v57 = vsel %vm6643_vm1, %v2428_v47, %v6642_v45  ;;  %v2398_v60 = vsel %vm700_vm8, %v6644_v55, %v5814_v63  ;;  %3442 = vmatpush1.bf16.msra.mxu1 %v3329_v19  ;;  %vm6650_vm5 = vcmask 72704  }
 0x5c0   : > { %v3231_v20 = vld [vmem:[#allocation2 + $0x1f8] sm:$0xff]  ;;  %2457 = vst [vmem:[#allocation2 + $0xb8] sm:$0xf] %v2441_v46  ;;  %2458 = vst [vmem:[#allocation2 + $0x170] sm:$0xf] %v2442_v57  ;;  %2910 = vrot.lane.b32.xlu0 %v5174_v62, %s6564_s28  ;;  %v6653_v57 = vld [vmem:[#allocation25_spill] sm:$0xff] }
 0x5c1   : > { %2414 = vst [vmem:[#allocation2 + $0x120] sm:$0xf0] %v2398_v60  ;;  %2824 = vrot.lane.b32.xlu1 %v5670_v17, %s6488_s21  ;;  %v3319_v27 = vpack.c.bf16 %v3231_v20, %v3223_v18  ;;  %vm6654_vm1 = vcmask 900096  }
 0x5c2   : > { %v2512_v59 = vpop.permute.xlu0 %2511  ;;  %v5827_v54 = vpop.permute.xlu1 %2471 }
 0x5c3   : > { %3403 = vmatpush1.bf16.msra.mxu0 %v3319_v27  ;;  %v2525_v38 = vsel %vm6645_vm6, %v5478_v3, %v2512_v59  ;;  %v2526_v26 = vsel %vm6647_vm2, %v2512_v59, %v6646_v61  ;;  %v2484_v29 = vsel %vm6648_vm0, %v5508_v11, %v5827_v54  ;;  %v6649_v3 = vld [vmem:[#allocation24_spill] sm:$0xff]  ;;  %vm6655_vm6 = vmmov %vm6654_vm1 }
 0x5c4   : > { %2541 = vst [vmem:[#allocation2 + $0x358] sm:$0xf] %v2525_v38  ;;  %2542 = vst [vmem:[#allocation2 + $0x1c0] sm:$0xf] %v2526_v26  ;;  %2952 = vrot.lane.b32.xlu0 %v5199_v49, %s6559_s16  ;;  %v3208_v13 = vld [vmem:[#allocation2 + $0x330] sm:$0xff] }
 0x5c5   : > { %2500 = vst [vmem:[#allocation2 + $0x170] sm:$0xf0] %v2484_v29  ;;  %2866 = vrot.lane.b32.xlu1 %v5172_v41, %s6489_s20  ;;  %vm6656_vm2 = vmmov %vm6654_vm1 }
 0x5c6   : > { %v5840_v62 = vpop.permute.xlu0 %2082  ;;  %v5842_v21 = vpop.permute.xlu1 %2555  ;;  %vm6657_vm0 = vmmov %vm6654_vm1 }
 0x5c7   : > { %v2099_v4 = vsel %vm394_vm9, %v5840_v62, %v6649_v3  ;;  %v2568_v11 = vsel %vm6650_vm5, %v5516_v28, %v5842_v21  ;;  %v3225_v14 = vld [vmem:[#allocation2 + $0xb8] sm:$0xff]  ;;  %vm6658_vm5 = vcmask 154624  }
 0x5c8   : > { %v3216_v24 = vld [vmem:[#allocation2 + $0x120] sm:$0xff]  ;;  %2115 = vst [vmem:[#allocation2 + $0xd0] sm:$0xf] %v2099_v4  ;;  %2584 = vst [vmem:[#allocation2 + $0x1c0] sm:$0xf0] %v2568_v11  ;;  %2994 = vrot.lane.b32.xlu0 %v5850_v56, %s6566_s0 }
 0x5c9   : > { %2912 = vrot.lane.b32.xlu1 %v5754_v23, %s6564_s28  ;;  %v3312_v22 = vpack.c.bf16 %v3216_v24, %v3208_v13 }
 0x5ca   : > { %v5856_v8 = vpop.permute.xlu0 %2171  ;;  %v2296_v36 = vpop.permute.xlu1 %2295 }
 0x5cb   : > { %3404 = vmatprep.subr.bf16.mxu0 %v3312_v22  ;;  %v2188_v28 = vsel %vm485_vm11, %v5856_v8, %v6651_v42  ;;  %v2313_v9 = vsel %vm614_vm13, %v2296_v36, %v6640_v40  ;;  %v3233_v39 = vld [vmem:[#allocation2 + $0x358] sm:$0xff]  ;;  %v6652_v40 = vld [vmem:[#allocation18_spill] sm:$0xff] }
 0x5cc   : > { %2204 = vst [vmem:[#allocation2 + $0x110] sm:$0xf] %v2188_v28  ;;  %2329 = vst [vmem:[#allocation2 + $0x28] sm:$0xf0] %v2313_v9  ;;  %3036 = vrot.lane.b32.xlu0 %v5199_v49, %s6561_s29  ;;  %v3226_v30 = vld [vmem:[#allocation2 + $0x170] sm:$0xff]  ;;  %v3321_v37 = vpack.c.bf16 %v3233_v39, %v3225_v14 }
 0x5cd   : > { %2954 = vrot.lane.b32.xlu1 %v5850_v56, %s6559_s16 }
 0x5ce   : > { %v5867_v53 = vpop.permute.xlu0 %2213  ;;  %v2380_v5 = vpop.permute.xlu1 %2379 }
 0x5cf   : > { %v2397_v10 = vsel %vm700_vm8, %v2380_v5, %v6644_v55  ;;  %v3234_v16 = vld [vmem:[#allocation2 + $0x1c0] sm:$0xff] }
 0x5d0   : > { %2413 = vst [vmem:[#allocation2 + $0x350] sm:$0xf0] %v2397_v10  ;;  %2599 = vrot.lane.b32.xlu0 %v6652_v40, %s6490_s24  ;;  %v3322_v52 = vpack.c.bf16 %v3234_v16, %v3226_v30 }
 0x5d1   : > { %2996 = vrot.lane.b32.xlu1 %v5754_v23, %s6566_s0 }
 0x5d2   : > { %v2260_v19 = vpop.permute.xlu0 %2259  ;;  %3443 = vmatprep.subr.bf16.mxu1 %v3322_v52  ;;  %v5875_v47 = vpop.permute.xlu1 %2131 }
 0x5d3   : > { %v2273_v46 = vsel %vm571_vm14, %v5502_v51, %v2260_v19  ;;  %v2146_v55 = vsel %vm6654_vm1, %v6653_v57, %v5875_v47  ;;  %3444 = vmatpush1.bf16.msra.mxu1 %v3321_v37  ;;  %v3207_v27 = vld [vmem:[#allocation2 + $0x28] sm:$0xff]  ;;  %vm6660_vm1 = vcmask 146432  }
 0x5d4   : > { %2289 = vst [vmem:[#allocation2 + $0x2d0] sm:$0xf] %v2273_v46  ;;  %2162 = vst [vmem:[#allocation2 + $0xd0] sm:$0xf0] %v2146_v55  ;;  %2654 = vrot.lane.b32.xlu0 %v5172_v41, %s6491_s22 }
 0x5d5   : > { %3038 = vrot.lane.b32.xlu1 %v5850_v56, %s6561_s29 }
 0x5d6   : > { %v2302_v60 = vpop.permute.xlu0 %2301  ;;  %v5886_v18 = vpop.permute.xlu1 %2215 }
 0x5d7   : > { %v2315_v20 = vsel %vm614_vm13, %v5801_v50, %v2302_v60  ;;  %v2230_v51 = vsel %vm528_vm15, %v5867_v53, %v5886_v18  ;;  %v3215_v59 = vld [vmem:[#allocation2 + $0x350] sm:$0xff] }
 0x5d8   : > { %2331 = vst [vmem:[#allocation2 + $0x2d0] sm:$0xf0] %v2315_v20  ;;  %2246 = vst [vmem:[#allocation2 + $0x110] sm:$0xf0] %v2230_v51  ;;  %2696 = vrot.lane.b32.xlu0 %v5194_v44, %s6492_s25  ;;  %v3311_v38 = vpack.c.bf16 %v3215_v59, %v3207_v27 }
 0x5d9   : > { %2601 = vrot.lane.b32.xlu1 %v5172_v41, %s6490_s24 }
 0x5da   : > { %v2344_v26 = vpop.permute.xlu0 %2343  ;;  %3405 = vmatpush1.bf16.msra.mxu0 %v3311_v38  ;;  %v5897_v29 = vpop.permute.xlu1 %2261 }
 0x5db   : > { %v2357_v50 = vsel %vm657_vm12, %v6639_v43, %v2344_v26  ;;  %v2274_v4 = vsel %vm571_vm14, %v2260_v19, %v5897_v29  ;;  %v3192_v22 = vld [vmem:[#allocation2 + $0xd0] sm:$0xff] }
 0x5dc   : > { %2373 = vst [vmem:[#allocation2 + $0x1a0] sm:$0xf] %v2357_v50  ;;  %2290 = vst [vmem:[#allocation2 + $0x198] sm:$0xf] %v2274_v4  ;;  %2742 = vrot.lane.b32.xlu0 %v5850_v56, %s6567_s1 }
 0x5dd   : > { %2656 = vrot.lane.b32.xlu1 %v5670_v17, %s6491_s22 }
 0x5de   : > { %v2386_v11 = vpop.permute.xlu0 %2385  ;;  %v5907_v13 = vpop.permute.xlu1 %2303 }
 0x5df   : > { %v2399_v24 = vsel %vm700_vm8, %v5814_v63, %v2386_v11  ;;  %v2316_v43 = vsel %vm614_vm13, %v2302_v60, %v5907_v13  ;;  %v3200_v36 = vld [vmem:[#allocation2 + $0x110] sm:$0xff] }
 0x5e0   : > { %2415 = vst [vmem:[#allocation2 + $0x1a0] sm:$0xf0] %v2399_v24  ;;  %2332 = vst [vmem:[#allocation2 + $0x198] sm:$0xf0] %v2316_v43  ;;  %2784 = vrot.lane.b32.xlu0 %v5199_v49, %s6565_s11  ;;  %v3304_v28 = vpack.c.bf16 %v3200_v36, %v3192_v22  ;;  %v3209_v27 = vld [vmem:[#allocation2 + $0x2d0] sm:$0xff] }
 0x5e1   : > { %2698 = vrot.lane.b32.xlu1 %v5172_v41, %s6492_s25 }
 0x5e2   : > { %v2081_v9 = vpop.permute.xlu0 %2080  ;;  %3406 = vmatprep.subr.bf16.mxu0 %v3304_v28  ;;  %v5917_v5 = vpop.permute.xlu1 %2345 }
 0x5e3   : > { %v2098_v63 = vsel %vm394_vm9, %v2081_v9, %v5840_v62  ;;  %v2358_v39 = vsel %vm657_vm12, %v2344_v26, %v5917_v5 }
 0x5e4   : > { %2114 = vst [vmem:[#allocation2 + $0x2b0] sm:$0xf] %v2098_v63  ;;  %2374 = vst [vmem:[#allocation2 + $0x260] sm:$0xf] %v2358_v39  ;;  %2826 = vrot.lane.b32.xlu0 %v5850_v56, %s6488_s21 }
 0x5e5   : > { %2744 = vrot.lane.b32.xlu1 %v5754_v23, %s6567_s1 }
 0x5e6   : > { %v2170_v10 = vpop.permute.xlu0 %2169  ;;  %v5927_v30 = vpop.permute.xlu1 %2387 }
 0x5e7   : > { %v2187_v16 = vsel %vm485_vm11, %v2170_v10, %v5856_v8  ;;  %v2400_v62 = vsel %vm700_vm8, %v2386_v11, %v5927_v30  ;;  %v3217_v55 = vld [vmem:[#allocation2 + $0x1a0] sm:$0xff]  ;;  %v3210_v20 = vld [vmem:[#allocation2 + $0x198] sm:$0xff] }
 0x5e8   : > { %2203 = vst [vmem:[#allocation2 + $0x108] sm:$0xf] %v2187_v16  ;;  %2416 = vst [vmem:[#allocation2 + $0x260] sm:$0xf0] %v2400_v62  ;;  %2868 = vrot.lane.b32.xlu0 %v5199_v49, %s6489_s20  ;;  %v3313_v59 = vpack.c.bf16 %v3217_v55, %v3209_v27  ;;  %v6659_v16 = vmov 0  }
 0x5e9   : > { %2786 = vrot.lane.b32.xlu1 %v5850_v56, %s6565_s11 }
 0x5ea   : > { %v2087_v52 = vpop.permute.xlu0 %2086  ;;  %v2128_v14 = vpop.permute.xlu1 %2127 }
 0x5eb   : > { %v2100_v37 = vsel %vm394_vm9, %v6649_v3, %v2087_v52  ;;  %v2145_v19 = vsel %vm6655_vm6, %v2128_v14, %v6653_v57  ;;  %vm6661_vm6 = vcmask 138240  }
 0x5ec   : > { %2116 = vst [vmem:[#allocation2 + $0x10] sm:$0xf] %v2100_v37  ;;  %2161 = vst [vmem:[#allocation2 + $0x2b0] sm:$0xf0] %v2145_v19  ;;  %2431 = vrot.lane.b32.xlu0 %v6652_v40, %s6493_s26 }
 0x5ed   : > { %2828 = vrot.lane.b32.xlu1 %v5754_v23, %s6488_s21 }
 0x5ee   : > { %v2134_v8 = vpop.permute.xlu0 %2133  ;;  %v2212_v46 = vpop.permute.xlu1 %2211 }
 0x5ef   : > { %v2147_v60 = vsel %vm6656_vm2, %v5875_v47, %v2134_v8  ;;  %v2229_v3 = vsel %vm528_vm15, %v2212_v46, %v5867_v53  ;;  %v3218_v51 = vld [vmem:[#allocation2 + $0x260] sm:$0xff]  ;;  %vm6662_vm2 = vmmov %vm6658_vm5 }
 0x5f0   : > { %2163 = vst [vmem:[#allocation2 + $0x10] sm:$0xf0] %v2147_v60  ;;  %2245 = vst [vmem:[#allocation2 + $0x108] sm:$0xf0] %v2229_v3  ;;  %2473 = vrot.lane.b32.xlu0 %v5170_v12, %s6494_s27  ;;  %v3314_v57 = vpack.c.bf16 %v3218_v51, %v3210_v20 }
 0x5f1   : > { %2870 = vrot.lane.b32.xlu1 %v5850_v56, %s6489_s20 }
 0x5f2   : > { %v2176_v38 = vpop.permute.xlu0 %2175  ;;  %3445 = vmatprep.subr.bf16.mxu1 %v3314_v57  ;;  %v5953_v26 = vpop.permute.xlu1 %2088 }
 0x5f3   : > { %v2189_v53 = vsel %vm485_vm11, %v6651_v42, %v2176_v38  ;;  %v2101_v47 = vsel %vm394_vm9, %v2087_v52, %v5953_v26  ;;  %3446 = vmatpush1.bf16.msra.mxu1 %v3313_v59  ;;  %v3191_v24 = vld [vmem:[#allocation2 + $0x2b0] sm:$0xff] }
 0x5f4   : > { %2205 = vst [vmem:[#allocation2 + $0x90] sm:$0xf] %v2189_v53  ;;  %2117 = vst [vmem:[#allocation2 + $0x48] sm:$0xf] %v2101_v47  ;;  %2515 = vrot.lane.b32.xlu0 %v6652_v40, %s6496_s15 }
 0x5f5   : > { %2433 = vrot.lane.b32.xlu1 %v5172_v41, %s6493_s26 }
 0x5f6   : > { %v2218_v50 = vpop.permute.xlu0 %2217  ;;  %v5963_v4 = vpop.permute.xlu1 %2135 }
 0x5f7   : > { %v2231_v11 = vsel %vm528_vm15, %v5886_v18, %v2218_v50  ;;  %v2148_v42 = vsel %vm6657_vm0, %v2134_v8, %v5963_v4  ;;  %v3199_v43 = vld [vmem:[#allocation2 + $0x108] sm:$0xff]  ;;  %v5978_v18 = vld [vmem:[%s6365_s6] sm:$0x3]  ;;  %vm6663_vm0 = vmmov %vm6660_vm1 }
 0x5f8   : > { %2247 = vst [vmem:[#allocation2 + $0x90] sm:$0xf0] %v2231_v11  ;;  %2164 = vst [vmem:[#allocation2 + $0x48] sm:$0xf0] %v2148_v42  ;;  %2557 = vrot.lane.b32.xlu0 %v5170_v12, %s6497_s19  ;;  %v3303_v22 = vpack.c.bf16 %v3199_v43, %v3191_v24  ;;  %v3193_v51 = vld [vmem:[#allocation2 + $0x10] sm:$0xff] }
 0x5f9   : > { %2475 = vrot.lane.b32.xlu1 %v5194_v44, %s6494_s27 }
 0x5fa   : > { %v3075_v36 = vpop.permute.xlu0 %3074  ;;  %3407 = vmatpush1.bf16.msra.mxu0 %v3303_v22  ;;  %v5973_v28 = vpop.permute.xlu1 %2177 }
 0x5fb   : > { %v3086_v9 = vsel %vm6658_vm5, %v5613_v33, %v3075_v36  ;;  %v2190_v63 = vsel %vm485_vm11, %v2176_v38, %v5973_v28  ;;  %vm6664_vm5 = vmmov %vm6661_vm6 }
 0x5fc   : > { %3102 = vst [vmem:[#allocation2 + $0x88] sm:$0xf] %v3086_v9  ;;  %2206 = vst [vmem:[#allocation2 + $0x318] sm:$0xf] %v2190_v63  ;;  %2603 = vrot.lane.b32.xlu0 %v5670_v17, %s6490_s24 }
 0x5fd   : > { %2517 = vrot.lane.b32.xlu1 %v5172_v41, %s6496_s15  ;;  %3771 = vmatmul.mubr.msk.bf16.vlgmr.msra.gmra.mxu0 %vm1687_vm10, %v5978_v18 }
 0x5fe   : > { %v3117_v39 = vpop.permute.xlu0 %3116  ;;  %v5990_v10 = vpop.permute.xlu1 %2219  ;;  %3506 = vmatprep.mubr.bf16.mxu0 %v6659_v16 }
 0x5ff   : > { %v3128_v33 = vsel %vm6660_vm1, %v5340_v48, %v3117_v39  ;;  %v2232_v62 = vsel %vm528_vm15, %v2218_v50, %v5990_v10  ;;  %v3201_v46 = vld [vmem:[#allocation2 + $0x90] sm:$0xff]  ;;  %v3194_v3 = vld [vmem:[#allocation2 + $0x48] sm:$0xff]  ;;  %vm6665_vm1 = vcmask 228352  }
 0x600   : > { %3144 = vst [vmem:[#allocation2 + $0x88] sm:$0xf0] %v3128_v33  ;;  %2248 = vst [vmem:[#allocation2 + $0x318] sm:$0xf0] %v2232_v62  ;;  %2658 = vrot.lane.b32.xlu0 %v5850_v56, %s6491_s22  ;;  %v3305_v57 = vpack.c.bf16 %v3201_v46, %v3193_v51 }
 0x601   : > { %2559 = vrot.lane.b32.xlu1 %v5194_v44, %s6497_s19 }
 0x602   : > { %v3159_v52 = vpop.permute.xlu0 %3158  ;;  %v3077_v14 = vpop.permute.xlu1 %3076 }
 0x603   : > { %v3170_v37 = vsel %vm6661_vm6, %v5627_v7, %v3159_v52  ;;  %v3087_v19 = vsel %vm6662_vm2, %v3075_v36, %v3077_v14  ;;  %vm6666_vm6 = vcmask 1045504  }
 0x604   : > { %3186 = vst [vmem:[#allocation2] sm:$0xf] %v3170_v37  ;;  %3103 = vst [vmem:[#allocation2 + $0x368] sm:$0xf] %v3087_v19  ;;  %2700 = vrot.lane.b32.xlu0 %v5199_v49, %s6492_s25 }
 0x605   : > { %2605 = vrot.lane.b32.xlu1 %v5850_v56, %s6490_s24  ;;  %vm6667_vm2 = vmmov %vm6666_vm6 }
 0x606   : > { %v2907_v48 = vpop.permute.xlu0 %2906  ;;  %v3119_v8 = vpop.permute.xlu1 %3118 }
 0x607   : > { %v2918_v55 = vsel %vm1229_vm3, %v5664_v2, %v2907_v48  ;;  %v3129_v60 = vsel %vm6663_vm0, %v3117_v39, %v3119_v8  ;;  %v3202_v7 = vld [vmem:[#allocation2 + $0x318] sm:$0xff]  ;;  %v3291_v11 = vld [vmem:[#allocation2 + $0x88] sm:$0xff]  ;;  %vm6668_vm0 = vcmask 154624  }
 0x608   : > { %2934 = vst [vmem:[#allocation2 + $0x188] sm:$0xf] %v2918_v55  ;;  %3145 = vst [vmem:[#allocation2 + $0x368] sm:$0xf0] %v3129_v60  ;;  %2263 = vrot.lane.b32.xlu0 %v6652_v40, %s6570_s4  ;;  %v3306_v20 = vpack.c.bf16 %v3202_v7, %v3194_v3 }
 0x609   : > { %2660 = vrot.lane.b32.xlu1 %v5754_v23, %s6491_s22  ;;  %s6756_s22 = sld [smem:[#allocation33_spill]] }
 0x60a   : > { %v2949_v27 = vpop.permute.xlu0 %2948  ;;  %3447 = vmatprep.subr.bf16.mxu1 %v3306_v20  ;;  %v3161_v59 = vpop.permute.xlu1 %3160 }
 0x60b   : > { %v2960_v2 = vsel %vm1272_vm4, %v5384_v31, %v2949_v27  ;;  %v3171_v38 = vsel %vm6664_vm5, %v3159_v52, %v3161_v59  ;;  %3448 = vmatpush1.bf16.msra.mxu1 %v3305_v57  ;;  %v3299_v50 = vld [vmem:[#allocation2] sm:$0xf]  ;;  %vm6669_vm5 = vmmov %vm6665_vm1 }
 0x60c   : > { %2976 = vst [vmem:[#allocation2 + $0x188] sm:$0xf0] %v2960_v2  ;;  %3187 = vst [vmem:[#allocation2 + $0x2a0] sm:$0xf] %v3171_v38  ;;  %2305 = vrot.lane.b32.xlu0 %v5170_v12, %s6568_s2  ;;  %v3355_v43 = vpack.c.bf16 %v3299_v50, %v3291_v11 }
 0x60d   : > { %2702 = vrot.lane.b32.xlu1 %v5850_v56, %s6492_s25 }
 0x60e   : > { %v2991_v23 = vpop.permute.xlu0 %2990  ;;  %v6022_v53 = vpop.permute.xlu1 %2908  ;;  %3773 = vmatmul.mubr.msk.bf16.vlgmr.msra.gmra.mxu1 %vm1687_vm10, %v5978_v18 }
 0x60f   : > { %v3002_v31 = vsel %vm6665_vm1, %v5681_v34, %v2991_v23  ;;  %v2919_v47 = vsel %vm1229_vm3, %v2907_v48, %v6022_v53  ;;  %3547 = vmatprep.mubr.bf16.mxu1 %v6659_v16  ;;  %v3292_v36 = vld [vmem:[#allocation2 + $0x368] sm:$0xff]  ;;  %vm6670_vm1 = vcmask 146432  }
 0x610   : > { %3018 = vst [vmem:[#allocation2 + $0x280] sm:$0xf] %v3002_v31  ;;  %2935 = vst [vmem:[#allocation2 + $0x238] sm:$0xf] %v2919_v47  ;;  %2347 = vrot.lane.b32.xlu0 %v6652_v40, %s6571_s5 }
 0x611   : > { %2265 = vrot.lane.b32.xlu1 %v5172_v41, %s6570_s4 }
 0x612   : > { %v3033_v42 = vpop.permute.xlu0 %3032 }
 0x613   : > { %v6035_v24 = vpop.permute.xlu1 %2950  ;;  %v3044_v34 = vsel %vm1358_vm7, %v5392_v32, %v3033_v42  ;;  %v3300_v9 = vld [vmem:[#allocation2 + $0x2a0] sm:$0xf]  ;;  %v3381_v32 = vsel %vm6667_vm2, %v3355_v43, 0  ;;  %vm6672_vm2 = vmmov %vm6668_vm0  ;;  %v3275_v2 = vld [vmem:[#allocation2 + $0x188] sm:$0xff] }
 0x614   : > { %v2961_v22 = vsel %vm1272_vm4, %v2949_v27, %v6035_v24  ;;  %3060 = vst [vmem:[#allocation2 + $0x280] sm:$0xf0] %v3044_v34  ;;  %2389 = vrot.lane.b32.xlu0 %v5170_v12, %s6569_s3  ;;  %v3356_v63 = vpack.c.bf16 %v3300_v9, %v3292_v36 }
 0x615   : > { %2977 = vst [vmem:[#allocation2 + $0x238] sm:$0xf0] %v2961_v22  ;;  %2307 = vrot.lane.b32.xlu1 %v5194_v44, %s6568_s2 }
 0x616   : > { %v3079_v39 = vpop.permute.xlu0 %3078  ;;  %3774 = vmatprep.subr.msk.bf16.mxu0 %vm6666_vm6, %v3356_v63  ;;  %vm6671_vm6 = vcmask 138240  }
 0x617   : > { %v6046_v16 = vpop.permute.xlu1 %2992  ;;  %v3088_v33 = vsel %vm6668_vm0, %v3077_v14, %v3079_v39  ;;  %3477 = vmatpush1.bf16.msra.mxu0 %v3381_v32  ;;  %vm6673_vm0 = vcmask 965632  }
 0x618   : > { %v3003_v62 = vsel %vm6669_vm5, %v2991_v23, %v6046_v16  ;;  %3104 = vst [vmem:[#allocation2 + $0x180] sm:$0xf] %v3088_v33  ;;  %2435 = vrot.lane.b32.xlu0 %v5670_v17, %s6493_s26  ;;  %vm6674_vm5 = vmmov %vm6670_vm1 }
 0x619   : > { %3019 = vst [vmem:[#allocation2 + $0x300] sm:$0xf] %v3003_v62  ;;  %2349 = vrot.lane.b32.xlu1 %v5172_v41, %s6571_s5 }
 0x61a   : > { %v3121_v52 = vpop.permute.xlu0 %3120 }
 0x61b   : > { %v6056_v37 = vpop.permute.xlu1 %3034  ;;  %v3130_v19 = vsel %vm6670_vm1, %v3119_v8, %v3121_v52  ;;  %v3283_v7 = vld [vmem:[#allocation2 + $0x280] sm:$0xff]  ;;  %vm6675_vm1 = vcmask 957440  }
 0x61c   : > { %v3045_v14 = vsel %vm1358_vm7, %v3033_v42, %v6056_v37  ;;  %3146 = vst [vmem:[#allocation2 + $0x180] sm:$0xf0] %v3130_v19  ;;  %2477 = vrot.lane.b32.xlu0 %v5172_v41, %s6494_s27  ;;  %v3276_v57 = vld [vmem:[#allocation2 + $0x238] sm:$0xff]  ;;  %v3347_v38 = vpack.c.bf16 %v3283_v7, %v3275_v2 }
 0x61d   : > { %3061 = vst [vmem:[#allocation2 + $0x300] sm:$0xf0] %v3045_v14  ;;  %2391 = vrot.lane.b32.xlu1 %v5194_v44, %s6569_s3 }
 0x61e   : > { %v3163_v48 = vpop.permute.xlu0 %3162 }
 0x61f   : > { %v3081_v46 = vpop.permute.xlu1 %3080  ;;  %v3172_v55 = vsel %vm6671_vm6, %v3161_v59, %v3163_v48 }
 0x620   : > { %v3089_v60 = vsel %vm6672_vm2, %v3079_v39, %v3081_v46  ;;  %3188 = vst [vmem:[#allocation2 + $0x1b0] sm:$0xf] %v3172_v55  ;;  %2519 = vrot.lane.b32.xlu0 %v5670_v17, %s6496_s15  ;;  %vm6676_vm2 = vcmask 318464  }
 0x621   : > { %3105 = vst [vmem:[#allocation2 + $0x250] sm:$0xf] %v3089_v60  ;;  %2437 = vrot.lane.b32.xlu1 %v5850_v56, %s6493_s26 }
 0x622   : > { %v2739_v8 = vpop.permute.xlu0 %2738 }
 0x623   : > { %v3123_v3 = vpop.permute.xlu1 %3122  ;;  %v2750_v20 = vsel %vm6673_vm0, %v5704_v25, %v2739_v8  ;;  %v3293_v34 = vld [vmem:[#allocation2 + $0x180] sm:$0xff] }
 0x624   : > { %v3131_v51 = vsel %vm6674_vm5, %v3121_v52, %v3123_v3  ;;  %v3284_v27 = vld [vmem:[#allocation2 + $0x300] sm:$0xff]  ;;  %2766 = vst [vmem:[#allocation2 + $0x338] sm:$0xf] %v2750_v20  ;;  %2561 = vrot.lane.b32.xlu0 %v5172_v41, %s6497_s19  ;;  %vm6677_vm5 = vcmask 310272  }
 0x625   : > { %3147 = vst [vmem:[#allocation2 + $0x250] sm:$0xf0] %v3131_v51  ;;  %2479 = vrot.lane.b32.xlu1 %v5199_v49, %s6494_s27  ;;  %v3348_v59 = vpack.c.bf16 %v3284_v27, %v3276_v57 }
 0x626   : > { %v2781_v23 = vpop.permute.xlu0 %2780 }
 0x627   : > { %3478 = vmatprep.subr.bf16.mxu0 %v3348_v59  ;;  %v3165_v31 = vpop.permute.xlu1 %3164  ;;  %v2792_v25 = vsel %vm6675_vm1, %v5432_v15, %v2781_v23  ;;  %v3301_v43 = vld [vmem:[#allocation2 + $0x1b0] sm:$0xf] }
 0x628   : > { %v3173_v47 = vsel %vm6671_vm6, %v3163_v48, %v3165_v31  ;;  %3479 = vmatpush1.bf16.msra.mxu0 %v3347_v38  ;;  %2808 = vst [vmem:[#allocation2 + $0x338] sm:$0xf0] %v2792_v25  ;;  %2090 = vrot.lane.b32.xlu0 %v6652_v40, %s6572_s13  ;;  %v3357_v9 = vpack.c.bf16 %v3301_v43, %v3293_v34  ;;  %vm6678_vm6 = vcmask 1045504  }
 0x629   : > { %3189 = vst [vmem:[#allocation2 + $0x150] sm:$0xf] %v3173_v47  ;;  %2521 = vrot.lane.b32.xlu1 %v5850_v56, %s6496_s15 }
 0x62a   : > { %v2823_v50 = vpop.permute.xlu0 %2822 }
 0x62b   : > { %v6085_v11 = vpop.permute.xlu1 %2740  ;;  %v2834_v42 = vsel %vm6676_vm2, %v5717_v6, %v2823_v50  ;;  %vm6679_vm2 = vmmov %vm6678_vm6 }
 0x62c   : > { %v2751_v15 = vsel %vm6673_vm0, %v2739_v8, %v6085_v11  ;;  %2850 = vst [vmem:[#allocation2 + $0x80] sm:$0xf] %v2834_v42  ;;  %2137 = vrot.lane.b32.xlu0 %v5170_v12, %s6573_s10  ;;  %v3294_v39 = vld [vmem:[#allocation2 + $0x250] sm:$0xff]  ;;  %vm6680_vm0 = vcmask 318464  }
 0x62d   : > { %2767 = vst [vmem:[#allocation2 + $0x230] sm:$0xf] %v2751_v15  ;;  %2563 = vrot.lane.b32.xlu1 %v5199_v49, %s6497_s19 }
 0x62e   : > { %v2865_v22 = vpop.permute.xlu0 %2864 }
 0x62f   : > { %v6095_v36 = vpop.permute.xlu1 %2782  ;;  %v2876_v6 = vsel %vm6677_vm5, %v5440_v58, %v2865_v22  ;;  %v3387_v58 = vsel %vm6679_vm2, %v3357_v9, 0  ;;  %vm6685_vm2 = vcmask 973824  }
 0x630   : > { %v2793_v63 = vsel %vm6675_vm1, %v2781_v23, %v6095_v36  ;;  %v3302_v32 = vld [vmem:[#allocation2 + $0x150] sm:$0xf]  ;;  %2892 = vst [vmem:[#allocation2 + $0x80] sm:$0xf0] %v2876_v6  ;;  %2179 = vrot.lane.b32.xlu0 %v6652_v40, %s6574_s14  ;;  %vm6681_vm1 = vcmask 228352  }
 0x631   : > { %2809 = vst [vmem:[#allocation2 + $0x230] sm:$0xf0] %v2793_v63  ;;  %2092 = vrot.lane.b32.xlu1 %v5172_v41, %s6572_s13  ;;  %v3358_v33 = vpack.c.bf16 %v3302_v32, %v3294_v39 }
 0x632   : > { %v2911_v62 = vpop.permute.xlu0 %2910 }
 0x633   : > { %3776 = vmatprep.subr.msk.bf16.mxu1 %vm6678_vm6, %v3358_v33  ;;  %v6106_v52 = vpop.permute.xlu1 %2824  ;;  %v2920_v19 = vsel %vm1229_vm3, %v6022_v53, %v2911_v62  ;;  %vm6684_vm6 = vcmask 1039360  }
 0x634   : > { %v2835_v14 = vsel %vm6680_vm0, %v2823_v50, %v6106_v52  ;;  %3518 = vmatpush1.bf16.msra.mxu1 %v3387_v58  ;;  %2936 = vst [vmem:[#allocation2 + $0x2c8] sm:$0xf] %v2920_v19  ;;  %2221 = vrot.lane.b32.xlu0 %v5170_v12, %s6506_s23 }
 0x635   : > { %2851 = vst [vmem:[#allocation2 + $0x1f0] sm:$0xf] %v2835_v14  ;;  %2139 = vrot.lane.b32.xlu1 %v5194_v44, %s6573_s10 }
 0x636   : > { %v2953_v40 = vpop.permute.xlu0 %2952 }
 0x637   : > { %v6117_v48 = vpop.permute.xlu1 %2866  ;;  %v2962_v46 = vsel %vm1272_vm4, %v6035_v24, %v2953_v40  ;;  %v3267_v7 = vld [vmem:[#allocation2 + $0x80] sm:$0xff] }
 0x638   : > { %v2877_v53 = vsel %vm6677_vm5, %v2865_v22, %v6117_v48  ;;  %2978 = vst [vmem:[#allocation2 + $0x2c8] sm:$0xf0] %v2962_v46  ;;  %2267 = vrot.lane.b32.xlu0 %v5670_v17, %s6570_s4  ;;  %v3260_v57 = vld [vmem:[#allocation2 + $0x230] sm:$0xff]  ;;  %vm6688_vm5 = vmmov %vm6684_vm6 }
 0x639   : > { %2893 = vst [vmem:[#allocation2 + $0x1f0] sm:$0xf0] %v2877_v53  ;;  %2181 = vrot.lane.b32.xlu1 %v5172_v41, %s6574_s14 }
 0x63a   : > { %v2995_v12 = vpop.permute.xlu0 %2994 }
 0x63b   : > { %v2913_v55 = vpop.permute.xlu1 %2912  ;;  %v3004_v60 = vsel %vm6681_vm1, %v6046_v16, %v2995_v12 }
 0x63c   : > { %v2921_v8 = vsel %vm1229_vm3, %v2911_v62, %v2913_v55  ;;  %3020 = vst [vmem:[#allocation2 + $0x308] sm:$0xf] %v3004_v60  ;;  %2309 = vrot.lane.b32.xlu0 %v5172_v41, %s6568_s2  ;;  %vm6682_vm3 = vcmask 7168  }
 0x63d   : > { %2937 = vst [vmem:[#allocation2 + $0x70] sm:$0xf] %v2921_v8  ;;  %2223 = vrot.lane.b32.xlu1 %v5194_v44, %s6506_s23  ;;  %v3259_v44 = vld [vmem:[#allocation2 + $0x338] sm:$0xff]  ;;  %vm6686_vm0 = vmmov %vm6682_vm3 }
 0x63e   : > { %v3037_v24 = vpop.permute.xlu0 %3036  ;;  %v3339_v59 = vpack.c.bf16 %v3267_v7, %v3259_v44 }
 0x63f   : > { %v2955_v3 = vpop.permute.xlu1 %2954  ;;  %v3046_v20 = vsel %vm1358_vm7, %v6056_v37, %v3037_v24  ;;  %v3277_v32 = vld [vmem:[#allocation2 + $0x2c8] sm:$0xff] }
 0x640   : > { %v2963_v51 = vsel %vm1272_vm4, %v2953_v40, %v2955_v3  ;;  %v3268_v16 = vld [vmem:[#allocation2 + $0x1f0] sm:$0xff]  ;;  %3062 = vst [vmem:[#allocation2 + $0x308] sm:$0xf0] %v3046_v20  ;;  %2351 = vrot.lane.b32.xlu0 %v5670_v17, %s6571_s5  ;;  %vm6683_vm4 = vmmov %vm6681_vm1  ;;  %vm6689_vm1 = vcmask 957440  }
 0x641   : > { %2979 = vst [vmem:[#allocation2 + $0x70] sm:$0xf0] %v2963_v51  ;;  %2269 = vrot.lane.b32.xlu1 %v5850_v56, %s6570_s4  ;;  %v3340_v27 = vpack.c.bf16 %v3268_v16, %v3260_v57 }
 0x642   : > { %v2600_v2 = vpop.permute.xlu0 %2599 }
 0x643   : > { %3480 = vmatprep.subr.bf16.mxu0 %v3340_v27  ;;  %v2997_v38 = vpop.permute.xlu1 %2996  ;;  %v2611_v37 = vsel %vm6682_vm3, %v5486_v1, %v2600_v2  ;;  %vm6690_vm3 = vmmov %vm6685_vm2 }
 0x644   : > { %v3005_v23 = vsel %vm6683_vm4, %v2995_v12, %v2997_v38  ;;  %3481 = vmatpush1.bf16.msra.mxu0 %v3339_v59  ;;  %2627 = vst [vmem:[#allocation2 + $0x2e8] sm:$0xf] %v2611_v37  ;;  %2393 = vrot.lane.b32.xlu0 %v5172_v41, %s6569_s3  ;;  %vm6691_vm4 = vcmask 318464  }
 0x645   : > { %3021 = vst [vmem:[#allocation2 + $0x290] sm:$0xf] %v3005_v23  ;;  %2311 = vrot.lane.b32.xlu1 %v5199_v49, %s6568_s2 }
 0x646   : > { %v2655_v31 = vpop.permute.xlu0 %2654 }
 0x647   : > { %v3039_v25 = vpop.permute.xlu1 %3038  ;;  %v2666_v47 = vsel %vm6684_vm6, %v5768_v35, %v2655_v31  ;;  %v3285_v22 = vld [vmem:[#allocation2 + $0x308] sm:$0xff] }
 0x648   : > { %v3047_v50 = vsel %vm1358_vm7, %v3037_v24, %v3039_v25  ;;  %2682 = vst [vmem:[#allocation2 + $0x138] sm:$0xf] %v2666_v47  ;;  %2094 = vrot.lane.b32.xlu0 %v5670_v17, %s6572_s13  ;;  %vm6687_vm7 = vcmask 965632   ;;  %v3278_v6 = vld [vmem:[#allocation2 + $0x70] sm:$0xff]  ;;  %v3349_v33 = vpack.c.bf16 %v3285_v22, %v3277_v32 }
 0x649   : > { %3063 = vst [vmem:[#allocation2 + $0x290] sm:$0xf0] %v3047_v50  ;;  %2353 = vrot.lane.b32.xlu1 %v5850_v56, %s6571_s5  ;;  %vm6692_vm6 = vmmov %vm6687_vm7 }
 0x64a   : > { %v2697_v1 = vpop.permute.xlu0 %2696 }
 0x64b   : > { %v6155_v42 = vpop.permute.xlu1 %2601  ;;  %v2708_v15 = vsel %vm6685_vm2, %v5494_v0, %v2697_v1  ;;  %vm6693_vm2 = vcmask 310272   ;;  %v3243_v3 = vld [vmem:[#allocation2 + $0x2e8] sm:$0xff] }
 0x64c   : > { %v2612_v43 = vsel %vm6686_vm0, %v2600_v2, %v6155_v42  ;;  %2724 = vst [vmem:[#allocation2 + $0x138] sm:$0xf0] %v2708_v15  ;;  %2141 = vrot.lane.b32.xlu0 %v5172_v41, %s6573_s10  ;;  %vm6694_vm0 = vmmov %vm6689_vm1 }
 0x64d   : > { %2628 = vst [vmem:[#allocation2 + $0x208] sm:$0xf] %v2612_v43  ;;  %2395 = vrot.lane.b32.xlu1 %v5199_v49, %s6569_s3 }
 0x64e   : > { %v2743_v35 = vpop.permute.xlu0 %2742 }
 0x64f   : > { %v6165_v34 = vpop.permute.xlu1 %2656  ;;  %v2752_v9 = vsel %vm6687_vm7, %v6085_v11, %v2743_v35  ;;  %vm6695_vm7 = vcmask 728064  }
 0x650   : > { %v2667_v0 = vsel %vm6688_vm5, %v2655_v31, %v6165_v34  ;;  %v3286_v63 = vld [vmem:[#allocation2 + $0x290] sm:$0xff]  ;;  %2768 = vst [vmem:[#allocation2 + $0xc0] sm:$0xf] %v2752_v9  ;;  %2183 = vrot.lane.b32.xlu0 %v5670_v17, %s6574_s14  ;;  %v3359_v17 = vld [vmem:[%s6366_s7] sm:$0xf]  ;;  %vm6696_vm5 = vmmov %vm6691_vm4 }
 0x651   : > { %2683 = vst [vmem:[#allocation2 + $0x2c0] sm:$0xf] %v2667_v0  ;;  %2096 = vrot.lane.b32.xlu1 %v5850_v56, %s6572_s13  ;;  %v3350_v39 = vpack.c.bf16 %v3286_v63, %v3278_v6 }
 0x652   : > { %v2785_v62 = vpop.permute.xlu0 %2784 }
 0x653   : > { %3519 = vmatprep.subr.bf16.mxu1 %v3350_v39  ;;  %v6175_v58 = vpop.permute.xlu1 %2698  ;;  %v2794_v11 = vsel %vm6689_vm1, %v6095_v36, %v2785_v62  ;;  %v3251_v12 = vld [vmem:[#allocation2 + $0x138] sm:$0xff]  ;;  %vm6697_vm1 = vcmask 89088  }
 0x654   : > { %v2709_v19 = vsel %vm6690_vm3, %v2697_v1, %v6175_v58  ;;  %3520 = vmatpush1.bf16.msra.mxu1 %v3349_v33  ;;  %2810 = vst [vmem:[#allocation2 + $0xc0] sm:$0xf0] %v2794_v11  ;;  %2225 = vrot.lane.b32.xlu0 %v5172_v41, %s6506_s23  ;;  %v3244_v8 = vld [vmem:[#allocation2 + $0x208] sm:$0xff]  ;;  %v3331_v7 = vpack.c.bf16 %v3251_v12, %v3243_v3  ;;  %vm6698_vm3 = vmmov %vm6693_vm2 }
 0x655   : > { %2725 = vst [vmem:[#allocation2 + $0x2c0] sm:$0xf0] %v2709_v19  ;;  %2143 = vrot.lane.b32.xlu1 %v5199_v49, %s6573_s10 }
 0x656   : > { %v2827_v14 = vpop.permute.xlu0 %2826 }
 0x657   : > { %v2745_v40 = vpop.permute.xlu1 %2744  ;;  %v2836_v36 = vsel %vm6691_vm4, %v6106_v52, %v2827_v14  ;;  %vm6699_vm4 = vcmask 80896  }
 0x658   : > { %v2753_v46 = vsel %vm6692_vm6, %v2743_v35, %v2745_v40  ;;  %2852 = vst [vmem:[#allocation2 + $0x160] sm:$0xf] %v2836_v36  ;;  %3362 = vperm.xlu0 %3818, %v3359_v17   ;;  %vm6700_vm6 = vmmov %vm6695_vm7 }
 0x659   : > { %2769 = vst [vmem:[#allocation2 + $0x128] sm:$0xf] %v2753_v46  ;;  %2185 = vrot.lane.b32.xlu1 %v5850_v56, %s6574_s14  ;;  %s6753_s14 = sld [smem:[#allocation5_spill]] }
 0x65a   : > { %v2869_v41 = vpop.permute.xlu0 %2868 }
 0x65b   : > { %v2787_v53 = vpop.permute.xlu1 %2786  ;;  %v2878_v55 = vsel %vm6693_vm2, %v6117_v48, %v2869_v41  ;;  %vm6701_vm2 = vcmask 72704   ;;  %v3261_v50 = vld [vmem:[#allocation2 + $0xc0] sm:$0xff] }
 0x65c   : > { %v2795_v60 = vsel %vm6694_vm0, %v2785_v62, %v2787_v53  ;;  %v3252_v24 = vld [vmem:[#allocation2 + $0x2c0] sm:$0xff]  ;;  %2894 = vst [vmem:[#allocation2 + $0x160] sm:$0xf0] %v2878_v55  ;;  %vm6702_vm0 = vmmov %vm6697_vm1 }
 0x65d   : > { %2811 = vst [vmem:[#allocation2 + $0x128] sm:$0xf0] %v2795_v60  ;;  %2227 = vrot.lane.b32.xlu1 %v5199_v49, %s6506_s23  ;;  %v3332_v52 = vpack.c.bf16 %v3252_v24, %v3244_v8 }
 0x65e   : > { %v2432_v20 = vpop.permute.xlu0 %2431 }
 0x65f   : > { %3482 = vmatprep.subr.bf16.mxu0 %v3332_v52  ;;  %v2829_v56 = vpop.permute.xlu1 %2828  ;;  %v2443_v51 = vsel %vm6695_vm7, %v6642_v45, %v2432_v20  ;;  %vm6703_vm7 = vcmask 7168  }
 0x660   : > { %v2837_v48 = vsel %vm6696_vm5, %v2827_v14, %v2829_v56  ;;  %3483 = vmatpush1.bf16.msra.mxu0 %v3331_v7  ;;  %2459 = vst [vmem:[#allocation2 + $0x98] sm:$0xf] %v2443_v51  ;;  %vm6704_vm5 = vmmov %vm6699_vm4 }
 0x661   : > { %2853 = vst [vmem:[#allocation2 + $0x60] sm:$0xf] %v2837_v48 }
 0x662   : > { %v2474_v57 = vpop.permute.xlu0 %2473 }
 0x663   : > { %v2871_v16 = vpop.permute.xlu1 %2870  ;;  %v2485_v27 = vsel %vm6697_vm1, %v5827_v54, %v2474_v57  ;;  %v3269_v23 = vld [vmem:[#allocation2 + $0x160] sm:$0xff]  ;;  %vm6705_vm1 = vcmask 1039360  }
 0x664   : > { %v2879_v49 = vsel %vm6698_vm3, %v2869_v41, %v2871_v16  ;;  %2501 = vst [vmem:[#allocation2 + $0x98] sm:$0xf0] %v2485_v27  ;;  %v3262_v25 = vld [vmem:[#allocation2 + $0x128] sm:$0xff]  ;;  %v3341_v1 = vpack.c.bf16 %v3269_v23, %v3261_v50  ;;  %vm6706_vm3 = vmmov %vm6701_vm2 }
 0x665   : > { %2895 = vst [vmem:[#allocation2 + $0x60] sm:$0xf0] %v2879_v49 }
 0x666   : > { %v2516_v44 = vpop.permute.xlu0 %2515 }
 0x667   : > { %v6204_v59 = vpop.permute.xlu1 %2433  ;;  %v2527_v45 = vsel %vm6699_vm4, %v6646_v61, %v2516_v44  ;;  %vm6707_vm4 = vcmask 973824  }
 0x668   : > { %v2444_v2 = vsel %vm6700_vm6, %v2432_v20, %v6204_v59  ;;  %2543 = vst [vmem:[#allocation2 + $0x248] sm:$0xf] %v2527_v45  ;;  %vm6708_vm6 = vmmov %vm6703_vm7 }
 0x669   : > { %2460 = vst [vmem:[#allocation2 + $0xa0] sm:$0xf] %v2444_v2 }
 0x66a   : > { %v2558_v38 = vpop.permute.xlu0 %2557 }
 0x66b   : > { %v6210_v37 = vpop.permute.xlu1 %2475  ;;  %v2569_v54 = vsel %vm6701_vm2, %v5842_v21, %v2558_v38  ;;  %vm6709_vm2 = vmmov %vm6705_vm1  ;;  %v3227_v36 = vld [vmem:[#allocation2 + $0x98] sm:$0xff] }
 0x66c   : > { %v2486_v31 = vsel %vm6702_vm0, %v2474_v57, %v6210_v37  ;;  %v3270_v47 = vld [vmem:[#allocation2 + $0x60] sm:$0xff]  ;;  %2585 = vst [vmem:[#allocation2 + $0x248] sm:$0xf0] %v2569_v54  ;;  %vm6710_vm0 = vmmov %vm6707_vm4 }
 0x66d   : > { %2502 = vst [vmem:[#allocation2 + $0xa0] sm:$0xf0] %v2486_v31  ;;  %v3342_v61 = vpack.c.bf16 %v3270_v47, %v3262_v25 }
 0x66e   : > { %v2604_v15 = vpop.permute.xlu0 %2603 }
 0x66f   : > { %3521 = vmatprep.subr.bf16.mxu1 %v3342_v61  ;;  %v6216_v43 = vpop.permute.xlu1 %2517  ;;  %v2613_v35 = vsel %vm6703_vm7, %v6155_v42, %v2604_v15  ;;  %vm6711_vm7 = vcmask 728064  }
 0x670   : > { %v2528_v21 = vsel %vm6704_vm5, %v2516_v44, %v6216_v43  ;;  %3522 = vmatpush1.bf16.msra.mxu1 %v3341_v1  ;;  %2629 = vst [vmem:[#allocation2 + $0x2f8] sm:$0xf] %v2613_v35  ;;  %vm6712_vm5 = vcmask 89088  }
 0x671   : > { %2544 = vst [vmem:[#allocation2 + $0x340] sm:$0xf] %v2528_v21 }
 0x672   : > { %v2659_v22 = vpop.permute.xlu0 %2658 }
 0x673   : > { %v6222_v9 = vpop.permute.xlu1 %2559  ;;  %v2668_v0 = vsel %vm6705_vm1, %v6165_v34, %v2659_v22  ;;  %v3235_v11 = vld [vmem:[#allocation2 + $0x248] sm:$0xff]  ;;  %vm6713_vm1 = vcmask 80896  }
 0x674   : > { %v2570_v6 = vsel %vm6706_vm3, %v2558_v38, %v6222_v9  ;;  %2684 = vst [vmem:[#allocation2 + $0xe8] sm:$0xf] %v2668_v0  ;;  %v3228_v17 = vld [vmem:[#allocation2 + $0xa0] sm:$0xff]  ;;  %v3323_v46 = vpack.c.bf16 %v3235_v11, %v3227_v36  ;;  %vm6714_vm3 = vmmov %vm6711_vm7 }
 0x675   : > { %2586 = vst [vmem:[#allocation2 + $0x340] sm:$0xf0] %v2570_v6 }
 0x676   : > { %v2701_v63 = vpop.permute.xlu0 %2700 }
 0x677   : > { %v2606_v39 = vpop.permute.xlu1 %2605  ;;  %v2710_v42 = vsel %vm6707_vm4, %v6175_v58, %v2701_v63  ;;  %v3245_v51 = vld [vmem:[#allocation2 + $0x2f8] sm:$0xff]  ;;  %vm6715_vm4 = vcmask 72704  }
 0x678   : > { %v2614_v32 = vsel %vm6708_vm6, %v2604_v15, %v2606_v39  ;;  %2726 = vst [vmem:[#allocation2 + $0xe8] sm:$0xf0] %v2710_v42  ;;  %vm6716_vm6 = vmmov %vm6712_vm5 }
 0x679   : > { %2630 = vst [vmem:[#allocation2 + $0x268] sm:$0xf] %v2614_v32 }
 0x67a   : > { %v2264_v33 = vpop.permute.xlu0 %2263 }
 0x67b   : > { %v2661_v62 = vpop.permute.xlu1 %2660  ;;  %v2275_v34 = vsel %vm571_vm14, %v5897_v29, %v2264_v33 }
 0x67c   : > { %v2669_v19 = vsel %vm6709_vm2, %v2659_v22, %v2661_v62  ;;  %v3236_v14 = vld [vmem:[#allocation2 + $0x340] sm:$0xff]  ;;  %2291 = vst [vmem:[#allocation2 + $0x1a8] sm:$0xf] %v2275_v34  ;;  %vm6717_vm2 = vmmov %vm6713_vm1 }
 0x67d   : > { %2685 = vst [vmem:[#allocation2 + $0x1d8] sm:$0xf] %v2669_v19  ;;  %v3324_v40 = vpack.c.bf16 %v3236_v14, %v3228_v17 }
 0x67e   : > { %v2306_v58 = vpop.permute.xlu0 %2305 }
 0x67f   : > { %3484 = vmatprep.subr.bf16.mxu0 %v3324_v40  ;;  %v2703_v41 = vpop.permute.xlu1 %2702  ;;  %v2317_v53 = vsel %vm614_vm13, %v5907_v13, %v2306_v58  ;;  %v3253_v13 = vld [vmem:[#allocation2 + $0xe8] sm:$0xff] }
 0x680   : > { %v2711_v12 = vsel %vm6710_vm0, %v2701_v63, %v2703_v41  ;;  %3485 = vmatpush1.bf16.msra.mxu0 %v3323_v46  ;;  %2333 = vst [vmem:[#allocation2 + $0x1a8] sm:$0xf0] %v2317_v53  ;;  %v3246_v20 = vld [vmem:[#allocation2 + $0x268] sm:$0xff]  ;;  %v3333_v48 = vpack.c.bf16 %v3253_v13, %v3245_v51  ;;  %vm6718_vm0 = vcmask 900096  }
 0x681   : > { %2727 = vst [vmem:[#allocation2 + $0x1d8] sm:$0xf0] %v2711_v12 }
 0x682   : > { %v2348_v29 = vpop.permute.xlu0 %2347 }
 0x683   : > { %v6237_v55 = vpop.permute.xlu1 %2265  ;;  %v2359_v60 = vsel %vm657_vm12, %v5917_v5, %v2348_v29 }
 0x684   : > { %v2276_v8 = vsel %vm571_vm14, %v2264_v33, %v6237_v55  ;;  %2375 = vst [vmem:[#allocation2 + $0xe0] sm:$0xf] %v2359_v60 }
 0x685   : > { %2292 = vst [vmem:[#allocation2 + $0x158] sm:$0xf] %v2276_v8 }
 0x686   : > { %v2390_v24 = vpop.permute.xlu0 %2389 }
 0x687   : > { %v6243_v52 = vpop.permute.xlu1 %2307  ;;  %v2401_v3 = vsel %vm700_vm8, %v5927_v30, %v2390_v24  ;;  %v3211_v35 = vld [vmem:[#allocation2 + $0x1a8] sm:$0xff] }
 0x688   : > { %v2318_v7 = vsel %vm614_vm13, %v2306_v58, %v6243_v52  ;;  %v3254_v56 = vld [vmem:[#allocation2 + $0x1d8] sm:$0xff]  ;;  %2417 = vst [vmem:[#allocation2 + $0xe0] sm:$0xf0] %v2401_v3 }
 0x689   : > { %2334 = vst [vmem:[#allocation2 + $0x158] sm:$0xf0] %v2318_v7  ;;  %v3334_v5 = vpack.c.bf16 %v3254_v56, %v3246_v20 }
 0x68a   : > { %v2436_v57 = vpop.permute.xlu0 %2435 }
 0x68b   : > { %3523 = vmatprep.subr.bf16.mxu1 %v3334_v5  ;;  %v6249_v16 = vpop.permute.xlu1 %2349  ;;  %v2445_v27 = vsel %vm6711_vm7, %v6204_v59, %v2436_v57  ;;  %vm6719_vm7 = vmmov %vm6715_vm4 }
 0x68c   : > { %v2360_v30 = vsel %vm657_vm12, %v2348_v29, %v6249_v16  ;;  %3524 = vmatpush1.bf16.msra.mxu1 %v3333_v48  ;;  %2461 = vst [vmem:[#allocation2 + $0x320] sm:$0xf] %v2445_v27 }
 0x68d   : > { %2376 = vst [vmem:[#allocation2 + $0x130] sm:$0xf] %v2360_v30 }
 0x68e   : > { %v2478_v49 = vpop.permute.xlu0 %2477 }
 0x68f   : > { %v6255_v44 = vpop.permute.xlu1 %2391  ;;  %v2487_v45 = vsel %vm6712_vm5, %v6210_v37, %v2478_v49  ;;  %v3219_v47 = vld [vmem:[#allocation2 + $0xe0] sm:$0xff]  ;;  %vm6720_vm5 = vmmov %vm6718_vm0 }
 0x690   : > { %v2402_v2 = vsel %vm700_vm8, %v2390_v24, %v6255_v44  ;;  %2503 = vst [vmem:[#allocation2 + $0x320] sm:$0xf0] %v2487_v45  ;;  %v3212_v50 = vld [vmem:[#allocation2 + $0x158] sm:$0xff]  ;;  %v3315_v21 = vpack.c.bf16 %v3219_v47, %v3211_v35 }
 0x691   : > { %2418 = vst [vmem:[#allocation2 + $0x130] sm:$0xf0] %v2402_v2 }
 0x692   : > { %v2520_v38 = vpop.permute.xlu0 %2519 }
 0x693   : > { %v2438_v23 = vpop.permute.xlu1 %2437  ;;  %v2529_v59 = vsel %vm6713_vm1, %v6216_v43, %v2520_v38 }
 0x694   : > { %v2446_v54 = vsel %vm6714_vm3, %v2436_v57, %v2438_v23  ;;  %2545 = vst [vmem:[#allocation2 + $0x2a8] sm:$0xf] %v2529_v59 }
 0x695   : > { %2462 = vst [vmem:[#allocation2 + $0xf0] sm:$0xf] %v2446_v54 }
 0x696   : > { %v2562_v31 = vpop.permute.xlu0 %2561 }
 0x697   : > { %v2480_v25 = vpop.permute.xlu1 %2479  ;;  %v2571_v37 = vsel %vm6715_vm4, %v6222_v9, %v2562_v31  ;;  %v3229_v46 = vld [vmem:[#allocation2 + $0x320] sm:$0xff] }
 0x698   : > { %v2488_v61 = vsel %vm6716_vm6, %v2478_v49, %v2480_v25  ;;  %v3220_v1 = vld [vmem:[#allocation2 + $0x130] sm:$0xff]  ;;  %2587 = vst [vmem:[#allocation2 + $0x2a8] sm:$0xf0] %v2571_v37 }
 0x699   : > { %2504 = vst [vmem:[#allocation2 + $0xf0] sm:$0xf0] %v2488_v61  ;;  %v3316_v15 = vpack.c.bf16 %v3220_v1, %v3212_v50 }
 0x69a   : > { %v2091_v43 = vpop.permute.xlu0 %2090 }
 0x69b   : > { %3486 = vmatprep.subr.bf16.mxu0 %v3316_v15  ;;  %v2522_v22 = vpop.permute.xlu1 %2521  ;;  %v2102_v0 = vsel %vm394_vm9, %v5953_v26, %v2091_v43 }
 0x69c   : > { %v2530_v6 = vsel %vm6717_vm2, %v2520_v38, %v2522_v22  ;;  %3487 = vmatpush1.bf16.msra.mxu0 %v3315_v21  ;;  %2118 = vst [vmem:[#allocation2 + $0x360] sm:$0xf] %v2102_v0 }
 0x69d   : > { %2546 = vst [vmem:[#allocation2 + $0x310] sm:$0xf] %v2530_v6 }
 0x69e   : > { %v2138_v9 = vpop.permute.xlu0 %2137 }
 0x69f   : > { %v2564_v63 = vpop.permute.xlu1 %2563  ;;  %v2149_v39 = vsel %vm6718_vm0, %v5963_v4, %v2138_v9  ;;  %v3237_v19 = vld [vmem:[#allocation2 + $0x2a8] sm:$0xff] }
 0x6a0   : > { %v2572_v42 = vsel %vm6719_vm7, %v2562_v31, %v2564_v63  ;;  %2165 = vst [vmem:[#allocation2 + $0x360] sm:$0xf0] %v2149_v39  ;;  %v3230_v14 = vld [vmem:[#allocation2 + $0xf0] sm:$0xff]  ;;  %v3325_v58 = vpack.c.bf16 %v3237_v19, %v3229_v46 }
 0x6a1   : > { %2588 = vst [vmem:[#allocation2 + $0x310] sm:$0xf0] %v2572_v42 }
 0x6a2   : > { %v2180_v32 = vpop.permute.xlu0 %2179 }
 0x6a3   : > { %v2093_v33 = vpop.permute.xlu1 %2092  ;;  %v2191_v62 = vsel %vm485_vm11, %v5973_v28, %v2180_v32 }
 0x6a4   : > { %v2103_v26 = vsel %vm394_vm9, %v2091_v43, %v2093_v33  ;;  %2207 = vst [vmem:[#allocation2 + $0x148] sm:$0xf] %v2191_v62 }
 0x6a5   : > { %2119 = vst [vmem:[#allocation2 + $0x328] sm:$0xf] %v2103_v26 }
 0x6a6   : > { %v2222_v11 = vpop.permute.xlu0 %2221 }
 0x6a7   : > { %v2140_v34 = vpop.permute.xlu1 %2139  ;;  %v2233_v17 = vsel %vm528_vm15, %v5990_v10, %v2222_v11  ;;  %v3195_v27 = vld [vmem:[#allocation2 + $0x360] sm:$0xff] }
 0x6a8   : > { %v2150_v4 = vsel %vm6720_vm5, %v2138_v9, %v2140_v34  ;;  %v3238_v40 = vld [vmem:[#allocation2 + $0x310] sm:$0xff]  ;;  %2249 = vst [vmem:[#allocation2 + $0x148] sm:$0xf0] %v2233_v17 }
 0x6a9   : > { %2166 = vst [vmem:[#allocation2 + $0x328] sm:$0xf0] %v2150_v4  ;;  %v3326_v36 = vpack.c.bf16 %v3238_v40, %v3230_v14 }
 0x6aa   : > { %v2268_v28 = vpop.permute.xlu0 %2267 }
 0x6ab   : > { %3525 = vmatprep.subr.bf16.mxu1 %v3326_v36  ;;  %v2182_v41 = vpop.permute.xlu1 %2181  ;;  %v2277_v53 = vsel %vm571_vm14, %v6237_v55, %v2268_v28 }
 0x6ac   : > { %v2192_v12 = vsel %vm485_vm11, %v2180_v32, %v2182_v41  ;;  %3526 = vmatpush1.bf16.msra.mxu1 %v3325_v58  ;;  %2293 = vst [vmem:[#allocation2 + $0x2e0] sm:$0xf] %v2277_v53 }
 0x6ad   : > { %2208 = vst [vmem:[#allocation2 + $0x100] sm:$0xf] %v2192_v12 }
 0x6ae   : > { %v2310_v10 = vpop.permute.xlu0 %2309 }
 0x6af   : > { %v2224_v29 = vpop.permute.xlu1 %2223  ;;  %v2319_v60 = vsel %vm614_vm13, %v6243_v52, %v2310_v10  ;;  %v3203_v56 = vld [vmem:[#allocation2 + $0x148] sm:$0xff] }
 0x6b0   : > { %v2234_v8 = vsel %vm528_vm15, %v2222_v11, %v2224_v29  ;;  %2335 = vst [vmem:[#allocation2 + $0x2e0] sm:$0xf0] %v2319_v60  ;;  %v3196_v51 = vld [vmem:[#allocation2 + $0x328] sm:$0xff]  ;;  %v3307_v30 = vpack.c.bf16 %v3203_v56, %v3195_v27  ;;  %v6727_v56 = vld [vmem:[#allocation12_spill] sm:$0xff] }
 0x6b1   : > { %2250 = vst [vmem:[#allocation2 + $0x100] sm:$0xf0] %v2234_v8  ;;  %v6723_v60 = vld [vmem:[#allocation10_spill] sm:$0xff] }
 0x6b2   : > { %v2352_v24 = vpop.permute.xlu0 %2351  ;;  %v6730_v27 = vld [vmem:[#allocation14_spill] sm:$0xff] }
 0x6b3   : > { %v2270_v13 = vpop.permute.xlu1 %2269  ;;  %v2361_v3 = vsel %vm657_vm12, %v6249_v16, %v2352_v24 }
 0x6b4   : > { %v2278_v55 = vsel %vm571_vm14, %v2268_v28, %v2270_v13  ;;  %2377 = vst [vmem:[#allocation2 + $0x1e8] sm:$0xf] %v2361_v3 }
 0x6b5   : > { %2294 = vst [vmem:[#allocation2 + $0x278] sm:$0xf] %v2278_v55 }
 0x6b6   : > { %v2394_v7 = vpop.permute.xlu0 %2393 }
 0x6b7   : > { %v2312_v20 = vpop.permute.xlu1 %2311  ;;  %v2403_v5 = vsel %vm700_vm8, %v6255_v44, %v2394_v7  ;;  %v3213_v63 = vld [vmem:[#allocation2 + $0x2e0] sm:$0xff] }
 0x6b8   : > { %v2320_v52 = vsel %vm614_vm13, %v2310_v10, %v2312_v20  ;;  %v3204_v48 = vld [vmem:[#allocation2 + $0x100] sm:$0xff]  ;;  %2419 = vst [vmem:[#allocation2 + $0x1e8] sm:$0xf0] %v2403_v5  ;;  %vm6721_vm13 = vmmov %vm6718_vm0 }
 0x6b9   : > { %2336 = vst [vmem:[#allocation2 + $0x278] sm:$0xf0] %v2320_v52  ;;  %v3308_v57 = vpack.c.bf16 %v3204_v48, %v3196_v51  ;;  %v6728_v51 = vld [vmem:[#allocation13_spill] sm:$0xff] }
 0x6ba   : > { %v2095_v16 = vpop.permute.xlu0 %2094 }
 0x6bb   : > { %3488 = vmatprep.subr.bf16.mxu0 %v3308_v57  ;;  %v2354_v49 = vpop.permute.xlu1 %2353  ;;  %v2104_v45 = vsel %vm394_vm9, %v2093_v33, %v2095_v16 }
 0x6bc   : > { %v2362_v2 = vsel %vm657_vm12, %v2352_v24, %v2354_v49  ;;  %3489 = vmatpush1.bf16.msra.mxu0 %v3307_v30  ;;  %2120 = vst [vmem:[#allocation2 + $0x40] sm:$0xf] %v2104_v45  ;;  %vm6722_vm12 = vmmov %vm6718_vm0  ;;  %v6724_v24 = vld [vmem:[#allocation11_spill] sm:$0xff] }
 0x6bd   : > { %2378 = vst [vmem:[#allocation2 + $0x38] sm:$0xf] %v2362_v2  ;;  %v3426_v44 = vpop.f32.mrf.mxu0 }
 0x6be   : > { %v2142_v38 = vpop.permute.xlu0 %2141 }
 0x6bf   : > { %3775 = vmatmul.mubr.msk.bf16.vlgmr.msra.gmra.mxu0 %vm1687_vm10, %v5978_v18  ;;  %v2396_v23 = vpop.permute.xlu1 %2395  ;;  %v2151_v59 = vsel %vm6721_vm13, %v2140_v34, %v2142_v38  ;;  %v3428_v31 = vpop.f32.mrf.mxu0  ;;  %v3221_v21 = vld [vmem:[#allocation2 + $0x1e8] sm:$0xff] }
 0x6c0   : > { %v2404_v54 = vsel %vm700_vm8, %v2394_v7, %v2396_v23  ;;  %2167 = vst [vmem:[#allocation2 + $0x40] sm:$0xf0] %v2151_v59  ;;  %v3214_v0 = vld [vmem:[#allocation2 + $0x278] sm:$0xff]  ;;  %v3317_v39 = vpack.c.bf16 %v3221_v21, %v3213_v63  ;;  %vm6725_vm8 = vcmask 1043456   ;;  %v6737_v21 = vld [vmem:[#allocation17_spill] sm:$0xff] }
 0x6c1   : > { %2420 = vst [vmem:[#allocation2 + $0x38] sm:$0xf0] %v2404_v54  ;;  %v3430_v25 = vpop.f32.mrf.mxu0  ;;  %vm6732_vm14 = vmmov %vm6725_vm8  ;;  %v3648_v63 = vld [vmem:[%s6368_s9] sm:$0xf] }
 0x6c2   : > { %v2184_v47 = vpop.permute.xlu0 %2183  ;;  %vm6736_vm1 = vmmov %vm6725_vm8 }
 0x6c3   : > { %v2097_v37 = vpop.permute.xlu1 %2096  ;;  %v2193_v61 = vsel %vm485_vm11, %v2182_v41, %v2184_v47  ;;  %v3431_v1 = vpop.f32.mrf.mxu0  ;;  %vm6738_vm3 = vmmov %vm6736_vm1 }
 0x6c4   : > { %v2105_v50 = vsel %vm394_vm9, %v2095_v16, %v2097_v37  ;;  %2209 = vst [vmem:[#allocation2 + $0x58] sm:$0xf] %v2193_v61  ;;  %vm6726_vm9 = vmmov %vm6725_vm8  ;;  %v6735_v37 = vld [vmem:[#allocation16_spill] sm:$0xff] }
 0x6c5   : > { %2121 = vst [vmem:[#allocation2 + $0x378] sm:$0xf] %v2105_v50  ;;  %vm6739_vm4 = vmmov %vm6736_vm1 }
 0x6c6   : > { %v2226_v15 = vpop.permute.xlu0 %2225  ;;  %vm6740_vm6 = vmmov %vm6736_vm1 }
 0x6c7   : > { %v2144_v35 = vpop.permute.xlu1 %2143  ;;  %v2235_v43 = vsel %vm528_vm15, %v2224_v29, %v2226_v15  ;;  %v3197_v36 = vld [vmem:[#allocation2 + $0x40] sm:$0xff]  ;;  %vm6741_vm2 = vmmov %vm6736_vm1 }
 0x6c8   : > { %v2152_v22 = vsel %vm6722_vm12, %v2142_v38, %v2144_v35  ;;  %v3222_v6 = vld [vmem:[#allocation2 + $0x38] sm:$0xff]  ;;  %2251 = vst [vmem:[#allocation2 + $0x58] sm:$0xf0] %v2235_v43  ;;  %vm6742_vm0 = vmmov %vm6736_vm1 }
 0x6c9   : > { %2168 = vst [vmem:[#allocation2 + $0x378] sm:$0xf0] %v2152_v22  ;;  %v3318_v9 = vpack.c.bf16 %v3222_v6, %v3214_v0  ;;  %vm6743_vm7 = vmmov %vm6742_vm0 }
 0x6ca   : > { %vm6744_vm5 = vmmov %vm6742_vm0 }
 0x6cb   : > { %3527 = vmatprep.subr.bf16.mxu1 %v3318_v9  ;;  %v2186_v42 = vpop.permute.xlu1 %2185  ;;  %vm6745_vm13 = vmmov %vm6742_vm0 }
 0x6cc   : > { %v2194_v32 = vsel %vm485_vm11, %v2184_v47, %v2186_v42  ;;  %3528 = vmatpush1.bf16.msra.mxu1 %v3317_v39  ;;  %vm6731_vm11 = vmmov %vm6725_vm8 }
 0x6cd   : > { %2210 = vst [vmem:[#allocation2 + $0x2d8] sm:$0xf] %v2194_v32  ;;  %vm6746_vm12 = vmmov %vm6742_vm0 }
 0x6ce   : > { %v3467_v62 = vpop.f32.mrf.mxu1 }
 0x6cf   : > { %v2228_v33 = vpop.permute.xlu1 %2227  ;;  %v3205_v4 = vld [vmem:[#allocation2 + $0x58] sm:$0xff] }
 0x6d0   : > { %v2236_v26 = vsel %vm528_vm15, %v2226_v15, %v2228_v33  ;;  %v3469_v11 = vpop.f32.mrf.mxu1  ;;  %v3198_v14 = vld [vmem:[#allocation2 + $0x378] sm:$0xff]  ;;  %v3309_v46 = vpack.c.bf16 %v3205_v4, %v3197_v36  ;;  %vm6734_vm15 = vmmov %vm6725_vm8 }
 0x6d1   : > { %2252 = vst [vmem:[#allocation2 + $0x2d8] sm:$0xf0] %v2236_v26 }
 0x6d2   : > { %v3471_v34 = vpop.f32.mrf.mxu1 }
 0x6d3   : > { %v3363_v12 = vpop.permute.xlu0 %3362 }
 0x6d4   : > { %v3472_v19 = vpop.f32.mrf.mxu1  ;;  %v3427_v10 = vadd.f32 %v3426_v44, %v3363_v12  ;;  %v3429_v29 = vadd.f32 %v3428_v31, %v3363_v12  ;;  %v3468_v3 = vadd.f32 %v3467_v62, %v3363_v12  ;;  %v3470_v20 = vadd.f32 %v3469_v11, %v3363_v12  ;;  %v6733_v44 = vld [vmem:[#allocation15_spill] sm:$0xff] }
 0x6d6   : > { %v3556_v8 = vmul.f32 %v3427_v10, %v6723_v60  ;;  %v3557_v13 = vmul.f32 %v3429_v29, %v6724_v24  ;;  %v3558_v5 = vmul.f32 %v3468_v3, %v6727_v56  ;;  %v3559_v48 = vmul.f32 %v3470_v20, %v6728_v51 }
 0x6d8   : > { %v3206_v17 = vld [vmem:[#allocation2 + $0x2d8] sm:$0xff]  ;;  %v3564_v55 = vsel %vm6725_vm8, %v3556_v8, 0.0  ;;  %v3565_v7 = vsel %vm6726_vm9, %v3557_v13, 0.0  ;;  %v3569_v45 = vsel %vm6731_vm11, %v3559_v48, 0.0  ;;  %vm6752_vm9 = vmmov %vm6742_vm0 }
 0x6d9   : > { %v3310_v40 = vpack.c.bf16 %v3206_v17, %v3198_v14  ;;  %v3566_v52 = vadd.f32 %v3565_v7, %v3564_v55  ;;  %vm6755_vm11 = vmmov %vm6742_vm0 }
 0x6db   : > { %3529 = vmatprep.subr.bf16.mxu1 %v3310_v40 }
 0x6dc   : > { %3530 = vmatpush1.bf16.msra.mxu1 %v3309_v46 }
 0x6df   : > { %3777 = vmatmul.mubr.msk.bf16.vlgmr.msra.gmra.mxu1 %vm1687_vm10, %v5978_v18  ;;  %vm6729_vm10 = vmmov %vm6725_vm8 }
 0x6e0   : > { %v3567_v57 = vsel %vm6729_vm10, %v3558_v5, 0.0  ;;  %vm6751_vm8 = vmmov %vm6742_vm0 }
 0x6e1   : > { %v3568_v49 = vadd.f32 %v3567_v57, %v3566_v52  ;;  %vm6754_vm10 = vmmov %vm6742_vm0 }
 0x6e3   : > { %v3570_v23 = vadd.f32 %v3569_v45, %v3568_v49  ;;  %v3634_v45 = vld [vmem:[%s6367_s8] sm:$0xf] }
 0x77f   : > { %v3508_v58 = vpop.f32.mrf.mxu0 }
 0x780   : > { %v3509_v18 = vadd.f32 %v3508_v58, %v3363_v12 }
 0x781   : > { %v3510_v28 = vpop.f32.mrf.mxu0 }
 0x782   : > { %v3560_v30 = vmul.f32 %v3509_v18, %v6730_v27  ;;  %v3511_v16 = vadd.f32 %v3510_v28, %v3363_v12 }
 0x783   : > { %v3512_v41 = vpop.f32.mrf.mxu0 }
 0x784   : > { %v3571_v2 = vsel %vm6732_vm14, %v3560_v30, 0.0  ;;  %v3561_v38 = vmul.f32 %v3511_v16, %v6733_v44 }
 0x785   : > { %v3513_v53 = vpop.f32.mrf.mxu0  ;;  %v3572_v59 = vadd.f32 %v3571_v2, %v3570_v23  ;;  %v6747_v23 = vld [vmem:[#allocation8_spill] sm:$0xff] }
 0x786   : > { %v3573_v31 = vsel %vm6734_vm15, %v3561_v38, 0.0 }
 0x787   : > { %v3574_v1 = vadd.f32 %v3573_v31, %v3572_v59  ;;  %v3662_v59 = vrot.slane %v6747_v23, 4 }
 0x79f   : > { %v3549_v54 = vpop.f32.mrf.mxu1 }
 0x7a0   : > { %v3550_v25 = vadd.f32 %v3549_v54, %v3363_v12  ;;  %v6748_v54 = vld [vmem:[#allocation6_spill] sm:$0xff] }
 0x7a1   : > { %v3551_v47 = vpop.f32.mrf.mxu1  ;;  %v3663_v31 = vrot.slane %v6748_v54, 4 }
 0x7a2   : > { %v3562_v61 = vmul.f32 %v3550_v25, %v6735_v37  ;;  %v3552_v50 = vadd.f32 %v3551_v47, %v3363_v12  ;;  %v6749_v25 = vld [vmem:[#allocation9_spill] sm:$0xff] }
 0x7a3   : > { %v3553_v15 = vpop.f32.mrf.mxu1  ;;  %v3664_v47 = vrot.slane %v6749_v25, 4 }
 0x7a4   : > { %v3575_v35 = vsel %vm6736_vm1, %v3562_v61, 0.0  ;;  %v3563_v43 = vmul.f32 %v3552_v50, %v6737_v21 }
 0x7a5   : > { %v3576_v22 = vadd.f32 %v3575_v35, %v3574_v1  ;;  %v3554_v0 = vpop.f32.mrf.mxu1  ;;  %v3847_v1 = vld [vmem:[%s3953_s18 + $0x20] sm:$0xff]  ;;  %v3667_v35 = vsel %vm6751_vm8, %v3662_v59, %v3663_v31  ;;  %s3780_s18 = sshll.u32 %s6753_s14, 5 }
 0x7a6   : > { %v3577_v6 = vsel %vm6738_vm3, %v3563_v43, 0.0  ;;  %v3666_v15 = vrot.slane %v3847_v1, 4  ;;  %s359_s24 = scalar_lea.vmem %s6756_s22, %s3780_s18 }
 0x7a7   : > { %v3578_v9 = vadd.f32 %v3577_v6, %v3576_v22 }
 0x7a9   : > { %3579 = vadd.xlane.f32.xlu1 %v3578_v9 }
 0x7ba   : > { %3651 = vperm.xlu1 %3819, %v3648_v63  }
 0x832   : > { %v3580_v39 = vpop.xlane.xlu1 %3579 }
 0x833   : > { %v3581_v42 = vmul.f32 0.001953125, %v3580_v39 }
 0x835   : > { %v3582_v32 = vsub.f32 %v3556_v8, %v3581_v42  ;;  %v3583_v33 = vsub.f32 %v3557_v13, %v3581_v42  ;;  %v3584_v62 = vsub.f32 %v3558_v5, %v3581_v42  ;;  %v3585_v26 = vsub.f32 %v3559_v48, %v3581_v42 }
 0x836   : > { %v3586_v11 = vsub.f32 %v3560_v30, %v3581_v42  ;;  %v3587_v34 = vsub.f32 %v3561_v38, %v3581_v42  ;;  %v3588_v40 = vsub.f32 %v3562_v61, %v3581_v42  ;;  %v3589_v41 = vsub.f32 %v3563_v43, %v3581_v42  ;;  %v6750_v61 = vld [vmem:[#allocation7_spill] sm:$0xff] }
 0x837   : > { %v3590_v19 = vmul.f32 %v3582_v32, %v6723_v60  ;;  %v3591_v17 = vmul.f32 %v3583_v33, %v6724_v24  ;;  %v3592_v4 = vmul.f32 %v3584_v62, %v6727_v56  ;;  %v3593_v14 = vmul.f32 %v3585_v26, %v6728_v51 }
 0x838   : > { %v3594_v36 = vmul.f32 %v3586_v11, %v6730_v27  ;;  %v3595_v53 = vmul.f32 %v3587_v34, %v6733_v44  ;;  %v3596_v8 = vmul.f32 %v3588_v40, %v6735_v37  ;;  %v3597_v55 = vmul.f32 %v3589_v41, %v6737_v21  ;;  %v3652_v34 = vpop.permute.xlu1 %3651 }
 0x839   : > { %v3598_v46 = vmul.f32 %v3590_v19, %v3590_v19  ;;  %v3599_v58 = vmul.f32 %v3591_v17, %v3591_v17  ;;  %v3600_v28 = vmul.f32 %v3592_v4, %v3592_v4  ;;  %v3601_v12 = vmul.f32 %v3593_v14, %v3593_v14 }
 0x83a   : > { %v3602_v24 = vmul.f32 %v3594_v36, %v3594_v36  ;;  %v3603_v7 = vmul.f32 %v3595_v53, %v3595_v53  ;;  %v3604_v5 = vmul.f32 %v3596_v8, %v3596_v8  ;;  %v3605_v51 = vmul.f32 %v3597_v55, %v3597_v55 }
 0x83b   : > { %v3606_v10 = vsel %vm6739_vm4, %v3598_v46, 0.0  ;;  %v3607_v29 = vsel %vm6740_vm6, %v3599_v58, 0.0  ;;  %v3609_v13 = vsel %vm6741_vm2, %v3600_v28, 0.0  ;;  %v3611_v20 = vsel %vm6742_vm0, %v3601_v12, 0.0 }
 0x83c   : > { %v3608_v60 = vadd.f32 %v3607_v29, %v3606_v10  ;;  %v3613_v18 = vsel %vm6743_vm7, %v3602_v24, 0.0  ;;  %v3615_v48 = vsel %vm6744_vm5, %v3603_v7, 0.0  ;;  %v3617_v27 = vsel %vm6745_vm13, %v3604_v5, 0.0 }
 0x83d   : > { %v3619_v16 = vsel %vm6746_vm12, %v3605_v51, 0.0  ;;  %v3665_v50 = vrot.slane %v6750_v61, 4  ;;  %v3668_v21 = vsel %vm6752_vm9, %v3663_v31, %v3664_v47 }
 0x83e   : > { %v3610_v3 = vadd.f32 %v3609_v13, %v3608_v60 }
 0x83f   : > { %v3669_v10 = vsel %vm6754_vm10, %v3664_v47, %v3665_v50  ;;  %v3670_v29 = vsel %vm6755_vm11, %v3665_v50, %v3666_v15 }
 0x840   : > { %v3612_v56 = vadd.f32 %v3611_v20, %v3610_v3 }
 0x842   : > { %v3614_v52 = vadd.f32 %v3613_v18, %v3612_v56 }
 0x844   : > { %v3616_v57 = vadd.f32 %v3615_v48, %v3614_v52 }
 0x846   : > { %v3618_v30 = vadd.f32 %v3617_v27, %v3616_v57 }
 0x848   : > { %v3620_v49 = vadd.f32 %v3619_v16, %v3618_v30 }
 0x84a   : > { %3621 = vadd.xlane.f32.xlu0 %v3620_v49 }
 0x860   : > { %3637 = vperm.xlu0 %3818, %v3634_v45  }
 0x8d3   : > { %v3622_v2 = vpop.xlane.xlu0 %3621 }
 0x8d4   : > { %v3623_v44 = vmul.f32 0.001953125, %v3622_v2 }
 0x8d6   : > { %v3624_v38 = vadd.f32 1e-05, %v3623_v44 }
 0x8d8   : > { %3842 = vrsqrt.f32 %v3624_v38 }
 0x8db   : > { %v3638_v32 = vpop.permute.xlu0 %3637 }
 0x8e5   : > { %v3843_v37 = vpop.eup %3842 }
 0x8e6   : > { %v3626_v43 = vmul.f32 %v3843_v37, %v3590_v19  ;;  %v3627_v22 = vmul.f32 %v3843_v37, %v3591_v17  ;;  %v3628_v0 = vmul.f32 %v3843_v37, %v3592_v4  ;;  %v3629_v6 = vmul.f32 %v3843_v37, %v3593_v14 }
 0x8e7   : > { %v3630_v9 = vmul.f32 %v3843_v37, %v3594_v36  ;;  %v3631_v63 = vmul.f32 %v3843_v37, %v3595_v53  ;;  %v3632_v39 = vmul.f32 %v3843_v37, %v3596_v8  ;;  %v3633_v42 = vmul.f32 %v3843_v37, %v3597_v55 }
 0x8e8   : > { %v3640_v33 = vmul.f32 %v3638_v32, %v3626_v43  ;;  %v3641_v62 = vmul.f32 %v3638_v32, %v3627_v22  ;;  %v3642_v26 = vmul.f32 %v3638_v32, %v3628_v0  ;;  %v3643_v11 = vmul.f32 %v3638_v32, %v3629_v6 }
 0x8e9   : > { %v3644_v40 = vmul.f32 %v3638_v32, %v3630_v9  ;;  %v3645_v46 = vmul.f32 %v3638_v32, %v3631_v63  ;;  %v3646_v58 = vmul.f32 %v3638_v32, %v3632_v39  ;;  %v3647_v28 = vmul.f32 %v3638_v32, %v3633_v42 }
 0x8ea   : > { %v3654_v19 = vadd.f32 %v3652_v34, %v3640_v33  ;;  %v3655_v17 = vadd.f32 %v3652_v34, %v3641_v62  ;;  %v3656_v4 = vadd.f32 %v3652_v34, %v3642_v26  ;;  %v3657_v41 = vadd.f32 %v3652_v34, %v3643_v11 }
 0x8eb   : > { %v3658_v14 = vadd.f32 %v3652_v34, %v3644_v40  ;;  %v3659_v36 = vadd.f32 %v3652_v34, %v3645_v46  ;;  %v3660_v53 = vadd.f32 %v3652_v34, %v3646_v58  ;;  %v3661_v12 = vadd.f32 %v3652_v34, %v3647_v28 }
 0x8ec   : > { %v3683_v60 = vcombine.low %v3654_v19, %v3655_v17  ;;  %v3684_v8 = vcombine.low %v3656_v4, %v3657_v41 }
 0x8ed   : > { %v3685_v24 = vcombine.low %v3658_v14, %v3659_v36  ;;  %v3686_v13 = vcombine.low %v3660_v53, %v3661_v12 }
 0x8ee   : > { %v3691_v3 = vadd.f32 %v3683_v60, %v3667_v35  ;;  %v3692_v55 = vadd.f32 %v3684_v8, %v3668_v21 }
 0x8ef   : > { %v3693_v7 = vadd.f32 %v3685_v24, %v3669_v10  ;;  %v3694_v20 = vadd.f32 %v3686_v13, %v3670_v29 }
 0x8f0   : > { %3695 = vst [vmem:[%s359_s24] sm:$0xff] %v3691_v3  ;;  %3696 = vst [vmem:[%s359_s24 + $0x8] sm:$0xff] %v3692_v55 }
 0x8f1   : > { %3697 = vst [vmem:[%s359_s24 + $0x10] sm:$0xff] %v3693_v7  ;;  %3698 = vst [vmem:[%s359_s24 + $0x18] sm:$0xff] %v3694_v20 }
 0x8f2 PF: > { %s6757_s25 = sld [smem:[#allocation4_spill]] }
 0x8f8   : > { %s20_s13 = sadd.s32 1, %s6757_s25  }
 0x8f9   : > { %p17_p4 = scmp.ge.s32.totalorder %s20_s13, 4  }
 0x8fb   :  { %19 = sbr.rel (!%p17_p4) target bundleno = 8 (0x8), region = 90 }

</bundles_post_ra>
